<compile_context>
chip_gen: v5e
topology: v5e:2x2
jax: 0.10.0
libtpu: 0.0.40
codegen_flags: <defaults>
</compile_context>

<pallas_src>
import jax
import jax.numpy as jnp
from jax.experimental import pallas as pl
from jax.experimental.pallas import tpu as pltpu

H = 768      # codebert hidden size
I = 3072     # intermediate size (linear1 out / linear2 in)
C = 2        # number of classes
NC = 2       # partitions of the I reduction (parallel grid axis; 2 TCs on v7x)
TN = 1536    # tile width over I per grid step
NJ = I // (NC * TN)   # reduction steps per partition (=1)
assert I % (NC * TN) == 0


def vuln_head_kernel(hid_ref, w1_ref, b1_ref, wf_ref, out_ref,
                     pooled_ref, acc_ref):
    j = pl.program_id(1)

    # Sequence mean-pool in f32, single bf16 cast into VMEM scratch.
    @pl.when(j == 0)
    def _():
        pooled_ref[...] = jnp.mean(hid_ref[...], axis=1).astype(jnp.bfloat16)

    # linear1 tile + bias + tanh (dropout1 identity in eval mode).
    h1 = jnp.tanh(
        jnp.dot(pooled_ref[...], w1_ref[0],
                preferred_element_type=jnp.float32)
        + b1_ref[...])                                        # [B, TN] f32

    # dropout2 identity in eval mode.
    # Fused (linear2 ∘ classifier) partial product: bf16 MXU feed, f32 acc.
    part = jnp.dot(h1.astype(jnp.bfloat16), wf_ref[...],
                   preferred_element_type=jnp.float32)        # [B, C] f32

    @pl.when(j == 0)
    def _():
        acc_ref[...] = part

    @pl.when(j > 0)
    def _():
        acc_ref[...] += part

    @pl.when(j == pl.num_programs(1) - 1)
    def _():
        out_ref[0] = acc_ref[...]


def prepare_head_params(w1, b1, w2, b2, wc, bc):
    """One-time inference weight prep: fuse, tile, cast to bf16.

    logits = (h1 @ w2.T + b2) @ wc.T + bc
           = h1 @ (wc @ w2).T + (b2 @ wc.T + bc)     (exact algebra)
    """
    nt = I // TN
    # w1: [I, H] (torch layout). Tile-major contiguous [nt, H, TN] so each
    # per-step DMA is one long contiguous slab.
    w1_tiles = jnp.asarray(w1.reshape(nt, TN, H).transpose(0, 2, 1),
                           dtype=jnp.bfloat16)                 # [nt, H, TN]
    w_fused = jnp.asarray((wc @ w2).T, dtype=jnp.bfloat16)     # [I, C]
    b_fused = (b2 @ wc.T + bc).astype(jnp.float32)             # [1, C]
    return w1_tiles, b1.astype(jnp.float32), w_fused, b_fused


def vuln_detection_head(hidden, w1_tiles, b1, w_fused, b_fused):
    """hidden: [B, S, H] f32; returns logits [B, 2] f32."""
    B, S, _ = hidden.shape
    partials = pl.pallas_call(
        vuln_head_kernel,
        out_shape=jax.ShapeDtypeStruct((NC, B, C), jnp.float32),
        grid_spec=pltpu.PrefetchScalarGridSpec(
            num_scalar_prefetch=0,
            grid=(NC, NJ),
            in_specs=[
                # hidden stays resident (same block index every step).
                pl.BlockSpec((B, S, H), lambda c, j: (0, 0, 0)),
                # contiguous W1^T tile (bf16)
                pl.BlockSpec((1, H, TN), lambda c, j: (c * NJ + j, 0, 0)),
                # b1 tile (f32)
                pl.BlockSpec((1, TN), lambda c, j: (0, c * NJ + j)),
                # fused W tile (bf16)
                pl.BlockSpec((TN, C), lambda c, j: (c * NJ + j, 0)),
            ],
            out_specs=pl.BlockSpec((1, B, C), lambda c, j: (c, 0, 0)),
            scratch_shapes=[
                pltpu.VMEM((B, H), jnp.bfloat16),   # pooled activations
                pltpu.VMEM((B, C), jnp.float32),    # per-core partial acc
            ],
        ),
        compiler_params=pltpu.CompilerParams(
            dimension_semantics=("parallel", "arbitrary"),
            vmem_limit_bytes=32 << 20),
    )(hidden, w1_tiles, b1, w_fused)
    # Combine the two per-core partial reductions and add the fused bias
    # (single tiny XLA fusion).
    return partials.sum(axis=0) + b_fused


def reference_head(hidden, w1, b1, w2, b2, wc, bc):
    pooled = jnp.mean(hidden, axis=1)
    h1 = jnp.tanh(pooled @ w1.T + b1)
    h2 = h1 @ w2.T + b2
    return h2 @ wc.T + bc


def _uniform_init(key, shape, fan_in):
    bound = 1.0 / jnp.sqrt(float(fan_in))
    return jax.random.uniform(key, shape, jnp.float32, -bound, bound)


if __name__ == "__main__":
    key = jax.random.PRNGKey(0)
    keys = jax.random.split(key, 10)

    B, S, VOCAB = 2, 8, 1000

    # Deterministic example inputs (what the PyTorch forward takes).
    input_ids = jax.random.randint(keys[0], (B, S), 0, VOCAB, dtype=jnp.int32)
    attention_mask = jnp.ones((B, S), dtype=jnp.float32)

    # Stand-in for the external CodeBERT backbone output (last_hidden_state).
    emb_table = 0.02 * jax.random.normal(keys[1], (VOCAB, H), jnp.float32)
    last_hidden_state = jnp.take(emb_table, input_ids, axis=0) \
        * attention_mask[..., None]                      # [B, S, H]

    # Head parameters, PyTorch-default-style uniform init (deterministic).
    w1 = _uniform_init(keys[2], (I, H), H)               # linear1.weight
    b1 = _uniform_init(keys[3], (1, I), H)               # linear1.bias
    w2 = _uniform_init(keys[4], (I, I), I)               # linear2.weight
    b2 = _uniform_init(keys[5], (1, I), I)               # linear2.bias
    wc = _uniform_init(keys[6], (C, I), I)               # classifier.weight
    bc = _uniform_init(keys[7], (1, C), I)               # classifier.bias

    # One-time weight prep (fusion / tiling / bf16 cast), then the kernel.
    prepped = prepare_head_params(w1, b1, w2, b2, wc, bc)
    logits = vuln_detection_head(last_hidden_state, *prepped)
    logits = jax.block_until_ready(logits)

    ref = reference_head(last_hidden_state, w1, b1, w2, b2, wc, bc)
    assert logits.shape == (B, C)
    assert jnp.allclose(logits, ref, rtol=1e-2, atol=1e-2), (logits, ref)

    print("KERNEL_OK")
</pallas_src>

<mosaic_0001>
module attributes {stable_mosaic.version = 11 : i64} {
  func.func @vuln_head_kernel(%arg0: i32, %arg1: i32, %arg2: memref<2x8x768xf32, #tpu.memory_space<vmem>>, %arg3: memref<1x768x1536xbf16, #tpu.memory_space<vmem>>, %arg4: memref<1x1536xf32, #tpu.memory_space<vmem>>, %arg5: memref<1536x2xbf16, #tpu.memory_space<vmem>>, %arg6: memref<1x2x2xf32, #tpu.memory_space<vmem>>, %arg7: memref<2x768xbf16, #tpu.memory_space<vmem>>, %arg8: memref<2x2xf32, #tpu.memory_space<vmem>>) attributes {dimension_semantics = [#tpu.dimension_semantics<parallel>, #tpu.dimension_semantics<arbitrary>], iteration_bounds = array<i64: 2, 1>, scalar_prefetch = 0 : i64, scratch_operands = 2 : i64, tpu.core_type = #tpu.core_type<tc>, window_params = [{pipeline_mode = #tpu.pipeline_mode<synchronous>, transform_indices = @transform_0, window_bounds = array<i64: 2, 8, 768>}, {transform_indices = @transform_1, window_bounds = array<i64: 1, 768, 1536>}, {transform_indices = @transform_2, window_bounds = array<i64: 1, 1536>}, {transform_indices = @transform_3, window_bounds = array<i64: 1536, 2>}, {transform_indices = @transform_4, window_bounds = array<i64: 1, 2, 2>}]} {
    %c0_i32 = arith.constant 0 : i32
    %0 = arith.cmpi eq, %arg1, %c0_i32 : i32
    %1 = arith.extui %0 : i1 to i32
    %c0_i32_0 = arith.constant 0 : i32
    %2 = arith.cmpi ne, %1, %c0_i32_0 : i32
    scf.if %2 {
      %c0_16 = arith.constant 0 : index
      %c0_17 = arith.constant 0 : index
      %c0_18 = arith.constant 0 : index
      %23 = vector.load %arg2[%c0_16, %c0_17, %c0_18] : memref<2x8x768xf32, #tpu.memory_space<vmem>>, vector<2x8x768xf32>
      %cst_19 = arith.constant dense<0.000000e+00> : vector<2x768xf32>
      %24 = vector.multi_reduction <add>, %23, %cst_19 [1] : vector<2x8x768xf32> to vector<2x768xf32>
      %cst_20 = arith.constant 8.000000e+00 : f32
      %25 = vector.broadcast %cst_20 : f32 to vector<2x768xf32>
      %26 = arith.divf %24, %25 : vector<2x768xf32>
      %27 = arith.truncf %26 : vector<2x768xf32> to vector<2x768xbf16>
      %c0_21 = arith.constant 0 : index
      %c0_22 = arith.constant 0 : index
      %28 = vector.load %arg7[%c0_21, %c0_22] : memref<2x768xbf16, #tpu.memory_space<vmem>>, vector<2x768xbf16>
      tpu.vector_store %arg7[%c0_21, %c0_22], %27 {strides = array<i32>} : memref<2x768xbf16, #tpu.memory_space<vmem>>, vector<2x768xbf16>,
    } else {
    }
    %c0 = arith.constant 0 : index
    %c0_1 = arith.constant 0 : index
    %3 = vector.load %arg7[%c0, %c0_1] : memref<2x768xbf16, #tpu.memory_space<vmem>>, vector<2x768xbf16>
    %c0_2 = arith.constant 0 : index
    %c0_3 = arith.constant 0 : index
    %c0_4 = arith.constant 0 : index
    %4 = vector.load %arg3[%c0_2, %c0_3, %c0_4] : memref<1x768x1536xbf16, #tpu.memory_space<vmem>>, vector<1x768x1536xbf16>
    %5 = vector.shape_cast %4 : vector<1x768x1536xbf16> to vector<768x1536xbf16>
    %cst = arith.constant dense<0.000000e+00> : vector<2x1536xf32>
    %6 = tpu.matmul %3, %5, %cst {dimension_numbers = #tpu.dot_dimension_numbers<[1], [0], [0], [1], [0, 0, 1, 1], [], []>} : vector<2x768xbf16>, vector<768x1536xbf16>, vector<2x1536xf32> -> vector<2x1536xf32>
    %c0_5 = arith.constant 0 : index
    %c0_6 = arith.constant 0 : index
    %7 = vector.load %arg4[%c0_5, %c0_6] : memref<1x1536xf32, #tpu.memory_space<vmem>>, vector<1x1536xf32>
    %8 = vector.broadcast %7 : vector<1x1536xf32> to vector<2x1536xf32>
    %9 = arith.addf %6, %8 : vector<2x1536xf32>
    %10 = math.tanh %9 : vector<2x1536xf32>
    %11 = arith.truncf %10 : vector<2x1536xf32> to vector<2x1536xbf16>
    %c0_7 = arith.constant 0 : index
    %c0_8 = arith.constant 0 : index
    %12 = vector.load %arg5[%c0_7, %c0_8] : memref<1536x2xbf16, #tpu.memory_space<vmem>>, vector<1536x2xbf16>
    %cst_9 = arith.constant dense<0.000000e+00> : vector<2x2xf32>
    %13 = tpu.matmul %11, %12, %cst_9 {dimension_numbers = #tpu.dot_dimension_numbers<[1], [0], [0], [1], [0, 0, 1, 1], [], []>} : vector<2x1536xbf16>, vector<1536x2xbf16>, vector<2x2xf32> -> vector<2x2xf32>
    %c0_i32_10 = arith.constant 0 : i32
    %14 = arith.cmpi eq, %arg1, %c0_i32_10 : i32
    %15 = arith.extui %14 : i1 to i32
    %c0_i32_11 = arith.constant 0 : i32
    %16 = arith.cmpi ne, %15, %c0_i32_11 : i32
    scf.if %16 {
      %c0_16 = arith.constant 0 : index
      %c0_17 = arith.constant 0 : index
      %23 = vector.load %arg8[%c0_16, %c0_17] : memref<2x2xf32, #tpu.memory_space<vmem>>, vector<2x2xf32>
      tpu.vector_store %arg8[%c0_16, %c0_17], %13 {strides = array<i32>} : memref<2x2xf32, #tpu.memory_space<vmem>>, vector<2x2xf32>,
    } else {
    }
    %c0_i32_12 = arith.constant 0 : i32
    %17 = arith.cmpi sgt, %arg1, %c0_i32_12 : i32
    %18 = arith.extui %17 : i1 to i32
    %c0_i32_13 = arith.constant 0 : i32
    %19 = arith.cmpi ne, %18, %c0_i32_13 : i32
    scf.if %19 {
      %c0_16 = arith.constant 0 : index
      %c0_17 = arith.constant 0 : index
      %23 = vector.load %arg8[%c0_16, %c0_17] : memref<2x2xf32, #tpu.memory_space<vmem>>, vector<2x2xf32>
      %24 = arith.addf %23, %13 : vector<2x2xf32>
      %c0_18 = arith.constant 0 : index
      %c0_19 = arith.constant 0 : index
      %25 = vector.load %arg8[%c0_18, %c0_19] : memref<2x2xf32, #tpu.memory_space<vmem>>, vector<2x2xf32>
      tpu.vector_store %arg8[%c0_18, %c0_19], %24 {strides = array<i32>} : memref<2x2xf32, #tpu.memory_space<vmem>>, vector<2x2xf32>,
    } else {
    }
    %c0_i32_14 = arith.constant 0 : i32
    %20 = arith.cmpi eq, %arg1, %c0_i32_14 : i32
    %21 = arith.extui %20 : i1 to i32
    %c0_i32_15 = arith.constant 0 : i32
    %22 = arith.cmpi ne, %21, %c0_i32_15 : i32
    scf.if %22 {
      %c0_16 = arith.constant 0 : index
      %c0_17 = arith.constant 0 : index
      %23 = vector.load %arg8[%c0_16, %c0_17] : memref<2x2xf32, #tpu.memory_space<vmem>>, vector<2x2xf32>
      %c0_18 = arith.constant 0 : index
      %c0_19 = arith.constant 0 : index
      %c0_20 = arith.constant 0 : index
      %24 = vector.load %arg6[%c0_18, %c0_19, %c0_20] : memref<1x2x2xf32, #tpu.memory_space<vmem>>, vector<1x2x2xf32>
      %25 = vector.shape_cast %24 : vector<1x2x2xf32> to vector<2x2xf32>
      %26 = vector.shape_cast %23 : vector<2x2xf32> to vector<1x2x2xf32>
      tpu.vector_store %arg6[%c0_18, %c0_19, %c0_20], %26 {strides = array<i32>} : memref<1x2x2xf32, #tpu.memory_space<vmem>>, vector<1x2x2xf32>,
    } else {
    }
    return
  }
  func.func @transform_0(%arg0: i32, %arg1: i32) -> (i32, i32, i32) {
    %c0_i32 = arith.constant 0 : i32
    %c0_i32_0 = arith.constant 0 : i32
    %c0_i32_1 = arith.constant 0 : i32
    %c0_i32_2 = arith.constant 0 : i32
    return %c0_i32, %c0_i32_0, %c0_i32_1 : i32, i32, i32
  }
  func.func @transform_1(%arg0: i32, %arg1: i32) -> (i32, i32, i32) {
    %c1_i32 = arith.constant 1 : i32
    %0 = arith.muli %arg0, %c1_i32 : i32
    %1 = arith.addi %0, %arg1 : i32
    %c0_i32 = arith.constant 0 : i32
    %c0_i32_0 = arith.constant 0 : i32
    %c0_i32_1 = arith.constant 0 : i32
    return %1, %c0_i32, %c0_i32_0 : i32, i32, i32
  }
  func.func @transform_2(%arg0: i32, %arg1: i32) -> (i32, i32) {
    %c1_i32 = arith.constant 1 : i32
    %0 = arith.muli %arg0, %c1_i32 : i32
    %1 = arith.addi %0, %arg1 : i32
    %c0_i32 = arith.constant 0 : i32
    %c0_i32_0 = arith.constant 0 : i32
    return %c0_i32, %1 : i32, i32
  }
  func.func @transform_3(%arg0: i32, %arg1: i32) -> (i32, i32) {
    %c1_i32 = arith.constant 1 : i32
    %0 = arith.muli %arg0, %c1_i32 : i32
    %1 = arith.addi %0, %arg1 : i32
    %c0_i32 = arith.constant 0 : i32
    %c0_i32_0 = arith.constant 0 : i32
    return %1, %c0_i32 : i32, i32
  }
  func.func @transform_4(%arg0: i32, %arg1: i32) -> (i32, i32, i32) {
    %c0_i32 = arith.constant 0 : i32
    %c0_i32_0 = arith.constant 0 : i32
    %c0_i32_1 = arith.constant 0 : i32
    return %arg0, %c0_i32, %c0_i32_0 : i32, i32, i32
  }
}

</mosaic_0001>

<bundles_post_ra>
// kernel: tpu_custom_call.1
= control target key start
LH: loop header
LB: loop body
LE: loop exit
PB: predicated region body
PF: predicated region fallthrough
CT: control target
= control target key end

     0   :  { %s11553_s0 = inlined_call_operand.hbm [shape: f32[2,8,768], index: 0, kind: input, shape index: {}]   ;;  %s11554_s1 = inlined_call_operand.hbm [shape: bf16[2,768,1536], index: 1, kind: input, shape index: {}]   ;;  %s11555_s2 = inlined_call_operand.hbm [shape: f32[1,3072], index: 2, kind: input, shape index: {}]   ;;  %s11556_s3 = inlined_call_operand.vmem [shape: bf16[3072,2], index: 3, kind: input, shape index: {}]   ;;  %s11557_s4 = inlined_call_operand.hbm [shape: f32[2,2,2], index: 4, kind: output, shape index: {}]  }
   0x1   :  { %11561 = sst [smem:[#allocation15_spill]] %s11553_s0 }
   0x2   :  { %11562 = sst [smem:[#allocation16_spill]] %s11554_s1 }
   0x3   :  { %9 = vsyncpa [#allocation5], 0 }
   0x4   :  { %10 = vsyncpa [#allocation8], 0 }
   0x5   :  { %12 = vsyncpa [#allocation8 + $0x1], 0 }
   0x6   :  { %13 = vsyncpa [#allocation6], 0 }
   0x7   :  { %15 = vsyncpa [#allocation6 + $0x1], 0  ;;  %s9793_s15 = smov 0   ;;  %s9795_s16 = smov 0  }
   0x8   :  { %s9797_s17 = smov 0   ;;  %s9799_s18 = smov 0  }
   0x9   :  { %s9801_s19 = smov 0   ;;  %s9803_s20 = smov 0  }
   0xa LB: > { %s33_s21 = sadd.s32 1, %s9758_s19  ;;  %s63_s22 = sadd.s32 1, %s9750_s17  ;;  %s9762_s20 = sphi %s9803_s20, %s21_s20   ;;  %s9758_s19 = sphi %s9801_s19, %s11579_s19   ;;  %s9754_s18 = sphi %s9799_s18, %s11578_s18   ;;  %s9750_s17 = sphi %s9797_s17, %s11577_s17   ;;  %s9746_s16 = sphi %s9795_s16, %s11576_s16   ;;  %s9742_s15 = sphi %s9793_s15, %s11575_s15  }
   0xb   : > { %p35_p0 = scmp.ge.s32.totalorder %s33_s21, 2  ;;  %p70_p1 = scmp.ne.s32.totalorder %s9750_s17, %s9746_s16 }
   0xc   : > { %p71_p2 = scmp.eq.s32.totalorder %s9762_s20, 0  ;;  %p6084_p4 = scmp.ge.s32.totalorder %s9762_s20, 2 }
   0xd   : > { %s11581_s21 = smov (%p35_p0, %s33_s21), 0  ;;  %p9485_p6 = scmp.lt.s32.totalorder %s9762_s20, 2 }
   0xe   : > { %11563 = sst [smem:[#allocation14_spill]] %s11581_s21  ;;  %p72_p3 = por %p71_p2, %p70_p1 }
   0xf   : > { %s60_s23 = ssub.s32 %s9758_s19, %s11581_s21  ;;  %s196_s24 = sand.u32 1, %s9762_s20  }
  0x10   : > { %p61_p5 = scmp.eq.s32.totalorder %s60_s23, 0  ;;  %s198_s25 = sand.u32 1, %s9750_s17  }
  0x11   : > { %s9454_s27 = smul.u32 4608, %s198_s25  ;;  %p9843_p7 = pnand %p9485_p6, %p72_p3 }
  0x12   : > { %s9840_s26 = scalar_select %p61_p5, %s9750_s17, %s63_s22  }
  0x13   : > { %s9455_s28 = smul.u32 4608, %s9758_s19  ;;  %s11565_s1 = sld [smem:[#allocation16_spill]] }
  0x14   : > { %s200_s7 = scalar_lea.vmem [#allocation7], %s9454_s27  ;;  %s9850_s10 = scalar_lea.sflag [#allocation8], %s196_s24 }
  0x15   : > { %s209_s8 = sshll.u32 %s200_s7, 4  ;;  %s11558_s11 = smov 768   ;;  %s210_s8 = int_to_ptr.vmem [resolvable:$true] %s209_s8 }
  0x16   : > { %s11559_s12 = smov 48   ;;  %s9859_s13 = sadd.s32 4294967295, %s9762_s20  }
  0x17   : > { %s6081_s14 = sadd.s32 4294967294, %s9762_s20   ;;  %p76_p8 = scmp.ne.s32.totalorder %s9746_s16, %s9742_s15 }
  0x18   : > { %p77_p9 = scmp.eq.s32.totalorder %s9859_s13, 0  ;;  %p156_p10 = scmp.eq.s32.totalorder %s9859_s13, 1 }
  0x19   : > { %s206_s6 = scalar_lea.hbm %s11565_s1, %s9455_s28  ;;  %p162_p11 = scmp.eq.s32.totalorder %s6081_s14, 1 }
  0x1a   : > { %s207_s9 = sshll.u32 %s206_s6, 4  ;;  %p6082_p12 = scmp.ge.s32.totalorder %s9762_s20, 1  ;;  %s208_s9 = int_to_ptr.hbm [resolvable:$true] %s207_s9 }
  0x1b   : > { %9476 = dma.hbm_to_vmem [thread:$0]  (!%p9843_p7), %s208_s9, 73728, %s210_s8, %s9850_s10, %s11558_s11, %s11558_s11, %s11559_s12  }
  0x1c   : > { %p9869_p13 = por %p77_p9, %p76_p8  ;;  %p9876_p0 = por %p156_p10, %p70_p1 }
  0x1d   : > { %p9880_p2 = por %p162_p11, %p76_p8  ;;  %p169_p3 = scmp.lt.s32.totalorder %s9762_s20, 3 }
  0x1e   : > { %s11569_s0 = sld [smem:[#allocation15_spill]]  ;;  %s9456_s6 = smul.u32 12, %s198_s25 }
  0x1f   : > { %p9888_p5 = pnand %p6082_p12, %p169_p3  ;;  %s9766_s7 = smov [#allocation4]  }
  0x20   : > { %s182_s8 = sshll.u32 %s9766_s7, 4  ;;  %s225_s9 = smul.u32 12, %s9758_s19  ;;  %s183_s8 = int_to_ptr.vmem [resolvable:$true] %s182_s8 }
  0x21   : > { %p9469_p1 = pneg %p9888_p5  ;;  %s223_s14 = scalar_lea.vmem [#allocation9], %s9456_s6 }
  0x22   : > { %s232_s27 = sshll.u32 %s223_s14, 4  ;;  %s228_s12 = scalar_lea.hbm %s11555_s2, %s225_s9  ;;  %s233_s27 = int_to_ptr.vmem [resolvable:$true] %s232_s27 }
  0x23   : > { %p9470_p6 = pnand %p9469_p1, %p77_p9  ;;  %s11572_s1 = smov 768  }
  0x24   : > { %s180_s30 = sshll.u32 %s11569_s0, 4  ;;  %s11571_s0 = smov 48   ;;  %s181_s30 = int_to_ptr.hbm [resolvable:$true] %s180_s30 }
  0x25   : > { %9472 = dma.hbm_to_vmem [thread:$0]  (!%p9470_p6), %s181_s30, 1536, %s183_s8, [#allocation5], %s11572_s1, %s11572_s1, %s11571_s0  }
  0x26   : > { %s230_s21 = sshll.u32 %s228_s12, 4  ;;  %252 = sbr.rel (%p9888_p5) target bundleno = 967 (0x3c7), region = 36  ;;  %s231_s21 = int_to_ptr.hbm [resolvable:$true] %s230_s21 }
  0x27   : > { %9479 = dma.hbm_to_vmem [thread:$0]  (!%p9843_p7), %s231_s21, 192, %s233_s27, %s9850_s10  }
  0x2b   : > { %9729 = dma.done.wait (%p77_p9), [#allocation5], 1536  }
  0x2c   : > { %9731 = vsyncadd (%p77_p9), [#allocation5], 4294965760  ;;  %s259_s25 = sand.u32 1, %s9859_s13   ;;  %s9914_s11 = sand.u32 1, %s9746_s16  }
  0x2d   : > { %s9457_s0 = smul.u32 4608, %s9914_s11  ;;  %s260_s1 = scalar_lea.sflag [#allocation8], %s259_s25 }
  0x2f   : > { %s9917_s29 = scalar_lea.vmem [#allocation7], %s9457_s0 }
  0x30   : > { %9733 = dma.done.wait (%p9869_p13), %s260_s1, 73920  }
  0x31   : > { %9735 = vsyncadd (%p9869_p13), %s260_s1, 4294893376  ;;  %v6428_v0 = vld [vmem:[%s9917_s29 + $0x2a0] sm:$0xf]  ;;  %v8872_v1 = vld [vmem:[%s9917_s29 + $0x2cc] sm:$0xf0]  ;;  %vm450_vm1 = vcmask 1040384  }
  0x32   : > { %v6812_v2 = vld [vmem:[%s9917_s29 + $0x5a0] sm:$0xf]  ;;  %v6429_v3 = vor.u32 %v8872_v1, %v6428_v0  ;;  %v8968_v4 = vld [vmem:[%s9917_s29 + $0x5cc] sm:$0xf0]  ;;  %vm454_vm2 = vcmask 1041408   ;;  %vm457_vm3 = vcmask 1043459  }
  0x33   : > { %v7196_v5 = vld [vmem:[%s9917_s29 + $0x8a0] sm:$0xf]  ;;  %v9064_v6 = vld [vmem:[%s9917_s29 + $0x8cc] sm:$0xf0]  ;;  %v6813_v7 = vor.u32 %v8968_v4, %v6812_v2  ;;  %vm461_vm4 = vcmask 1044483   ;;  %vm464_vm5 = vcmask 1042432  }
  0x34   : > { %v7197_v8 = vor.u32 %v9064_v6, %v7196_v5  ;;  %v7580_v9 = vld [vmem:[%s9917_s29 + $0xba0] sm:$0xf]  ;;  %v9160_v10 = vld [vmem:[%s9917_s29 + $0xbcc] sm:$0xf0]  ;;  %4037 = vmatpush.bf16.msra.mxu0 %v6429_v3  ;;  %vm505_vm6 = vcmask 1041409   ;;  %s9458_s21 = smul.u32 12, %s9914_s11 }
  0x35   : > { %v6380_v11 = vld [vmem:[%s9917_s29 + $0x240] sm:$0xf]  ;;  %v7581_v12 = vor.u32 %v9160_v10, %v7580_v9  ;;  %v8860_v13 = vld [vmem:[%s9917_s29 + $0x26c] sm:$0xf0]  ;;  %4050 = vmatpush.bf16.msra.mxu1 %v6813_v7  ;;  %s314_s12 = smul.u32 192, %s9754_s18  ;;  %vm5924_vm7 = vcmask 9216  }
  0x36   : > { %v6764_v14 = vld [vmem:[%s9917_s29 + $0x540] sm:$0xf]  ;;  %v8956_v15 = vld [vmem:[%s9917_s29 + $0x56c] sm:$0xf0]  ;;  %4063 = vmatpush.bf16.msra.mxu2 %v7197_v8  ;;  %v6381_v16 = vor.u32 %v8860_v13, %v6380_v11  ;;  %s10467_s10 = scalar_lea.vmem [#allocation9], %s9458_s21  ;;  %s6088_s7 = sshll.u32 %s9914_s11, 1 }
  0x37   : > { %v6765_v17 = vor.u32 %v8956_v15, %v6764_v14  ;;  %v7148_v18 = vld [vmem:[%s9917_s29 + $0x840] sm:$0xf]  ;;  %v9052_v19 = vld [vmem:[%s9917_s29 + $0x86c] sm:$0xf0]  ;;  %4076 = vmatpush.bf16.msra.mxu3 %v7581_v12  ;;  %p11341_p7 = scmp.lt.s32.totalorder %s314_s12, 383  ;;  %s8779_s8 = sshll.u32 %s9754_s18, 1 }
  0x38   : > { %v7532_v20 = vld [vmem:[%s9917_s29 + $0xb40] sm:$0xf]  ;;  %v7149_v21 = vor.u32 %v9052_v19, %v7148_v18  ;;  %v9148_v22 = vld [vmem:[%s9917_s29 + $0xb6c] sm:$0xf0]  ;;  %4038 = vmatpush.bf16.msra.mxu0 %v6381_v16  ;;  %s5951_s27 = scalar_lea.hbm %s11557_s4, %s8779_s8  ;;  %s309_s28 = scalar_lea.vmem [#allocation10], %s6088_s7 }
  0x39   : > { %v6332_v23 = vld [vmem:[%s9917_s29 + $0x1e0] sm:$0xf]  ;;  %v8848_v24 = vld [vmem:[%s9917_s29 + $0x20c] sm:$0xf0]  ;;  %v7533_v25 = vor.u32 %v9148_v22, %v7532_v20  ;;  %4051 = vmatpush.bf16.msra.mxu1 %v6765_v17  ;;  %s11583_s12 = smov (!%p11341_p7, %s314_s12), 383  ;;  %s5953_s25 = sshll.u32 %s309_s28, 4  ;;  %s5954_s25 = int_to_ptr.vmem [resolvable:$true] %s5953_s25 }
  0x3a   : > { %v6716_v26 = vld [vmem:[%s9917_s29 + $0x4e0] sm:$0xf]  ;;  %v8944_v27 = vld [vmem:[%s9917_s29 + $0x50c] sm:$0xf0]  ;;  %v6333_v29 = vor.u32 %v8848_v24, %v6332_v23  ;;  %4064 = vmatpush.bf16.msra.mxu2 %v7149_v21  ;;  %s6089_s22 = sshll.u32 %s11583_s12, 2  ;;  %s5955_s0 = sshll.u32 %s5951_s27, 4  ;;  %s5956_s0 = int_to_ptr.hbm [resolvable:$true] %s5955_s0 }
  0x3b   : > { %v7100_v28 = vld [vmem:[%s9917_s29 + $0x7e0] sm:$0xf]  ;;  %v9040_v30 = vld [vmem:[%s9917_s29 + $0x80c] sm:$0xf0]  ;;  %v6717_v33 = vor.u32 %v8944_v27, %v6716_v26  ;;  %4077 = vmatpush.bf16.msra.mxu3 %v7533_v25  ;;  %s11379_s6 = scalar_lea.vmem %s11556_s3, %s6089_s22  ;;  %s5941_s1 = scalar_lea.sflag [#allocation6], %s9914_s11 }
  0x3c   : > { %v7484_v31 = vld [vmem:[%s9917_s29 + $0xae0] sm:$0xf]  ;;  %v9136_v32 = vld [vmem:[%s9917_s29 + $0xb0c] sm:$0xf0]  ;;  %v7101_v34 = vor.u32 %v9040_v30, %v7100_v28  ;;  %4039 = vmatpush.bf16.msra.mxu0 %v6333_v29  ;;  %s9696_s12 = scalar_lea.hbm %s11557_s4, 4 }
  0x3d   : > { %v6284_v35 = vld [vmem:[%s9917_s29 + $0x180] sm:$0xf]  ;;  %v8836_v36 = vld [vmem:[%s9917_s29 + $0x1ac] sm:$0xf0]  ;;  %v7485_v38 = vor.u32 %v9136_v32, %v7484_v31  ;;  %4052 = vmatpush.bf16.msra.mxu1 %v6717_v33  ;;  %v8866_v33 = vld [vmem:[%s9917_s29 + $0x2a4] sm:$0xf] }
  0x3e   : > { %v6668_v37 = vld [vmem:[%s9917_s29 + $0x480] sm:$0xf]  ;;  %v8932_v39 = vld [vmem:[%s9917_s29 + $0x4ac] sm:$0xf0]  ;;  %v6285_v44 = vor.u32 %v8836_v36, %v6284_v35  ;;  %4065 = vmatpush.bf16.msra.mxu2 %v7101_v34  ;;  %v6430_v34 = vld [vmem:[%s9917_s29 + $0x2d0] sm:$0xf0] }
  0x3f   : > { %v7052_v40 = vld [vmem:[%s9917_s29 + $0x780] sm:$0xf]  ;;  %v9028_v41 = vld [vmem:[%s9917_s29 + $0x7ac] sm:$0xf0]  ;;  %v6669_v45 = vor.u32 %v8932_v39, %v6668_v37  ;;  %4078 = vmatpush.bf16.msra.mxu3 %v7485_v38  ;;  %v8962_v37 = vld [vmem:[%s9917_s29 + $0x5a4] sm:$0xf] }
  0x40   : > { %v7436_v42 = vld [vmem:[%s9917_s29 + $0xa80] sm:$0xf]  ;;  %v9124_v43 = vld [vmem:[%s9917_s29 + $0xaac] sm:$0xf0]  ;;  %v7053_v46 = vor.u32 %v9028_v41, %v7052_v40  ;;  %4040 = vmatpush.bf16.msra.mxu0 %v6285_v44  ;;  %v6814_v38 = vld [vmem:[%s9917_s29 + $0x5d0] sm:$0xf0] }
  0x41   : > { %v6236_v47 = vld [vmem:[%s9917_s29 + $0x120] sm:$0xf]  ;;  %v8824_v48 = vld [vmem:[%s9917_s29 + $0x14c] sm:$0xf0]  ;;  %v7437_v50 = vor.u32 %v9124_v43, %v7436_v42  ;;  %4053 = vmatpush.bf16.msra.mxu1 %v6669_v45  ;;  %v6433_v43 = vor.u32 %v8866_v33, %v6430_v34 }
  0x42   : > { %v6620_v49 = vld [vmem:[%s9917_s29 + $0x420] sm:$0xf]  ;;  %v8920_v51 = vld [vmem:[%s9917_s29 + $0x44c] sm:$0xf0]  ;;  %v6237_v56 = vor.u32 %v8824_v48, %v6236_v47  ;;  %4066 = vmatpush.bf16.msra.mxu2 %v7053_v46  ;;  %v6817_v47 = vor.u32 %v8962_v37, %v6814_v38  ;;  %v8854_v48 = vld [vmem:[%s9917_s29 + $0x244] sm:$0xf] }
  0x43   : > { %v7004_v52 = vld [vmem:[%s9917_s29 + $0x720] sm:$0xf]  ;;  %v9016_v53 = vld [vmem:[%s9917_s29 + $0x74c] sm:$0xf0]  ;;  %v6621_v57 = vor.u32 %v8920_v51, %v6620_v49  ;;  %4079 = vmatpush.bf16.msra.mxu3 %v7437_v50  ;;  %v6382_v49 = vld [vmem:[%s9917_s29 + $0x270] sm:$0xf0] }
  0x44   : > { %v7388_v54 = vld [vmem:[%s9917_s29 + $0xa20] sm:$0xf]  ;;  %v9112_v55 = vld [vmem:[%s9917_s29 + $0xa4c] sm:$0xf0]  ;;  %v7005_v58 = vor.u32 %v9016_v53, %v7004_v52  ;;  %4041 = vmatpush.bf16.msra.mxu0 %v6237_v56  ;;  %v8950_v50 = vld [vmem:[%s9917_s29 + $0x544] sm:$0xf] }
  0x45   : > { %v6188_v59 = vld [vmem:[%s9917_s29 + $0xc0] sm:$0xf]  ;;  %v8812_v60 = vld [vmem:[%s9917_s29 + $0xec] sm:$0xf0]  ;;  %v7389_v62 = vor.u32 %v9112_v55, %v7388_v54  ;;  %4054 = vmatpush.bf16.msra.mxu1 %v6621_v57  ;;  %v6766_v51 = vld [vmem:[%s9917_s29 + $0x570] sm:$0xf0] }
  0x46   : > { %v6572_v61 = vld [vmem:[%s9917_s29 + $0x3c0] sm:$0xf]  ;;  %v8908_v63 = vld [vmem:[%s9917_s29 + $0x3ec] sm:$0xf0]  ;;  %v6189_v4 = vor.u32 %v8812_v60, %v6188_v59  ;;  %4067 = vmatpush.bf16.msra.mxu2 %v7005_v58  ;;  %v8842_v57 = vld [vmem:[%s9917_s29 + $0x1e4] sm:$0xf]  ;;  %v6385_v60 = vor.u32 %v8854_v48, %v6382_v49 }
  0x47   : > { %v6956_v0 = vld [vmem:[%s9917_s29 + $0x6c0] sm:$0xf]  ;;  %v9004_v1 = vld [vmem:[%s9917_s29 + $0x6ec] sm:$0xf0]  ;;  %v6573_v5 = vor.u32 %v8908_v63, %v6572_v61  ;;  %4080 = vmatpush.bf16.msra.mxu3 %v7389_v62  ;;  %v6334_v58 = vld [vmem:[%s9917_s29 + $0x210] sm:$0xf0] }
  0x48   : > { %v7340_v2 = vld [vmem:[%s9917_s29 + $0x9c0] sm:$0xf]  ;;  %v9100_v3 = vld [vmem:[%s9917_s29 + $0x9ec] sm:$0xf0]  ;;  %v6957_v6 = vor.u32 %v9004_v1, %v6956_v0  ;;  %4042 = vmatpush.bf16.msra.mxu0 %v6189_v4  ;;  %v8938_v61 = vld [vmem:[%s9917_s29 + $0x4e4] sm:$0xf] }
  0x49   : > { %v6140_v7 = vld [vmem:[%s9917_s29 + $0x60] sm:$0xf]  ;;  %v8800_v8 = vld [vmem:[%s9917_s29 + $0x8c] sm:$0xf0]  ;;  %v7341_v10 = vor.u32 %v9100_v3, %v7340_v2  ;;  %4055 = vmatpush.bf16.msra.mxu1 %v6573_v5  ;;  %v6718_v62 = vld [vmem:[%s9917_s29 + $0x510] sm:$0xf0]  ;;  %v6769_v2 = vor.u32 %v8950_v50, %v6766_v51 }
  0x4a   : > { %v6524_v9 = vld [vmem:[%s9917_s29 + $0x360] sm:$0xf]  ;;  %v8896_v11 = vld [vmem:[%s9917_s29 + $0x38c] sm:$0xf0]  ;;  %v6141_v16 = vor.u32 %v8800_v8, %v6140_v7  ;;  %4068 = vmatpush.bf16.msra.mxu2 %v6957_v6  ;;  %v10024_v4 = vld [vmem:[%s9917_s29 + $0x184] sm:$0xf] }
  0x4b   : > { %v6908_v12 = vld [vmem:[%s9917_s29 + $0x660] sm:$0xf]  ;;  %v8992_v13 = vld [vmem:[%s9917_s29 + $0x68c] sm:$0xf0]  ;;  %v6525_v19 = vor.u32 %v8896_v11, %v6524_v9  ;;  %4081 = vmatpush.bf16.msra.mxu3 %v7341_v10  ;;  %v10027_v5 = vld [vmem:[%s9917_s29 + $0x1b0] sm:$0xf0] }
  0x4c   : > { %v7292_v14 = vld [vmem:[%s9917_s29 + $0x960] sm:$0xf]  ;;  %v9088_v15 = vld [vmem:[%s9917_s29 + $0x98c] sm:$0xf0]  ;;  %v6909_v20 = vor.u32 %v8992_v13, %v6908_v12  ;;  %4043 = vmatpush.bf16.msra.mxu0 %v6141_v16  ;;  %v10030_v6 = vld [vmem:[%s9917_s29 + $0x484] sm:$0xf] }
  0x4d   : > { %v6092_v17 = vld [vmem:[%s9917_s29] sm:$0xf]  ;;  %v8788_v18 = vld [vmem:[%s9917_s29 + $0x2c] sm:$0xf0]  ;;  %v7293_v24 = vor.u32 %v9088_v15, %v7292_v14  ;;  %4056 = vmatpush.bf16.msra.mxu1 %v6525_v19  ;;  %v10033_v7 = vld [vmem:[%s9917_s29 + $0x4b0] sm:$0xf0]  ;;  %v6337_v14 = vor.u32 %v8842_v57, %v6334_v58 }
  0x4e   : > { %v6476_v21 = vld [vmem:[%s9917_s29 + $0x300] sm:$0xf]  ;;  %v8884_v22 = vld [vmem:[%s9917_s29 + $0x32c] sm:$0xf0]  ;;  %v6093_v31 = vor.u32 %v8788_v18, %v6092_v17  ;;  %4069 = vmatpush.bf16.msra.mxu2 %v6909_v20  ;;  %v10048_v15 = vld [vmem:[%s9917_s29 + $0x124] sm:$0xf]  ;;  %v6721_v17 = vor.u32 %v8938_v61, %v6718_v62  ;;  %v6289_v20 = vor.u32 %v10024_v4, %v10027_v5 }
  0x4f   : > { %v6860_v23 = vld [vmem:[%s9917_s29 + $0x600] sm:$0xf]  ;;  %v8980_v25 = vld [vmem:[%s9917_s29 + $0x62c] sm:$0xf0]  ;;  %v6477_v35 = vor.u32 %v8884_v22, %v6476_v21  ;;  %4082 = vmatpush.bf16.msra.mxu3 %v7293_v24  ;;  %v10051_v16 = vld [vmem:[%s9917_s29 + $0x150] sm:$0xf0]  ;;  %v6673_v21 = vor.u32 %v10030_v6, %v10033_v7 }
  0x50   : > { %v7244_v26 = vld [vmem:[%s9917_s29 + $0x900] sm:$0xf]  ;;  %v9076_v27 = vld [vmem:[%s9917_s29 + $0x92c] sm:$0xf0]  ;;  %v6861_v36 = vor.u32 %v8980_v25, %v6860_v23  ;;  %4044 = vmatpush.bf16.msra.mxu0 %v6093_v31  ;;  %v326_v25 = vld [vmem:[#allocation4 + $0x8] sm:$0xff] }
  0x51   : > { %v7964_v28 = vld [vmem:[%s9917_s29 + $0xea0] sm:$0xf]  ;;  %v9256_v29 = vld [vmem:[%s9917_s29 + $0xecc] sm:$0xf0]  ;;  %v7245_v39 = vor.u32 %v9076_v27, %v7244_v26  ;;  %4057 = vmatpush.bf16.msra.mxu1 %v6477_v35  ;;  %v6241_v27 = vor.u32 %v10048_v15, %v10051_v16  ;;  %v332_v35 = vld [vmem:[#allocation4 + $0x38] sm:$0xff] }
  0x52   : > { %v8348_v30 = vld [vmem:[%s9917_s29 + $0x11a0] sm:$0xf]  ;;  %v9352_v32 = vld [vmem:[%s9917_s29 + $0x11cc] sm:$0xf0]  ;;  %v7965_v40 = vor.u32 %v9256_v29, %v7964_v28  ;;  %4070 = vmatpush.bf16.msra.mxu2 %v6861_v36  ;;  %v328_v28 = vld [vmem:[#allocation4 + $0x18] sm:$0xff] }
  0x53   : > { %v7916_v41 = vld [vmem:[%s9917_s29 + $0xe40] sm:$0xf]  ;;  %v8349_v42 = vor.u32 %v9352_v32, %v8348_v30  ;;  %v9244_v44 = vld [vmem:[%s9917_s29 + $0xe6c] sm:$0xf0]  ;;  %4083 = vmatpush.bf16.msra.mxu3 %v7245_v39  ;;  %v330_v30 = vld [vmem:[#allocation4 + $0x28] sm:$0xff]  ;;  %v343_v32 = vrot.slane %v326_v25, 4 }
  0x54   : > { %v8300_v45 = vld [vmem:[%s9917_s29 + $0x1140] sm:$0xf]  ;;  %v9340_v46 = vld [vmem:[%s9917_s29 + $0x116c] sm:$0xf0]  ;;  %4089 = vmatpush.bf16.msrb.mxu0 %v7965_v40  ;;  %v7917_v54 = vor.u32 %v9244_v44, %v7916_v41  ;;  %v355_v36 = vrot.slane %v328_v28, 4  ;;  %v367_v38 = vrot.slane %v330_v30, 4 }
  0x55   : > { %v7868_v52 = vld [vmem:[%s9917_s29 + $0xde0] sm:$0xf]  ;;  %v9232_v53 = vld [vmem:[%s9917_s29 + $0xe0c] sm:$0xf0]  ;;  %4102 = vmatpush.bf16.msrb.mxu1 %v8349_v42  ;;  %v8301_v59 = vor.u32 %v9340_v46, %v8300_v45  ;;  %v9767_v39 = vmov 8.0  }
  0x56   : > { %v8252_v55 = vld [vmem:[%s9917_s29 + $0x10e0] sm:$0xf]  ;;  %v9328_v56 = vld [vmem:[%s9917_s29 + $0x110c] sm:$0xf0]  ;;  %4115 = vmatpush.bf16.msrb.mxu2 %v6433_v43  ;;  %v7869_v9 = vor.u32 %v9232_v53, %v7868_v52  ;;  %9540 = vrcp.f32 %v9767_v39  ;;  %v8914_v40 = vld [vmem:[%s9917_s29 + $0x424] sm:$0xf]  ;;  %v344_v43 = vadd.f32 %v343_v32, %v326_v25  ;;  %v356_v52 = vadd.f32 %v355_v36, %v328_v28 }
  0x57   : > { %v10012_v63 = vld [vmem:[%s9917_s29 + $0xd80] sm:$0xf]  ;;  %v10015_v0 = vld [vmem:[%s9917_s29 + $0xdac] sm:$0xf0]  ;;  %4128 = vmatpush.bf16.msrb.mxu3 %v6817_v47  ;;  %v8253_v13 = vor.u32 %v9328_v56, %v8252_v55  ;;  %v6622_v41 = vld [vmem:[%s9917_s29 + $0x450] sm:$0xf0] }
  0x58   : > { %v10018_v1 = vld [vmem:[%s9917_s29 + $0x1080] sm:$0xf]  ;;  %v10021_v3 = vld [vmem:[%s9917_s29 + $0x10ac] sm:$0xf0]  ;;  %4090 = vmatpush.bf16.msrb.mxu0 %v7917_v54  ;;  %v7821_v18 = vor.u32 %v10015_v0, %v10012_v63  ;;  %v10082_v50 = vld [vmem:[%s9917_s29 + $0xc4] sm:$0xf]  ;;  %v368_v54 = vadd.f32 %v367_v38, %v330_v30  ;;  %v6625_v5 = vor.u32 %v8914_v40, %v6622_v41 }
  0x59   : > { %v10036_v8 = vld [vmem:[%s9917_s29 + $0xd20] sm:$0xf]  ;;  %v10039_v10 = vld [vmem:[%s9917_s29 + $0xd4c] sm:$0xf0]  ;;  %4103 = vmatpush.bf16.msrb.mxu1 %v8301_v59  ;;  %v8205_v19 = vor.u32 %v10021_v3, %v10018_v1  ;;  %v10085_v51 = vld [vmem:[%s9917_s29 + $0xf0] sm:$0xf0] }
  0x5a   : > { %v10042_v11 = vld [vmem:[%s9917_s29 + $0x1020] sm:$0xf]  ;;  %v10045_v12 = vld [vmem:[%s9917_s29 + $0x104c] sm:$0xf0]  ;;  %4116 = vmatpush.bf16.msrb.mxu2 %v6385_v60  ;;  %v7773_v22 = vor.u32 %v10039_v10, %v10036_v8  ;;  %v379_v55 = vrot.slane %v332_v35, 4  ;;  %v345_v61 = vrot.slane %v344_v43, 2 }
  0x5b   : > { %4129 = vmatpush.bf16.msrb.mxu3 %v6769_v2  ;;  %v8157_v23 = vor.u32 %v10045_v12, %v10042_v11  ;;  %v325_v24 = vld [vmem:[#allocation4] sm:$0xff]  ;;  %v327_v26 = vld [vmem:[#allocation4 + $0x10] sm:$0xff]  ;;  %v357_v1 = vrot.slane %v356_v52, 2  ;;  %v369_v3 = vrot.slane %v368_v54, 2 }
  0x5c   : > { %4091 = vmatpush.bf16.msrb.mxu0 %v7869_v9  ;;  %v329_v29 = vld [vmem:[#allocation4 + $0x20] sm:$0xff]  ;;  %v337_v31 = vrot.slane %v325_v24, 4  ;;  %v349_v33 = vrot.slane %v327_v26, 4  ;;  %v331_v34 = vld [vmem:[#allocation4 + $0x30] sm:$0xff]  ;;  %v380_v4 = vadd.f32 %v379_v55, %v332_v35 }
  0x5d   : > { %4104 = vmatpush.bf16.msrb.mxu1 %v8253_v13  ;;  %v361_v37 = vrot.slane %v329_v29, 4  ;;  %v373_v45 = vrot.slane %v331_v34, 4  ;;  %v10070_v46 = vld [vmem:[%s9917_s29 + $0xcc0] sm:$0xf]  ;;  %v10073_v47 = vld [vmem:[%s9917_s29 + $0xcec] sm:$0xf0]  ;;  %v358_v25 = vadd.f32 %v357_v1, %v356_v52 }
  0x5e   : > { %4117 = vmatpush.bf16.msrb.mxu2 %v6337_v14  ;;  %v338_v42 = vadd.f32 %v337_v31, %v325_v24  ;;  %v350_v44 = vadd.f32 %v349_v33, %v327_v26  ;;  %v10076_v48 = vld [vmem:[%s9917_s29 + $0xfc0] sm:$0xf]  ;;  %v10079_v49 = vld [vmem:[%s9917_s29 + $0xfec] sm:$0xf0]  ;;  %v10088_v56 = vld [vmem:[%s9917_s29 + $0x3c4] sm:$0xf]  ;;  %v346_v14 = vadd.f32 %v345_v61, %v344_v43 }
  0x5f   : > { %4130 = vmatpush.bf16.msrb.mxu3 %v6721_v17  ;;  %v362_v53 = vadd.f32 %v361_v37, %v329_v29  ;;  %v10091_v57 = vld [vmem:[%s9917_s29 + $0x3f0] sm:$0xf0]  ;;  %v10094_v58 = vld [vmem:[%s9917_s29 + $0xc60] sm:$0xf]  ;;  %v10097_v59 = vld [vmem:[%s9917_s29 + $0xc8c] sm:$0xf0]  ;;  %v374_v63 = vadd.f32 %v373_v45, %v331_v34  ;;  %v10105_v17 = vpop.eup %9540  ;;  %v8109_v28 = vor.u32 %v10079_v49, %v10076_v48  ;;  %v6193_v29 = vor.u32 %v10082_v50, %v10085_v51 }
  0x60   : > { %4092 = vmatpush.bf16.msrb.mxu0 %v7821_v18  ;;  %v339_v60 = vrot.slane %v338_v42, 2  ;;  %v351_v62 = vrot.slane %v350_v44, 2  ;;  %v10100_v0 = vld [vmem:[%s9917_s29 + $0xf60] sm:$0xf]  ;;  %v9280_v6 = vld [vmem:[%s9917_s29 + $0xf8c] sm:$0xf0]  ;;  %v6577_v8 = vor.u32 %v10088_v56, %v10091_v57  ;;  %v7677_v10 = vor.u32 %v10097_v59, %v10094_v58 }
  0x61   : > { %4105 = vmatpush.bf16.msrb.mxu1 %v8205_v19  ;;  %v363_v2 = vrot.slane %v362_v53, 2  ;;  %v8794_v7 = vld [vmem:[%s9917_s29 + $0x64] sm:$0xf]  ;;  %v6142_v9 = vld [vmem:[%s9917_s29 + $0x90] sm:$0xf0]  ;;  %v375_v26 = vrot.slane %v374_v63, 2  ;;  %v370_v34 = vadd.f32 %v369_v3, %v368_v54  ;;  %v8061_v35 = vor.u32 %v9280_v6, %v10100_v0 }
  0x62   : > { %4118 = vmatpush.bf16.msrb.mxu2 %v6289_v20  ;;  %v340_v13 = vadd.f32 %v339_v60, %v338_v42  ;;  %v8890_v18 = vld [vmem:[%s9917_s29 + $0x364] sm:$0xf]  ;;  %v6526_v24 = vld [vmem:[%s9917_s29 + $0x390] sm:$0xf0]  ;;  %v352_v19 = vadd.f32 %v351_v62, %v350_v44  ;;  %v381_v30 = vrot.slane %v380_v4, 2  ;;  %v334_v31 = vld [vmem:[#allocation4 + $0x48] sm:$0xff]  ;;  %v6145_v11 = vor.u32 %v8794_v7, %v6142_v9 }
  0x63   : > { %4131 = vmatpush.bf16.msrb.mxu3 %v6673_v21  ;;  %v364_v20 = vadd.f32 %v363_v2, %v362_v53  ;;  %v7725_v21 = vor.u32 %v10073_v47, %v10070_v46  ;;  %v335_v32 = vld [vmem:[#allocation4 + $0x50] sm:$0xff]  ;;  %v6529_v12 = vor.u32 %v8890_v18, %v6526_v24  ;;  %v347_v36 = vrot.slane %v346_v14, 1 }
  0x64   : > { %4093 = vmatpush.bf16.msrb.mxu0 %v7773_v22  ;;  %v333_v22 = vld [vmem:[#allocation4 + $0x40] sm:$0xff]  ;;  %v341_v33 = vrot.slane %v340_v13, 1  ;;  %v353_v15 = vrot.slane %v352_v19, 1  ;;  %v359_v16 = vrot.slane %v358_v25, 1  ;;  %v376_v37 = vadd.f32 %v375_v26, %v374_v63 }
  0x65   : > { %4106 = vmatpush.bf16.msrb.mxu1 %v8157_v23  ;;  %v336_v23 = vld [vmem:[#allocation4 + $0x58] sm:$0xff]  ;;  %v382_v38 = vadd.f32 %v381_v30, %v380_v4  ;;  %v385_v39 = vrot.slane %v333_v22, 4  ;;  %v391_v40 = vrot.slane %v334_v31, 4  ;;  %v397_v41 = vrot.slane %v335_v32, 4 }
  0x66   : > { %4119 = vmatpush.bf16.msrb.mxu2 %v6241_v27  ;;  %v365_v27 = vrot.slane %v364_v20, 1  ;;  %v342_v42 = vadd.f32 %v341_v33, %v340_v13  ;;  %v371_v43 = vrot.slane %v370_v34, 1  ;;  %v403_v44 = vrot.slane %v336_v23, 4 }
  0x67   : > { %4132 = vmatpush.bf16.msrb.mxu3 %v6625_v5  ;;  %v410_v45 = vmul.f32 8.0, %v10105_v17  ;;  %v348_v46 = vadd.f32 %v347_v36, %v346_v14  ;;  %v386_v47 = vadd.f32 %v385_v39, %v333_v22  ;;  %v392_v48 = vadd.f32 %v391_v40, %v334_v31 }
  0x68   : > { %4094 = vmatpush.bf16.msrb.mxu0 %v7725_v21  ;;  %v398_v49 = vadd.f32 %v397_v41, %v335_v32  ;;  %v354_v50 = vadd.f32 %v353_v15, %v352_v19  ;;  %v377_v51 = vrot.slane %v376_v37, 1  ;;  %v404_v52 = vadd.f32 %v403_v44, %v336_v23 }
  0x69   : > { %4107 = vmatpush.bf16.msrb.mxu1 %v8109_v28  ;;  %v411_v53 = vsub.f32 1.0, %v410_v45  ;;  %v383_v54 = vrot.slane %v382_v38, 1  ;;  %v387_v55 = vrot.slane %v386_v47, 2  ;;  %v393_v56 = vrot.slane %v392_v48, 2 }
  0x6a   : > { %4120 = vmatpush.bf16.msrb.mxu2 %v6193_v29  ;;  %v399_v57 = vrot.slane %v398_v49, 2  ;;  %v360_v58 = vadd.f32 %v359_v16, %v358_v25  ;;  %v366_v59 = vadd.f32 %v365_v27, %v364_v20  ;;  %v405_v60 = vrot.slane %v404_v52, 2 }
  0x6b   : > { %4133 = vmatpush.bf16.msrb.mxu3 %v6577_v8  ;;  %v412_v61 = vmul.f32 %v10105_v17, %v411_v53  ;;  %v388_v62 = vadd.f32 %v387_v55, %v386_v47  ;;  %v394_v63 = vadd.f32 %v393_v56, %v392_v48  ;;  %vm414_vm0 = vweird.f32 %v10105_v17 }
  0x6c   : > { %4095 = vmatpush.bf16.msrb.mxu0 %v7677_v10  ;;  %v400_v0 = vadd.f32 %v399_v57, %v398_v49  ;;  %v372_v1 = vadd.f32 %v371_v43, %v370_v34  ;;  %v378_v2 = vadd.f32 %v377_v51, %v376_v37  ;;  %v406_v3 = vadd.f32 %v405_v60, %v404_v52  ;;  %v9172_v60 = vld [vmem:[%s9917_s29 + $0xc2c] sm:$0xf0] }
  0x6d   : > { %4108 = vmatpush.bf16.msrb.mxu1 %v8061_v35  ;;  %v413_v4 = vadd.f32 %v10105_v17, %v412_v61  ;;  %v384_v5 = vadd.f32 %v383_v54, %v382_v38  ;;  %v389_v6 = vrot.slane %v388_v62, 1  ;;  %v395_v7 = vrot.slane %v394_v63, 1  ;;  %v8012_v61 = vld [vmem:[%s9917_s29 + $0xf00] sm:$0xf] }
  0x6e   : > { %4121 = vmatpush.bf16.msrb.mxu2 %v6145_v11  ;;  %v401_v9 = vrot.slane %v400_v0, 1  ;;  %v407_v13 = vrot.slane %v406_v3, 1 }
  0x6f   : > { %4134 = vmatpush.bf16.msrb.mxu3 %v6529_v12  ;;  %v415_v14 = vsel %vm414_vm0, %v10105_v17, %v413_v4  ;;  %v390_v18 = vadd.f32 %v389_v6, %v388_v62  ;;  %v396_v24 = vadd.f32 %v395_v7, %v394_v63 }
  0x70   : > { %v402_v19 = vadd.f32 %v401_v9, %v400_v0  ;;  %v416_v25 = vmul.f32 %v415_v14, %v342_v42  ;;  %v408_v20 = vadd.f32 %v407_v13, %v406_v3  ;;  %v417_v26 = vmul.f32 %v415_v14, %v348_v46  ;;  %v9268_v13 = vld [vmem:[%s9917_s29 + $0xf2c] sm:$0xf0] }
  0x71   : > { %v418_v21 = vmul.f32 %v415_v14, %v354_v50  ;;  %v419_v28 = vmul.f32 %v415_v14, %v360_v58  ;;  %v420_v29 = vmul.f32 %v415_v14, %v366_v59  ;;  %v421_v30 = vmul.f32 %v415_v14, %v372_v1  ;;  %v7628_v59 = vld [vmem:[%s9917_s29 + $0xc00] sm:$0xf] }
  0x72   : > { %v422_v8 = vmul.f32 %v415_v14, %v378_v2  ;;  %v423_v10 = vmul.f32 %v415_v14, %v384_v5  ;;  %v424_v22 = vmul.f32 %v415_v14, %v390_v18  ;;  %v425_v31 = vmul.f32 %v415_v14, %v396_v24  ;;  %v6094_v18 = vld [vmem:[%s9917_s29 + $0x30] sm:$0xf0] }
  0x73   : > { %v426_v32 = vmul.f32 %v415_v14, %v402_v19  ;;  %v427_v33 = vmul.f32 %v415_v14, %v408_v20  ;;  %v428_v34 = vpack.c.bf16 %v417_v26, %v416_v25  ;;  %v429_v17 = vpack.c.bf16 %v419_v28, %v418_v21  ;;  %v8782_v14 = vld [vmem:[%s9917_s29 + $0x4] sm:$0xf]  ;;  %v6478_v21 = vld [vmem:[%s9917_s29 + $0x330] sm:$0xf0] }
  0x74   : > { %v430_v35 = vpack.c.bf16 %v421_v30, %v420_v29  ;;  %v431_v11 = vpack.c.bf16 %v423_v10, %v422_v8  ;;  %v432_v12 = vpack.c.bf16 %v425_v31, %v424_v22  ;;  %v7629_v4 = vor.u32 %v9172_v60, %v7628_v59  ;;  %v8878_v26 = vld [vmem:[%s9917_s29 + $0x304] sm:$0xf]  ;;  %v7918_v60 = vld [vmem:[%s9917_s29 + $0xe70] sm:$0xf0] }
  0x75   : > { %v433_v23 = vpack.c.bf16 %v427_v33, %v426_v32  ;;  %v440_v36 = vrot.slane %v428_v34, 3  ;;  %v441_v15 = vrot.slane %v429_v17, 6  ;;  %v442_v16 = vrot.slane %v429_v17, 1  ;;  %v9238_v59 = vld [vmem:[%s9917_s29 + $0xe44] sm:$0xf] }
  0x76   : > { %v443_v27 = vrot.slane %v430_v35, 4  ;;  %v444_v37 = vrot.slane %v430_v35, 7  ;;  %v445_v38 = vrot.slane %v431_v11, 3  ;;  %v446_v39 = vrot.slane %v432_v12, 6  ;;  %4096 = vmatpush.bf16.msrb.mxu0 %v7629_v4  ;;  %v8302_v4 = vld [vmem:[%s9917_s29 + $0x1170] sm:$0xf0] }
  0x77   : > { %v447_v40 = vrot.slane %v432_v12, 1  ;;  %v448_v41 = vrot.slane %v433_v23, 4  ;;  %v449_v42 = vrot.slane %v433_v23, 7  ;;  %v453_v43 = vsel %vm450_vm1, %v428_v34, %v440_v36 }
  0x78   : > { %v460_v44 = vsel %vm457_vm3, %v442_v16, %v443_v27  ;;  %v456_v45 = vsel %vm454_vm2, %v453_v43, %v441_v15  ;;  %v468_v47 = vsel %vm450_vm1, %v431_v11, %v445_v38  ;;  %v8013_v25 = vor.u32 %v9268_v13, %v8012_v61 }
  0x79   : > { %v463_v46 = vsel %vm461_vm4, %v460_v44, %v444_v37  ;;  %v470_v49 = vsel %vm454_vm2, %v468_v47, %v446_v39  ;;  %v473_v50 = vsel %vm457_vm3, %v447_v40, %v448_v41  ;;  %v6097_v20 = vor.u32 %v8782_v14, %v6094_v18  ;;  %v9154_v47 = vld [vmem:[%s9917_s29 + $0xba4] sm:$0xf] }
  0x7a   : > { %v465_v48 = vsel %vm464_vm5, %v456_v45, %v463_v46  ;;  %v475_v51 = vsel %vm461_vm4, %v473_v50, %v449_v42  ;;  %4109 = vmatpush.bf16.msrb.mxu1 %v8013_v25  ;;  %v6481_v31 = vor.u32 %v8878_v26, %v6478_v21  ;;  %v9058_v45 = vld [vmem:[%s9917_s29 + $0x8a4] sm:$0xf]  ;;  %v7198_v46 = vld [vmem:[%s9917_s29 + $0x8d0] sm:$0xf0]  ;;  %v7921_v13 = vor.u32 %v9238_v59, %v7918_v60 }
  0x7b   : > { %477 = vst [vmem:[#allocation1] ss:$4 sm:$0xff] %v465_v48  ;;  %v476_v52 = vsel %vm464_vm5, %v470_v49, %v475_v51  ;;  %4122 = vmatpush.bf16.msrb.mxu2 %v6097_v20  ;;  %v7582_v48 = vld [vmem:[%s9917_s29 + $0xbd0] sm:$0xf0]  ;;  %v9250_v49 = vld [vmem:[%s9917_s29 + $0xea4] sm:$0xf] }
  0x7c   : > { %485 = vst [vmem:[#allocation1 + $0x20] ss:$4 sm:$0xff] %v476_v52  ;;  %4135 = vmatpush.bf16.msrb.mxu3 %v6481_v31  ;;  %v7966_v50 = vld [vmem:[%s9917_s29 + $0xed0] sm:$0xf0]  ;;  %v9346_v51 = vld [vmem:[%s9917_s29 + $0x11a4] sm:$0xf] }
  0x7d   : > { %v8350_v52 = vld [vmem:[%s9917_s29 + $0x11d0] sm:$0xf0]  ;;  %v9130_v18 = vld [vmem:[%s9917_s29 + $0xae4] sm:$0xf] }
  0x7e   : > { %v7870_v25 = vld [vmem:[%s9917_s29 + $0xe10] sm:$0xf0]  ;;  %v9322_v20 = vld [vmem:[%s9917_s29 + $0x10e4] sm:$0xf] }
  0x7f   : > { %v8254_v26 = vld [vmem:[%s9917_s29 + $0x1110] sm:$0xf0] }
  0x80   : > { %v7438_v31 = vld [vmem:[%s9917_s29 + $0xab0] sm:$0xf0] }
  0x82   : > { %v478_v53 = vld [vmem:[#allocation1] sm:$0xff]  ;;  %v480_v54 = vld [vmem:[#allocation1 + $0x8] sm:$0xff]  ;;  %v482_v55 = vld [vmem:[#allocation1 + $0x10] sm:$0xff] }
  0x83   : > { %v492_v56 = vunpack.c.l.b16 %v478_v53  ;;  %v493_v57 = vunpack.c.h.b16 %v478_v53  ;;  %v494_v58 = vunpack.c.l.b16 %v480_v54  ;;  %v486_v62 = vld [vmem:[#allocation1 + $0x20] sm:$0xff]  ;;  %v488_v63 = vld [vmem:[#allocation1 + $0x28] sm:$0xff]  ;;  %v490_v0 = vld [vmem:[#allocation1 + $0x30] sm:$0xff]  ;;  %v495_v1 = vunpack.c.h.b16 %v480_v54 }
  0x84   : > { %v496_v2 = vunpack.c.l.b16 %v482_v55  ;;  %v497_v3 = vunpack.c.h.b16 %v482_v55  ;;  %v498_v5 = vunpack.c.l.b16 %v486_v62  ;;  %v499_v6 = vunpack.c.h.b16 %v486_v62  ;;  %v9046_v53 = vld [vmem:[%s9917_s29 + $0x844] sm:$0xf]  ;;  %v7150_v54 = vld [vmem:[%s9917_s29 + $0x870] sm:$0xf0] }
  0x85   : > { %v500_v7 = vunpack.c.l.b16 %v488_v63  ;;  %v501_v9 = vunpack.c.h.b16 %v488_v63  ;;  %v502_v24 = vunpack.c.l.b16 %v490_v0  ;;  %v503_v19 = vunpack.c.h.b16 %v490_v0  ;;  %v9142_v55 = vld [vmem:[%s9917_s29 + $0xb44] sm:$0xf] }
  0x86   : > { %v504_v28 = vrot.slane %v498_v5, 7  ;;  %v507_v29 = vrot.slane %v499_v6, 7  ;;  %v7969_v0 = vor.u32 %v9250_v49, %v7966_v50  ;;  %v7153_v5 = vor.u32 %v9046_v53, %v7150_v54  ;;  %v9094_v49 = vld [vmem:[%s9917_s29 + $0x9c4] sm:$0xf]  ;;  %v7342_v50 = vld [vmem:[%s9917_s29 + $0x9f0] sm:$0xf0] }
  0x87   : > { %v509_v30 = vrot.slane %v500_v7, 7  ;;  %v511_v8 = vrot.slane %v501_v9, 7  ;;  %v513_v10 = vrot.slane %v502_v24, 7  ;;  %v515_v22 = vrot.slane %v503_v19, 7  ;;  %v9034_v7 = vld [vmem:[%s9917_s29 + $0x7e4] sm:$0xf] }
  0x88   : > { %v506_v32 = vsel %vm505_vm6, %v504_v28, %v492_v56  ;;  %v508_v33 = vsel %vm505_vm6, %v507_v29, %v493_v57  ;;  %v7201_v56 = vor.u32 %v9058_v45, %v7198_v46  ;;  %v7585_v57 = vor.u32 %v9154_v47, %v7582_v48  ;;  %v7102_v9 = vld [vmem:[%s9917_s29 + $0x810] sm:$0xf0]  ;;  %v9226_v19 = vld [vmem:[%s9917_s29 + $0xde4] sm:$0xf] }
  0x89   : > { %v510_v34 = vsel %vm505_vm6, %v509_v30, %v494_v58  ;;  %v512_v17 = vsel %vm505_vm6, %v511_v8, %v495_v1  ;;  %v514_v35 = vsel %vm505_vm6, %v513_v10, %v496_v2  ;;  %v516_v11 = vsel %vm505_vm6, %v515_v22, %v497_v3  ;;  %v7534_v58 = vld [vmem:[%s9917_s29 + $0xb70] sm:$0xf0]  ;;  %v9334_v3 = vld [vmem:[%s9917_s29 + $0x1144] sm:$0xf] }
  0x8a   : > { %v517_v12 = vpack.c.b16 %v508_v33, %v506_v32  ;;  %v518_v23 = vpack.c.b16 %v512_v17, %v510_v34  ;;  %v519_v36 = vpack.c.b16 %v516_v11, %v514_v35  ;;  %v8353_v1 = vor.u32 %v9346_v51, %v8350_v52  ;;  %v7486_v24 = vld [vmem:[%s9917_s29 + $0xb10] sm:$0xf0]  ;;  %v9022_v29 = vld [vmem:[%s9917_s29 + $0x784] sm:$0xf] }
  0x8b   : > { %v7537_v6 = vor.u32 %v9142_v55, %v7534_v58  ;;  %v8305_v14 = vor.u32 %v9334_v3, %v8302_v4  ;;  %v7105_v21 = vor.u32 %v9034_v7, %v7102_v9  ;;  %v7489_v28 = vor.u32 %v9130_v18, %v7486_v24  ;;  %v7054_v30 = vld [vmem:[%s9917_s29 + $0x7b0] sm:$0xf0]  ;;  %v9118_v22 = vld [vmem:[%s9917_s29 + $0xa84] sm:$0xf] }
  0x8c   : > { %v520_v15 = vrot.slane %v517_v12, 3  ;;  %v521_v16 = vrot.slane %v518_v23, 6  ;;  %v522_v27 = vrot.slane %v518_v23, 1  ;;  %v523_v37 = vrot.slane %v519_v36, 4  ;;  %v9214_v32 = vld [vmem:[%s9917_s29 + $0xd84] sm:$0xf] }
  0x8d   : > { %v524_v38 = vrot.slane %v519_v36, 7  ;;  %v7873_v8 = vor.u32 %v9226_v19, %v7870_v25  ;;  %v8257_v10 = vor.u32 %v9322_v20, %v8254_v26  ;;  %v7822_v33 = vld [vmem:[%s9917_s29 + $0xdb0] sm:$0xf0]  ;;  %v9310_v34 = vld [vmem:[%s9917_s29 + $0x1084] sm:$0xf]  ;;  %v7057_v35 = vor.u32 %v9022_v29, %v7054_v30 }
  0x8e   : > { %v527_v39 = vsel %vm450_vm1, %v517_v12, %v520_v15  ;;  %v532_v41 = vsel %vm457_vm3, %v522_v27, %v523_v37  ;;  %v8206_v17 = vld [vmem:[%s9917_s29 + $0x10b0] sm:$0xf0]  ;;  %v7441_v11 = vor.u32 %v9118_v22, %v7438_v31  ;;  %v9010_v12 = vld [vmem:[%s9917_s29 + $0x724] sm:$0xf]  ;;  %v7825_v36 = vor.u32 %v9214_v32, %v7822_v33  ;;  %v6436_v29 = vld [vmem:[%s9917_s29 + $0x2a8] sm:$0xf] }
  0x8f   : > { %v529_v40 = vsel %vm454_vm2, %v527_v39, %v521_v16  ;;  %v534_v42 = vsel %vm461_vm4, %v532_v41, %v524_v38  ;;  %v7006_v23 = vld [vmem:[%s9917_s29 + $0x750] sm:$0xf0]  ;;  %v8209_v15 = vor.u32 %v9310_v34, %v8206_v17  ;;  %v9106_v16 = vld [vmem:[%s9917_s29 + $0xa24] sm:$0xf]  ;;  %v8873_v30 = vld [vmem:[%s9917_s29 + $0x2d4] sm:$0xf0] }
  0x90   : > { %v535_v43 = vsel %vm464_vm5, %v529_v40, %v534_v42  ;;  %v7390_v27 = vld [vmem:[%s9917_s29 + $0xa50] sm:$0xf0]  ;;  %v9202_v37 = vld [vmem:[%s9917_s29 + $0xd24] sm:$0xf]  ;;  %v7204_v22 = vld [vmem:[%s9917_s29 + $0x8a8] sm:$0xf] }
  0x91   : > { %537 = vst [vmem:[#allocation2] sm:$0x3f] %v535_v43  ;;  %v7774_v38 = vld [vmem:[%s9917_s29 + $0xd50] sm:$0xf0]  ;;  %v9298_v39 = vld [vmem:[%s9917_s29 + $0x1024] sm:$0xf]  ;;  %v7009_v43 = vor.u32 %v9010_v12, %v7006_v23  ;;  %v6437_v12 = vor.u32 %v8873_v30, %v6436_v29 }
  0x92   : > { %v8158_v40 = vld [vmem:[%s9917_s29 + $0x1050] sm:$0xf0]  ;;  %v8998_v45 = vld [vmem:[%s9917_s29 + $0x6c4] sm:$0xf]  ;;  %v7777_v47 = vor.u32 %v9202_v37, %v7774_v38  ;;  %v9065_v33 = vld [vmem:[%s9917_s29 + $0x8d4] sm:$0xf0] }
  0x93   : > { %v6958_v46 = vld [vmem:[%s9917_s29 + $0x6f0] sm:$0xf0]  ;;  %v8161_v48 = vor.u32 %v9298_v39, %v8158_v40  ;;  %v9190_v51 = vld [vmem:[%s9917_s29 + $0xcc4] sm:$0xf]  ;;  %v7588_v34 = vld [vmem:[%s9917_s29 + $0xba8] sm:$0xf] }
  0x94   : > { %v7726_v52 = vld [vmem:[%s9917_s29 + $0xcf0] sm:$0xf0]  ;;  %v9286_v53 = vld [vmem:[%s9917_s29 + $0xfc4] sm:$0xf]  ;;  %v6961_v55 = vor.u32 %v8998_v45, %v6958_v46  ;;  %v9161_v17 = vld [vmem:[%s9917_s29 + $0xbd4] sm:$0xf0] }
  0x95   : > { %v8110_v54 = vld [vmem:[%s9917_s29 + $0xff0] sm:$0xf0]  ;;  %v7729_v59 = vor.u32 %v9190_v51, %v7726_v52  ;;  %v9178_v3 = vld [vmem:[%s9917_s29 + $0xc64] sm:$0xf]  ;;  %v6772_v37 = vld [vmem:[%s9917_s29 + $0x548] sm:$0xf] }
  0x96   : > { %v6910_v58 = vld [vmem:[%s9917_s29 + $0x690] sm:$0xf0]  ;;  %v8113_v60 = vor.u32 %v9286_v53, %v8110_v54  ;;  %v8974_v7 = vld [vmem:[%s9917_s29 + $0x604] sm:$0xf]  ;;  %v8957_v38 = vld [vmem:[%s9917_s29 + $0x574] sm:$0xf0] }
  0x97   : > { %v7678_v4 = vld [vmem:[%s9917_s29 + $0xc90] sm:$0xf0]  ;;  %v9070_v18 = vld [vmem:[%s9917_s29 + $0x904] sm:$0xf]  ;;  %v7156_v39 = vld [vmem:[%s9917_s29 + $0x848] sm:$0xf]  ;;  %v6773_v46 = vor.u32 %v8957_v38, %v6772_v37 }
  0x98   : > { %v538_v44 = vld [vmem:[#allocation2] sm:$0x3f]  ;;  %v7246_v24 = vld [vmem:[%s9917_s29 + $0x930] sm:$0xf0]  ;;  %v7681_v19 = vor.u32 %v9178_v3, %v7678_v4  ;;  %v9166_v20 = vld [vmem:[%s9917_s29 + $0xc04] sm:$0xf] }
  0x99   : > { %1144 = vst [vmem:[#allocation1] ss:$9 sm:$0xff] %v538_v44  ;;  %v7393_v44 = vor.u32 %v9106_v16, %v7390_v27  ;;  %v7630_v26 = vld [vmem:[%s9917_s29 + $0xc30] sm:$0xf0]  ;;  %v7249_v32 = vor.u32 %v9070_v18, %v7246_v24  ;;  %v7205_v16 = vor.u32 %v9065_v33, %v7204_v22  ;;  %v7589_v27 = vor.u32 %v9161_v17, %v7588_v34  ;;  %v9053_v40 = vld [vmem:[%s9917_s29 + $0x874] sm:$0xf0] }
  0x9a   : > { %v6724_v51 = vld [vmem:[%s9917_s29 + $0x4e8] sm:$0xf]  ;;  %v8945_v52 = vld [vmem:[%s9917_s29 + $0x514] sm:$0xf0] }
  0x9b   : > { %v7108_v53 = vld [vmem:[%s9917_s29 + $0x7e8] sm:$0xf]  ;;  %v9041_v54 = vld [vmem:[%s9917_s29 + $0x814] sm:$0xf0] }
  0x9c   : > { %v6676_v3 = vld [vmem:[%s9917_s29 + $0x488] sm:$0xf]  ;;  %v8933_v4 = vld [vmem:[%s9917_s29 + $0x4b4] sm:$0xf0] }
  0x9d   : > { %v6244_v18 = vld [vmem:[%s9917_s29 + $0x128] sm:$0xf]  ;;  %v8825_v24 = vld [vmem:[%s9917_s29 + $0x154] sm:$0xf0] }
  0x9e   : > { %v7396_v29 = vld [vmem:[%s9917_s29 + $0xa28] sm:$0xf]  ;;  %v9113_v30 = vld [vmem:[%s9917_s29 + $0xa54] sm:$0xf0] }
  0x9f   : > { %v6196_v22 = vld [vmem:[%s9917_s29 + $0xc8] sm:$0xf]  ;;  %v7397_v33 = vor.u32 %v9113_v30, %v7396_v29  ;;  %v8909_v17 = vld [vmem:[%s9917_s29 + $0x3f4] sm:$0xf0]  ;;  %v8855_v29 = vld [vmem:[%s9917_s29 + $0x24c] sm:$0xf] }
  0xa0   : > { %v10177_v61 = vld [vmem:[#allocation1] sm:$0xff]  ;;  %v10179_v62 = vld [vmem:[#allocation1 + $0x9] sm:$0xff]  ;;  %v10181_v63 = vld [vmem:[#allocation1 + $0x12] sm:$0xff] }
  0xa1   : > { %4045 = vmatmul.bf16.vlgmr.msra.gmra.mxu0 %v10177_v61  ;;  %4058 = vmatmul.bf16.vlgmr.msra.gmra.mxu1 %v10179_v62  ;;  %v10185_v2 = vld [vmem:[#allocation1 + $0x1b] sm:$0xff]  ;;  %v10215_v41 = vld [vmem:[#allocation1 + $0x24] sm:$0xff]  ;;  %v10217_v42 = vld [vmem:[#allocation1 + $0x2d] sm:$0xff] }
  0xa2   : > { %4071 = vmatmul.bf16.vlgmr.msra.gmra.mxu2 %v10181_v63  ;;  %4084 = vmatmul.bf16.vlgmr.msra.gmra.mxu3 %v10185_v2  ;;  %v6580_v34 = vld [vmem:[%s9917_s29 + $0x3c8] sm:$0xf]  ;;  %v6390_v30 = vld [vmem:[%s9917_s29 + $0x278] sm:$0xf0] }
  0xa3   : > { %4141 = vmatpush.bf16.msra.mxu0 %v7201_v56  ;;  %4154 = vmatpush.bf16.msra.mxu1 %v7585_v57  ;;  %v7345_v56 = vor.u32 %v9094_v49, %v7342_v50  ;;  %v8986_v57 = vld [vmem:[%s9917_s29 + $0x664] sm:$0xf]  ;;  %v7157_v49 = vor.u32 %v9053_v40, %v7156_v39  ;;  %v6532_v39 = vld [vmem:[%s9917_s29 + $0x368] sm:$0xf]  ;;  %v8897_v40 = vld [vmem:[%s9917_s29 + $0x394] sm:$0xf0] }
  0xa4   : > { %4167 = vmatpush.bf16.msra.mxu2 %v7969_v0  ;;  %4180 = vmatpush.bf16.msra.mxu3 %v8353_v1  ;;  %v9082_v0 = vld [vmem:[%s9917_s29 + $0x964] sm:$0xf]  ;;  %v7294_v1 = vld [vmem:[%s9917_s29 + $0x990] sm:$0xf0]  ;;  %v6913_v9 = vor.u32 %v8986_v57, %v6910_v58  ;;  %v6725_v58 = vor.u32 %v8945_v52, %v6724_v51  ;;  %v6484_v51 = vld [vmem:[%s9917_s29 + $0x308] sm:$0xf] }
  0xa5   : > { %v8885_v52 = vld [vmem:[%s9917_s29 + $0x334] sm:$0xf0] }
  0xa7   : > { %4142 = vmatpush.bf16.msra.mxu0 %v7153_v5  ;;  %4155 = vmatpush.bf16.msra.mxu1 %v7537_v6  ;;  %v9274_v5 = vld [vmem:[%s9917_s29 + $0xf64] sm:$0xf]  ;;  %v8062_v6 = vld [vmem:[%s9917_s29 + $0xf90] sm:$0xf0] }
  0xa8   : > { %4168 = vmatpush.bf16.msra.mxu2 %v7921_v13  ;;  %4181 = vmatpush.bf16.msra.mxu3 %v8305_v14  ;;  %v7297_v13 = vor.u32 %v9082_v0, %v7294_v1  ;;  %v6862_v14 = vld [vmem:[%s9917_s29 + $0x630] sm:$0xf0]  ;;  %v8065_v25 = vor.u32 %v9274_v5, %v8062_v6  ;;  %v7109_v0 = vor.u32 %v9041_v54, %v7108_v53  ;;  %v7060_v5 = vld [vmem:[%s9917_s29 + $0x788] sm:$0xf]  ;;  %v9029_v6 = vld [vmem:[%s9917_s29 + $0x7b4] sm:$0xf0] }
  0xa9   : > { %v6865_v31 = vor.u32 %v8974_v7, %v6862_v14  ;;  %v7444_v7 = vld [vmem:[%s9917_s29 + $0xa88] sm:$0xf]  ;;  %v6677_v14 = vor.u32 %v8933_v4, %v6676_v3  ;;  %v8867_v3 = vld [vmem:[%s9917_s29 + $0x2ac] sm:$0xf] }
  0xab   : > { %4143 = vmatpush.bf16.msra.mxu0 %v7105_v21  ;;  %4156 = vmatpush.bf16.msra.mxu1 %v7489_v28  ;;  %v9262_v21 = vld [vmem:[%s9917_s29 + $0xf04] sm:$0xf]  ;;  %v8014_v28 = vld [vmem:[%s9917_s29 + $0xf30] sm:$0xf0] }
  0xac   : > { %4169 = vmatpush.bf16.msra.mxu2 %v7873_v8  ;;  %4182 = vmatpush.bf16.msra.mxu3 %v8257_v10  ;;  %v6820_v8 = vld [vmem:[%s9917_s29 + $0x5a8] sm:$0xf]  ;;  %v8969_v10 = vld [vmem:[%s9917_s29 + $0x5d4] sm:$0xf0] }
  0xad   : > { %v6821_v23 = vor.u32 %v8969_v10, %v6820_v8  ;;  %v6245_v8 = vor.u32 %v8825_v24, %v6244_v18 }
  0xaf   : > { %4144 = vmatpush.bf16.msra.mxu0 %v7057_v35  ;;  %4157 = vmatpush.bf16.msra.mxu1 %v7441_v11  ;;  %v7633_v35 = vor.u32 %v9166_v20, %v7630_v26  ;;  %v8017_v11 = vor.u32 %v9262_v21, %v8014_v28  ;;  %v6628_v20 = vld [vmem:[%s9917_s29 + $0x428] sm:$0xf]  ;;  %v8921_v26 = vld [vmem:[%s9917_s29 + $0x454] sm:$0xf0] }
  0xb0   : > { %4170 = vmatpush.bf16.msra.mxu2 %v7825_v36  ;;  %4183 = vmatpush.bf16.msra.mxu3 %v8209_v15  ;;  %v6388_v36 = vld [vmem:[%s9917_s29 + $0x248] sm:$0xf]  ;;  %v8861_v15 = vld [vmem:[%s9917_s29 + $0x274] sm:$0xf0]  ;;  %v6629_v10 = vor.u32 %v8921_v26, %v6628_v20 }
  0xb1   : > { %4097 = vmatmul.bf16.vlgmr.msrb.gmra.mxu0 %v10215_v41  ;;  %4110 = vmatmul.bf16.vlgmr.msrb.gmra.mxu1 %v10217_v42  ;;  %v6389_v45 = vor.u32 %v8861_v15, %v6388_v36  ;;  %v7012_v21 = vld [vmem:[%s9917_s29 + $0x728] sm:$0xf]  ;;  %v9017_v28 = vld [vmem:[%s9917_s29 + $0x754] sm:$0xf0]  ;;  %v6581_v15 = vor.u32 %v8909_v17, %v6580_v34  ;;  %v6393_v34 = vor.u32 %v8855_v29, %v6390_v30  ;;  %v8795_v29 = vld [vmem:[%s9917_s29 + $0x6c] sm:$0xf] }
  0xb2   : > { %4123 = vmatmul.bf16.vlgmr.msrb.gmra.mxu2 %v10177_v61  ;;  %4136 = vmatmul.bf16.vlgmr.msrb.gmra.mxu3 %v10179_v62  ;;  %v6150_v30 = vld [vmem:[%s9917_s29 + $0x98] sm:$0xf0] }
  0xb3   : > { %4145 = vmatpush.bf16.msra.mxu0 %v7009_v43  ;;  %4158 = vmatpush.bf16.msra.mxu1 %v7393_v44  ;;  %v7540_v43 = vld [vmem:[%s9917_s29 + $0xb48] sm:$0xf]  ;;  %v9149_v44 = vld [vmem:[%s9917_s29 + $0xb74] sm:$0xf0] }
  0xb4   : > { %4171 = vmatpush.bf16.msra.mxu2 %v7777_v47  ;;  %4184 = vmatpush.bf16.msra.mxu3 %v8161_v48  ;;  %v6340_v47 = vld [vmem:[%s9917_s29 + $0x1e8] sm:$0xf]  ;;  %v8849_v48 = vld [vmem:[%s9917_s29 + $0x214] sm:$0xf0]  ;;  %v7541_v50 = vor.u32 %v9149_v44, %v7540_v43 }
  0xb5   : > { %v6341_v57 = vor.u32 %v8849_v48, %v6340_v47  ;;  %v6916_v43 = vld [vmem:[%s9917_s29 + $0x668] sm:$0xf]  ;;  %v8993_v44 = vld [vmem:[%s9917_s29 + $0x694] sm:$0xf0] }
  0xb6   : > { %v6100_v47 = vld [vmem:[%s9917_s29 + $0x8] sm:$0xf]  ;;  %v6917_v53 = vor.u32 %v8993_v44, %v6916_v43  ;;  %v9317_v43 = vld [vmem:[%s9917_s29 + $0x10b4] sm:$0xf0]  ;;  %v6294_v44 = vld [vmem:[%s9917_s29 + $0x1b8] sm:$0xf0] }
  0xb7   : > { %4146 = vmatpush.bf16.msra.mxu0 %v6961_v55  ;;  %4159 = vmatpush.bf16.msra.mxu1 %v7345_v56  ;;  %v7492_v55 = vld [vmem:[%s9917_s29 + $0xae8] sm:$0xf]  ;;  %v9137_v56 = vld [vmem:[%s9917_s29 + $0xb14] sm:$0xf0] }
  0xb8   : > { %4172 = vmatpush.bf16.msra.mxu2 %v7729_v59  ;;  %4185 = vmatpush.bf16.msra.mxu3 %v8113_v60  ;;  %v6292_v59 = vld [vmem:[%s9917_s29 + $0x188] sm:$0xf]  ;;  %v8837_v60 = vld [vmem:[%s9917_s29 + $0x1b4] sm:$0xf0]  ;;  %v7493_v1 = vor.u32 %v9137_v56, %v7492_v55 }
  0xb9   : > { %v6868_v55 = vld [vmem:[%s9917_s29 + $0x608] sm:$0xf]  ;;  %v8981_v56 = vld [vmem:[%s9917_s29 + $0x634] sm:$0xf0] }
  0xbb   : > { %4147 = vmatpush.bf16.msra.mxu0 %v6913_v9  ;;  %4160 = vmatpush.bf16.msra.mxu1 %v7297_v13  ;;  %v9125_v9 = vld [vmem:[%s9917_s29 + $0xab4] sm:$0xf0]  ;;  %v6293_v13 = vor.u32 %v8837_v60, %v6292_v59  ;;  %v7972_v59 = vld [vmem:[%s9917_s29 + $0xea8] sm:$0xf] }
  0xbc   : > { %4173 = vmatpush.bf16.msra.mxu2 %v7681_v19  ;;  %4186 = vmatpush.bf16.msra.mxu3 %v8065_v25  ;;  %v7061_v19 = vor.u32 %v9029_v6, %v7060_v5  ;;  %v7445_v25 = vor.u32 %v9125_v9, %v7444_v7  ;;  %v9257_v60 = vld [vmem:[%s9917_s29 + $0xed4] sm:$0xf0]  ;;  %v6485_v5 = vor.u32 %v8885_v52, %v6484_v51  ;;  %v6438_v6 = vld [vmem:[%s9917_s29 + $0x2d8] sm:$0xf0]  ;;  %v8963_v7 = vld [vmem:[%s9917_s29 + $0x5ac] sm:$0xf] }
  0xbd   : > { %v6822_v9 = vld [vmem:[%s9917_s29 + $0x5d8] sm:$0xf0]  ;;  %v7973_v18 = vor.u32 %v9257_v60, %v7972_v59  ;;  %v6441_v20 = vor.u32 %v8867_v3, %v6438_v6  ;;  %v9293_v6 = vld [vmem:[%s9917_s29 + $0xff4] sm:$0xf0] }
  0xbe   : > { %v6825_v26 = vor.u32 %v8963_v7, %v6822_v9  ;;  %v8807_v7 = vld [vmem:[%s9917_s29 + $0xcc] sm:$0xf]  ;;  %v6198_v9 = vld [vmem:[%s9917_s29 + $0xf8] sm:$0xf0] }
  0xbf   : > { %4148 = vmatpush.bf16.msra.mxu0 %v6865_v31  ;;  %4161 = vmatpush.bf16.msra.mxu1 %v7249_v32  ;;  %v8813_v31 = vld [vmem:[%s9917_s29 + $0xf4] sm:$0xf0]  ;;  %v7013_v32 = vor.u32 %v9017_v28, %v7012_v21  ;;  %v8308_v21 = vld [vmem:[%s9917_s29 + $0x1148] sm:$0xf] }
  0xc0   : > { %4174 = vmatpush.bf16.msra.mxu2 %v7633_v35  ;;  %4187 = vmatpush.bf16.msra.mxu3 %v8017_v11  ;;  %v6964_v35 = vld [vmem:[%s9917_s29 + $0x6c8] sm:$0xf]  ;;  %v9005_v11 = vld [vmem:[%s9917_s29 + $0x6f4] sm:$0xf0]  ;;  %v6197_v36 = vor.u32 %v8813_v31, %v6196_v22 }
  0xc1   : > { %v6965_v37 = vor.u32 %v9005_v11, %v6964_v35  ;;  %v9341_v28 = vld [vmem:[%s9917_s29 + $0x1174] sm:$0xf0]  ;;  %v8260_v35 = vld [vmem:[%s9917_s29 + $0x10e8] sm:$0xf] }
  0xc2   : > { %4149 = vmatmul.bf16.vlgmr.msra.gmra.mxu0 %v10181_v63  ;;  %4162 = vmatmul.bf16.vlgmr.msra.gmra.mxu1 %v10185_v2  ;;  %v8309_v31 = vor.u32 %v9341_v28, %v8308_v21  ;;  %v9329_v11 = vld [vmem:[%s9917_s29 + $0x1114] sm:$0xf0]  ;;  %v8068_v21 = vld [vmem:[%s9917_s29 + $0xf68] sm:$0xf] }
  0xc3   : > { %4193 = vmatpush.bf16.msrb.mxu0 %v6437_v12  ;;  %4206 = vmatpush.bf16.msrb.mxu1 %v6821_v23  ;;  %v7348_v12 = vld [vmem:[%s9917_s29 + $0x9c8] sm:$0xf]  ;;  %v9101_v23 = vld [vmem:[%s9917_s29 + $0x9f4] sm:$0xf0] }
  0xc4   : > { %4219 = vmatpush.bf16.msrb.mxu2 %v7205_v16  ;;  %4232 = vmatpush.bf16.msrb.mxu3 %v7589_v27  ;;  %v6148_v16 = vld [vmem:[%s9917_s29 + $0x68] sm:$0xf]  ;;  %v8801_v27 = vld [vmem:[%s9917_s29 + $0x94] sm:$0xf0]  ;;  %v7349_v38 = vor.u32 %v9101_v23, %v7348_v12  ;;  %v8843_v12 = vld [vmem:[%s9917_s29 + $0x1ec] sm:$0xf] }
  0xc5   : > { %4175 = vmatmul.bf16.vlgmr.msra.gmra.mxu2 %v10215_v41  ;;  %4188 = vmatmul.bf16.vlgmr.msra.gmra.mxu3 %v10217_v42  ;;  %v6149_v48 = vor.u32 %v8801_v27, %v6148_v16  ;;  %v6342_v23 = vld [vmem:[%s9917_s29 + $0x218] sm:$0xf0]  ;;  %v8261_v27 = vor.u32 %v9329_v11, %v8260_v35  ;;  %v9281_v28 = vld [vmem:[%s9917_s29 + $0xf94] sm:$0xf0]  ;;  %v6153_v35 = vor.u32 %v8795_v29, %v6150_v30  ;;  %v9311_v29 = vld [vmem:[%s9917_s29 + $0x108c] sm:$0xf] }
  0xc6   : > { %v8214_v30 = vld [vmem:[%s9917_s29 + $0x10b8] sm:$0xf0] }
  0xc7   : > { %4194 = vmatpush.bf16.msrb.mxu0 %v6389_v45  ;;  %4207 = vmatpush.bf16.msrb.mxu1 %v6773_v46  ;;  %v7300_v45 = vld [vmem:[%s9917_s29 + $0x968] sm:$0xf]  ;;  %v9089_v46 = vld [vmem:[%s9917_s29 + $0x994] sm:$0xf0] }
  0xc8   : > { %4220 = vmatpush.bf16.msrb.mxu2 %v7157_v49  ;;  %4233 = vmatpush.bf16.msrb.mxu3 %v7541_v50  ;;  %v6533_v49 = vor.u32 %v8897_v40, %v6532_v39  ;;  %v8789_v50 = vld [vmem:[%s9917_s29 + $0x34] sm:$0xf0]  ;;  %v7301_v54 = vor.u32 %v9089_v46, %v7300_v45  ;;  %v8212_v40 = vld [vmem:[%s9917_s29 + $0x1088] sm:$0xf]  ;;  %v8927_v45 = vld [vmem:[%s9917_s29 + $0x48c] sm:$0xf] }
  0xc9   : > { %v6101_v4 = vor.u32 %v8789_v50, %v6100_v47  ;;  %v6678_v46 = vld [vmem:[%s9917_s29 + $0x4b8] sm:$0xf0]  ;;  %v9209_v50 = vld [vmem:[%s9917_s29 + $0xd54] sm:$0xf0] }
  0xca   : > { %v6681_v52 = vor.u32 %v8927_v45, %v6678_v46 }
  0xcb   : > { %4195 = vmatpush.bf16.msrb.mxu0 %v6341_v57  ;;  %4208 = vmatpush.bf16.msrb.mxu1 %v6725_v58  ;;  %v7252_v57 = vld [vmem:[%s9917_s29 + $0x908] sm:$0xf]  ;;  %v9077_v58 = vld [vmem:[%s9917_s29 + $0x934] sm:$0xf0] }
  0xcc   : > { %4221 = vmatpush.bf16.msrb.mxu2 %v7109_v0  ;;  %4234 = vmatpush.bf16.msrb.mxu3 %v7493_v1  ;;  %v8356_v0 = vld [vmem:[%s9917_s29 + $0x11a8] sm:$0xf]  ;;  %v9353_v1 = vld [vmem:[%s9917_s29 + $0x11d4] sm:$0xf0] }
  0xcd   : > { %v8357_v24 = vor.u32 %v9353_v1, %v8356_v0  ;;  %v7732_v0 = vld [vmem:[%s9917_s29 + $0xcc8] sm:$0xf]  ;;  %v9197_v1 = vld [vmem:[%s9917_s29 + $0xcf4] sm:$0xf0] }
  0xcf   : > { %4196 = vmatpush.bf16.msrb.mxu0 %v6293_v13  ;;  %4209 = vmatpush.bf16.msrb.mxu1 %v6677_v14  ;;  %v6869_v13 = vor.u32 %v8981_v56, %v6868_v55  ;;  %v7253_v14 = vor.u32 %v9077_v58, %v7252_v57  ;;  %v8819_v55 = vld [vmem:[%s9917_s29 + $0x12c] sm:$0xf]  ;;  %v6246_v56 = vld [vmem:[%s9917_s29 + $0x158] sm:$0xf0] }
  0xd0   : > { %4222 = vmatpush.bf16.msrb.mxu2 %v7061_v19  ;;  %4235 = vmatpush.bf16.msrb.mxu3 %v7445_v25  ;;  %v7924_v19 = vld [vmem:[%s9917_s29 + $0xe48] sm:$0xf]  ;;  %v9245_v25 = vld [vmem:[%s9917_s29 + $0xe74] sm:$0xf0]  ;;  %v8915_v57 = vld [vmem:[%s9917_s29 + $0x42c] sm:$0xf]  ;;  %v6249_v3 = vor.u32 %v8819_v55, %v6246_v56 }
  0xd1   : > { %v7925_v22 = vor.u32 %v9245_v25, %v7924_v19  ;;  %v6630_v58 = vld [vmem:[%s9917_s29 + $0x458] sm:$0xf0]  ;;  %v7684_v19 = vld [vmem:[%s9917_s29 + $0xc68] sm:$0xf]  ;;  %v9185_v25 = vld [vmem:[%s9917_s29 + $0xc94] sm:$0xf0] }
  0xd2   : > { %v9239_v55 = vld [vmem:[%s9917_s29 + $0xe4c] sm:$0xf]  ;;  %v7926_v56 = vld [vmem:[%s9917_s29 + $0xe78] sm:$0xf0] }
  0xd3   : > { %4197 = vmatpush.bf16.msrb.mxu0 %v6245_v8  ;;  %4210 = vmatpush.bf16.msrb.mxu1 %v6629_v10  ;;  %v8951_v8 = vld [vmem:[%s9917_s29 + $0x54c] sm:$0xf]  ;;  %v6774_v10 = vld [vmem:[%s9917_s29 + $0x578] sm:$0xf0] }
  0xd4   : > { %4223 = vmatpush.bf16.msrb.mxu2 %v7013_v32  ;;  %4236 = vmatpush.bf16.msrb.mxu3 %v7397_v33  ;;  %v7876_v32 = vld [vmem:[%s9917_s29 + $0xde8] sm:$0xf]  ;;  %v9233_v33 = vld [vmem:[%s9917_s29 + $0xe14] sm:$0xf0]  ;;  %v6777_v17 = vor.u32 %v8951_v8, %v6774_v10  ;;  %v8891_v8 = vld [vmem:[%s9917_s29 + $0x36c] sm:$0xf] }
  0xd5   : > { %v7877_v16 = vor.u32 %v9233_v33, %v7876_v32  ;;  %v6534_v10 = vld [vmem:[%s9917_s29 + $0x398] sm:$0xf0]  ;;  %v8069_v32 = vor.u32 %v9281_v28, %v8068_v21  ;;  %v9173_v33 = vld [vmem:[%s9917_s29 + $0xc34] sm:$0xf0]  ;;  %v9119_v21 = vld [vmem:[%s9917_s29 + $0xa8c] sm:$0xf] }
  0xd6   : > { %v6537_v11 = vor.u32 %v8891_v8, %v6534_v10  ;;  %v7446_v28 = vld [vmem:[%s9917_s29 + $0xab8] sm:$0xf0] }
  0xd7   : > { %4198 = vmatpush.bf16.msrb.mxu0 %v6197_v36  ;;  %4211 = vmatpush.bf16.msrb.mxu1 %v6581_v15  ;;  %v8939_v36 = vld [vmem:[%s9917_s29 + $0x4ec] sm:$0xf]  ;;  %v6726_v15 = vld [vmem:[%s9917_s29 + $0x518] sm:$0xf0]  ;;  %v7449_v10 = vor.u32 %v9119_v21, %v7446_v28  ;;  %v7596_v21 = vld [vmem:[%s9917_s29 + $0xbb0] sm:$0xf] }
  0xd8   : > { %4224 = vmatpush.bf16.msrb.mxu2 %v6965_v37  ;;  %4237 = vmatpush.bf16.msrb.mxu3 %v7349_v38  ;;  %v7828_v37 = vld [vmem:[%s9917_s29 + $0xd88] sm:$0xf]  ;;  %v9221_v38 = vld [vmem:[%s9917_s29 + $0xdb4] sm:$0xf0]  ;;  %v6729_v39 = vor.u32 %v8939_v36, %v6726_v15  ;;  %v8879_v36 = vld [vmem:[%s9917_s29 + $0x30c] sm:$0xf] }
  0xd9   : > { %v7829_v47 = vor.u32 %v9221_v38, %v7828_v37  ;;  %v6486_v15 = vld [vmem:[%s9917_s29 + $0x338] sm:$0xf0]  ;;  %v9155_v37 = vld [vmem:[%s9917_s29 + $0xbac] sm:$0xf]  ;;  %v9162_v28 = vld [vmem:[%s9917_s29 + $0xbdc] sm:$0xf0] }
  0xda   : > { %v7590_v38 = vld [vmem:[%s9917_s29 + $0xbd8] sm:$0xf0]  ;;  %v6489_v46 = vor.u32 %v8879_v36, %v6486_v15 }
  0xdb   : > { %4199 = vmatpush.bf16.msrb.mxu0 %v6149_v48  ;;  %4212 = vmatpush.bf16.msrb.mxu1 %v6533_v49  ;;  %v8213_v48 = vor.u32 %v9317_v43, %v8212_v40  ;;  %v7780_v49 = vld [vmem:[%s9917_s29 + $0xd28] sm:$0xf]  ;;  %v7974_v43 = vld [vmem:[%s9917_s29 + $0xed8] sm:$0xf0] }
  0xdc   : > { %4225 = vmatpush.bf16.msrb.mxu2 %v6917_v53  ;;  %4238 = vmatpush.bf16.msrb.mxu3 %v7301_v54  ;;  %v8164_v53 = vld [vmem:[%s9917_s29 + $0x1028] sm:$0xf]  ;;  %v9305_v54 = vld [vmem:[%s9917_s29 + $0x1054] sm:$0xf0]  ;;  %v7781_v59 = vor.u32 %v9209_v50, %v7780_v49  ;;  %v9047_v49 = vld [vmem:[%s9917_s29 + $0x84c] sm:$0xf] }
  0xdd   : > { %v8165_v60 = vor.u32 %v9305_v54, %v8164_v53  ;;  %v7158_v50 = vld [vmem:[%s9917_s29 + $0x878] sm:$0xf0]  ;;  %v9143_v53 = vld [vmem:[%s9917_s29 + $0xb4c] sm:$0xf] }
  0xde   : > { %v7542_v54 = vld [vmem:[%s9917_s29 + $0xb78] sm:$0xf0] }
  0xdf   : > { %4200 = vmatpush.bf16.msrb.mxu0 %v6101_v4  ;;  %4213 = vmatpush.bf16.msrb.mxu1 %v6485_v5  ;;  %v6633_v4 = vor.u32 %v8915_v57, %v6630_v58  ;;  %v8116_v5 = vld [vmem:[%s9917_s29 + $0xfc8] sm:$0xf]  ;;  %v9335_v57 = vld [vmem:[%s9917_s29 + $0x114c] sm:$0xf]  ;;  %v8310_v58 = vld [vmem:[%s9917_s29 + $0x1178] sm:$0xf0] }
  0xe0   : > { %4226 = vmatpush.bf16.msrb.mxu2 %v6869_v13  ;;  %4239 = vmatpush.bf16.msrb.mxu3 %v7253_v14  ;;  %v8903_v13 = vld [vmem:[%s9917_s29 + $0x3cc] sm:$0xf]  ;;  %v6582_v14 = vld [vmem:[%s9917_s29 + $0x3f8] sm:$0xf0] }
  0xe2   : > { %4201 = vmatmul.bf16.vlgmr.msrb.gmra.mxu0 %v10177_v61  ;;  %4214 = vmatmul.bf16.vlgmr.msrb.gmra.mxu1 %v10179_v62 }
  0xe3   : > { %4245 = vmatpush.bf16.msra.mxu0 %v7973_v18  ;;  %4258 = vmatpush.bf16.msra.mxu1 %v8357_v24  ;;  %v7733_v18 = vor.u32 %v9197_v1, %v7732_v0  ;;  %v8117_v24 = vor.u32 %v9293_v6, %v8116_v5  ;;  %v9035_v0 = vld [vmem:[%s9917_s29 + $0x7ec] sm:$0xf]  ;;  %v7110_v1 = vld [vmem:[%s9917_s29 + $0x818] sm:$0xf0] }
  0xe4   : > { %4271 = vmatpush.bf16.msra.mxu2 %v6441_v20  ;;  %4284 = vmatpush.bf16.msra.mxu3 %v6825_v26  ;;  %v6201_v20 = vor.u32 %v8807_v7, %v6198_v9  ;;  %v6585_v26 = vor.u32 %v8903_v13, %v6582_v14  ;;  %v9131_v5 = vld [vmem:[%s9917_s29 + $0xaec] sm:$0xf]  ;;  %v7494_v6 = vld [vmem:[%s9917_s29 + $0xb18] sm:$0xf0] }
  0xe5   : > { %4227 = vmatmul.bf16.vlgmr.msrb.gmra.mxu2 %v10181_v63  ;;  %4240 = vmatmul.bf16.vlgmr.msrb.gmra.mxu3 %v10185_v2  ;;  %v6345_v63 = vor.u32 %v8843_v12, %v6342_v23  ;;  %v8831_v2 = vld [vmem:[%s9917_s29 + $0x18c] sm:$0xf]  ;;  %v6102_v23 = vld [vmem:[%s9917_s29 + $0x38] sm:$0xf0] }
  0xe6   : > { %v6297_v51 = vor.u32 %v8831_v2, %v6294_v44  ;;  %v8783_v12 = vld [vmem:[%s9917_s29 + $0xc] sm:$0xf]  ;;  %v8358_v44 = vld [vmem:[%s9917_s29 + $0x11d8] sm:$0xf0] }
  0xe7   : > { %4246 = vmatpush.bf16.msra.mxu0 %v7925_v22  ;;  %4259 = vmatpush.bf16.msra.mxu1 %v8309_v31  ;;  %v7636_v22 = vld [vmem:[%s9917_s29 + $0xc08] sm:$0xf]  ;;  %v7685_v31 = vor.u32 %v9185_v25, %v7684_v19  ;;  %v9347_v2 = vld [vmem:[%s9917_s29 + $0x11ac] sm:$0xf]  ;;  %v6105_v45 = vor.u32 %v8783_v12, %v6102_v23  ;;  %v7878_v9 = vld [vmem:[%s9917_s29 + $0xe18] sm:$0xf0] }
  0xe8   : > { %4272 = vmatpush.bf16.msra.mxu2 %v6393_v34  ;;  %4285 = vmatpush.bf16.msra.mxu3 %v6777_v17  ;;  %v8020_v34 = vld [vmem:[%s9917_s29 + $0xf08] sm:$0xf]  ;;  %v9269_v17 = vld [vmem:[%s9917_s29 + $0xf34] sm:$0xf0]  ;;  %v9227_v7 = vld [vmem:[%s9917_s29 + $0xdec] sm:$0xf] }
  0xe9   : > { %v8021_v40 = vor.u32 %v9269_v17, %v8020_v34  ;;  %v9323_v13 = vld [vmem:[%s9917_s29 + $0x10ec] sm:$0xf]  ;;  %v8262_v14 = vld [vmem:[%s9917_s29 + $0x1118] sm:$0xf0] }
  0xea   : > { %v9023_v19 = vld [vmem:[%s9917_s29 + $0x78c] sm:$0xf]  ;;  %v7062_v25 = vld [vmem:[%s9917_s29 + $0x7b8] sm:$0xf0] }
  0xeb   : > { %4247 = vmatpush.bf16.msra.mxu0 %v7877_v16  ;;  %4260 = vmatpush.bf16.msra.mxu1 %v8261_v27  ;;  %v9059_v16 = vld [vmem:[%s9917_s29 + $0x8ac] sm:$0xf]  ;;  %v7206_v27 = vld [vmem:[%s9917_s29 + $0x8d8] sm:$0xf0]  ;;  %v7065_v8 = vor.u32 %v9023_v19, %v7062_v25  ;;  %v7212_v19 = vld [vmem:[%s9917_s29 + $0x8b0] sm:$0xf] }
  0xec   : > { %4273 = vmatpush.bf16.msra.mxu2 %v6345_v63  ;;  %4286 = vmatpush.bf16.msra.mxu3 %v6729_v39  ;;  %v9251_v63 = vld [vmem:[%s9917_s29 + $0xeac] sm:$0xf]  ;;  %v7637_v39 = vor.u32 %v9173_v33, %v7636_v22  ;;  %v8217_v33 = vor.u32 %v9311_v29, %v8214_v30  ;;  %v7398_v17 = vld [vmem:[%s9917_s29 + $0xa58] sm:$0xf0] }
  0xed   : > { %v9011_v22 = vld [vmem:[%s9917_s29 + $0x72c] sm:$0xf]  ;;  %v8166_v23 = vld [vmem:[%s9917_s29 + $0x1058] sm:$0xf0] }
  0xee   : > { %v9107_v34 = vld [vmem:[%s9917_s29 + $0xa2c] sm:$0xf] }
  0xef   : > { %4248 = vmatpush.bf16.msra.mxu0 %v7829_v47  ;;  %4261 = vmatpush.bf16.msra.mxu1 %v8213_v48  ;;  %v7209_v47 = vor.u32 %v9059_v16, %v7206_v27  ;;  %v7593_v48 = vor.u32 %v9155_v37, %v7590_v38  ;;  %v9299_v12 = vld [vmem:[%s9917_s29 + $0x102c] sm:$0xf]  ;;  %v7401_v15 = vor.u32 %v9107_v34, %v7398_v17  ;;  %v6966_v27 = vld [vmem:[%s9917_s29 + $0x6f8] sm:$0xf0]  ;;  %v7164_v34 = vld [vmem:[%s9917_s29 + $0x850] sm:$0xf] }
  0xf0   : > { %4274 = vmatpush.bf16.msra.mxu2 %v6297_v51  ;;  %4287 = vmatpush.bf16.msra.mxu3 %v6681_v52  ;;  %v7977_v51 = vor.u32 %v9251_v63, %v7974_v43  ;;  %v8361_v52 = vor.u32 %v9347_v2, %v8358_v44  ;;  %v8999_v16 = vld [vmem:[%s9917_s29 + $0x6cc] sm:$0xf]  ;;  %v8169_v38 = vor.u32 %v9299_v12, %v8166_v23  ;;  %v7734_v43 = vld [vmem:[%s9917_s29 + $0xcf8] sm:$0xf0]  ;;  %v9150_v12 = vld [vmem:[%s9917_s29 + $0xb7c] sm:$0xf0] }
  0xf1   : > { %v9095_v63 = vld [vmem:[%s9917_s29 + $0x9cc] sm:$0xf]  ;;  %v8118_v44 = vld [vmem:[%s9917_s29 + $0xff8] sm:$0xf0] }
  0xf2   : > { %v9287_v2 = vld [vmem:[%s9917_s29 + $0xfcc] sm:$0xf] }
  0xf3   : > { %4249 = vmatpush.bf16.msra.mxu0 %v7781_v59  ;;  %4262 = vmatpush.bf16.msra.mxu1 %v8165_v60  ;;  %v7161_v59 = vor.u32 %v9047_v49, %v7158_v50  ;;  %v7545_v60 = vor.u32 %v9143_v53, %v7542_v54  ;;  %v8121_v50 = vor.u32 %v9287_v2, %v8118_v44  ;;  %v9179_v53 = vld [vmem:[%s9917_s29 + $0xc6c] sm:$0xf]  ;;  %v7686_v54 = vld [vmem:[%s9917_s29 + $0xc98] sm:$0xf0]  ;;  %v7500_v2 = vld [vmem:[%s9917_s29 + $0xaf0] sm:$0xf] }
  0xf4   : > { %4275 = vmatpush.bf16.msra.mxu2 %v6249_v3  ;;  %4288 = vmatpush.bf16.msra.mxu3 %v6633_v4  ;;  %v7929_v3 = vor.u32 %v9239_v55, %v7926_v56  ;;  %v8313_v4 = vor.u32 %v9335_v57, %v8310_v58  ;;  %v9275_v55 = vld [vmem:[%s9917_s29 + $0xf6c] sm:$0xf]  ;;  %v8070_v56 = vld [vmem:[%s9917_s29 + $0xf98] sm:$0xf0]  ;;  %v9138_v44 = vld [vmem:[%s9917_s29 + $0xb1c] sm:$0xf0] }
  0xf5   : > { %v8975_v57 = vld [vmem:[%s9917_s29 + $0x60c] sm:$0xf] }
  0xf6   : > { %v10470_v17 = vld [vmem:[%s10467_s10] sm:$0xff] }
  0xf7   : > { %4250 = vmatpush.bf16.msra.mxu0 %v7733_v18  ;;  %4263 = vmatpush.bf16.msra.mxu1 %v8117_v24  ;;  %v7113_v18 = vor.u32 %v9035_v0, %v7110_v1  ;;  %v7497_v24 = vor.u32 %v9131_v5, %v7494_v6  ;;  %v9071_v0 = vld [vmem:[%s9917_s29 + $0x90c] sm:$0xf]  ;;  %v7254_v1 = vld [vmem:[%s9917_s29 + $0x938] sm:$0xf0] }
  0xf8   : > { %4276 = vmatpush.bf16.msra.mxu2 %v6201_v20  ;;  %4289 = vmatpush.bf16.msra.mxu3 %v6585_v26  ;;  %v7881_v20 = vor.u32 %v9227_v7, %v7878_v9  ;;  %v8265_v26 = vor.u32 %v9323_v13, %v8262_v14  ;;  %v9167_v5 = vld [vmem:[%s9917_s29 + $0xc0c] sm:$0xf]  ;;  %v7638_v6 = vld [vmem:[%s9917_s29 + $0xc38] sm:$0xf0]  ;;  %v6444_v13 = vld [vmem:[%s9917_s29 + $0x2b0] sm:$0xf] }
  0xf9   : > { %v9263_v7 = vld [vmem:[%s9917_s29 + $0xf0c] sm:$0xf]  ;;  %v8022_v9 = vld [vmem:[%s9917_s29 + $0xf38] sm:$0xf0]  ;;  %v8874_v14 = vld [vmem:[%s9917_s29 + $0x2dc] sm:$0xf0] }
  0xfa   : > { %v6445_v29 = vor.u32 %v8874_v14, %v6444_v13  ;;  %v7020_v13 = vld [vmem:[%s9917_s29 + $0x730] sm:$0xf] }
  0xfb   : > { %4251 = vmatpush.bf16.msra.mxu0 %v7685_v31  ;;  %4264 = vmatpush.bf16.msra.mxu1 %v8069_v32  ;;  %v7014_v31 = vld [vmem:[%s9917_s29 + $0x758] sm:$0xf0] }
  0xfc   : > { %4277 = vmatpush.bf16.msra.mxu2 %v6153_v35  ;;  %4290 = vmatpush.bf16.msra.mxu3 %v6537_v11  ;;  %v9203_v35 = vld [vmem:[%s9917_s29 + $0xd2c] sm:$0xf]  ;;  %v7782_v11 = vld [vmem:[%s9917_s29 + $0xd58] sm:$0xf0]  ;;  %v7017_v36 = vor.u32 %v9011_v22, %v7014_v31  ;;  %v6780_v22 = vld [vmem:[%s9917_s29 + $0x550] sm:$0xf] }
  0xfd   : > { %v7785_v37 = vor.u32 %v9203_v35, %v7782_v11  ;;  %v9054_v35 = vld [vmem:[%s9917_s29 + $0x87c] sm:$0xf0]  ;;  %v7548_v11 = vld [vmem:[%s9917_s29 + $0xb50] sm:$0xf] }
  0xff   : > { %4252 = vmatpush.bf16.msra.mxu0 %v7637_v39  ;;  %4265 = vmatpush.bf16.msra.mxu1 %v8021_v40  ;;  %v7350_v39 = vld [vmem:[%s9917_s29 + $0x9f8] sm:$0xf0]  ;;  %v9191_v40 = vld [vmem:[%s9917_s29 + $0xccc] sm:$0xf] }
 0x100   : > { %4278 = vmatpush.bf16.msra.mxu2 %v6105_v45  ;;  %4291 = vmatpush.bf16.msra.mxu3 %v6489_v46  ;;  %v6969_v45 = vor.u32 %v8999_v16, %v6966_v27  ;;  %v7353_v46 = vor.u32 %v9095_v63, %v7350_v39  ;;  %v7737_v49 = vor.u32 %v9191_v40, %v7734_v43  ;;  %v6348_v16 = vld [vmem:[%s9917_s29 + $0x1f0] sm:$0xf]  ;;  %v8850_v27 = vld [vmem:[%s9917_s29 + $0x21c] sm:$0xf0] }
 0x101   : > { %v6732_v63 = vld [vmem:[%s9917_s29 + $0x4f0] sm:$0xf]  ;;  %v8946_v39 = vld [vmem:[%s9917_s29 + $0x51c] sm:$0xf0] }
 0x102   : > { %4253 = vmatmul.bf16.vlgmr.msra.gmra.mxu0 %v10215_v41  ;;  %4266 = vmatmul.bf16.vlgmr.msra.gmra.mxu1 %v10217_v42  ;;  %v7116_v40 = vld [vmem:[%s9917_s29 + $0x7f0] sm:$0xf]  ;;  %v9042_v43 = vld [vmem:[%s9917_s29 + $0x81c] sm:$0xf0] }
 0x103   : > { %4297 = vmatpush.bf16.msrb.mxu0 %v7209_v47  ;;  %4310 = vmatpush.bf16.msrb.mxu1 %v7593_v48  ;;  %v8987_v47 = vld [vmem:[%s9917_s29 + $0x66c] sm:$0xf]  ;;  %v6918_v48 = vld [vmem:[%s9917_s29 + $0x698] sm:$0xf0] }
 0x104   : > { %4323 = vmatpush.bf16.msrb.mxu2 %v7977_v51  ;;  %4336 = vmatpush.bf16.msrb.mxu3 %v8361_v52  ;;  %v9083_v51 = vld [vmem:[%s9917_s29 + $0x96c] sm:$0xf]  ;;  %v7302_v52 = vld [vmem:[%s9917_s29 + $0x998] sm:$0xf0]  ;;  %v6921_v58 = vor.u32 %v8987_v47, %v6918_v48 }
 0x105   : > { %4279 = vmatmul.bf16.vlgmr.msra.gmra.mxu2 %v10177_v61  ;;  %4292 = vmatmul.bf16.vlgmr.msra.gmra.mxu3 %v10179_v62  ;;  %v9215_v61 = vld [vmem:[%s9917_s29 + $0xd8c] sm:$0xf]  ;;  %v7830_v62 = vld [vmem:[%s9917_s29 + $0xdb8] sm:$0xf0] }
 0x106   : > { %v7833_v32 = vor.u32 %v9215_v61, %v7830_v62  ;;  %v7641_v61 = vor.u32 %v9167_v5, %v7638_v6  ;;  %v8025_v62 = vor.u32 %v9263_v7, %v8022_v9  ;;  %v10489_v48 = vld [vmem:[#allocation1 + $0x1b] sm:$0xff]  ;;  %v8922_v9 = vld [vmem:[%s9917_s29 + $0x45c] sm:$0xf0] }
 0x107   : > { %4298 = vmatpush.bf16.msrb.mxu0 %v7161_v59  ;;  %4311 = vmatpush.bf16.msrb.mxu1 %v7545_v60  ;;  %v7305_v59 = vor.u32 %v9083_v51, %v7302_v52  ;;  %v6870_v60 = vld [vmem:[%s9917_s29 + $0x638] sm:$0xf0]  ;;  %v6300_v51 = vld [vmem:[%s9917_s29 + $0x190] sm:$0xf]  ;;  %v8838_v52 = vld [vmem:[%s9917_s29 + $0x1bc] sm:$0xf0] }
 0x108   : > { %4324 = vmatpush.bf16.msrb.mxu2 %v7929_v3  ;;  %4337 = vmatpush.bf16.msrb.mxu3 %v8313_v4  ;;  %v7689_v3 = vor.u32 %v9179_v53, %v7686_v54  ;;  %v8073_v4 = vor.u32 %v9275_v55, %v8070_v56  ;;  %v6873_v25 = vor.u32 %v8975_v57, %v6870_v60  ;;  %v6684_v54 = vld [vmem:[%s9917_s29 + $0x490] sm:$0xf]  ;;  %v8934_v55 = vld [vmem:[%s9917_s29 + $0x4bc] sm:$0xf0] }
 0x109   : > { %v7501_v53 = vor.u32 %v9138_v44, %v7500_v2  ;;  %v7068_v56 = vld [vmem:[%s9917_s29 + $0x790] sm:$0xf]  ;;  %v9126_v60 = vld [vmem:[%s9917_s29 + $0xabc] sm:$0xf0] }
 0x10a   : > { %v6636_v7 = vld [vmem:[%s9917_s29 + $0x430] sm:$0xf]  ;;  %v9090_v2 = vld [vmem:[%s9917_s29 + $0x99c] sm:$0xf0] }
 0x10b   : > { %4299 = vmatpush.bf16.msrb.mxu0 %v7113_v18  ;;  %4312 = vmatpush.bf16.msrb.mxu1 %v7497_v24  ;;  %v6828_v18 = vld [vmem:[%s9917_s29 + $0x5b0] sm:$0xf]  ;;  %v8970_v24 = vld [vmem:[%s9917_s29 + $0x5dc] sm:$0xf0] }
 0x10c   : > { %4325 = vmatpush.bf16.msrb.mxu2 %v7881_v20  ;;  %4338 = vmatpush.bf16.msrb.mxu3 %v8265_v26  ;;  %v7257_v20 = vor.u32 %v9071_v0, %v7254_v1  ;;  %v9066_v26 = vld [vmem:[%s9917_s29 + $0x8dc] sm:$0xf0]  ;;  %v6829_v30 = vor.u32 %v8970_v24, %v6828_v18  ;;  %v6301_v0 = vor.u32 %v8838_v52, %v6300_v51  ;;  %v6492_v52 = vld [vmem:[%s9917_s29 + $0x310] sm:$0xf] }
 0x10d   : > { %v7213_v31 = vor.u32 %v9066_v26, %v7212_v19  ;;  %v6685_v1 = vor.u32 %v8934_v55, %v6684_v54  ;;  %v9018_v24 = vld [vmem:[%s9917_s29 + $0x75c] sm:$0xf0]  ;;  %v7404_v19 = vld [vmem:[%s9917_s29 + $0xa30] sm:$0xf] }
 0x10f   : > { %4300 = vmatpush.bf16.msrb.mxu0 %v7065_v8  ;;  %4313 = vmatpush.bf16.msrb.mxu1 %v7449_v10  ;;  %v6396_v8 = vld [vmem:[%s9917_s29 + $0x250] sm:$0xf]  ;;  %v8862_v10 = vld [vmem:[%s9917_s29 + $0x27c] sm:$0xf0] }
 0x110   : > { %4326 = vmatpush.bf16.msrb.mxu2 %v7833_v32  ;;  %4339 = vmatpush.bf16.msrb.mxu3 %v8217_v33  ;;  %v7597_v32 = vor.u32 %v9162_v28, %v7596_v21  ;;  %v8958_v33 = vld [vmem:[%s9917_s29 + $0x57c] sm:$0xf0]  ;;  %v6397_v23 = vor.u32 %v8862_v10, %v6396_v8  ;;  %v7021_v8 = vor.u32 %v9018_v24, %v7020_v13  ;;  %v8964_v13 = vld [vmem:[%s9917_s29 + $0x5b4] sm:$0xf] }
 0x113   : > { %4301 = vmatpush.bf16.msrb.mxu0 %v7017_v36  ;;  %4314 = vmatpush.bf16.msrb.mxu1 %v7401_v15  ;;  %v6781_v36 = vor.u32 %v8958_v33, %v6780_v22  ;;  %v1119_v15 = vperm.slane %v10470_v17, 0  ;;  %v6588_v22 = vld [vmem:[%s9917_s29 + $0x3d0] sm:$0xf]  ;;  %v9006_v33 = vld [vmem:[%s9917_s29 + $0x6fc] sm:$0xf0] }
 0x114   : > { %4327 = vmatpush.bf16.msrb.mxu2 %v7785_v37  ;;  %4340 = vmatpush.bf16.msrb.mxu3 %v8169_v38  ;;  %v7165_v37 = vor.u32 %v9054_v35, %v7164_v34  ;;  %v7549_v38 = vor.u32 %v9150_v12, %v7548_v11  ;;  %v7356_v34 = vld [vmem:[%s9917_s29 + $0x9d0] sm:$0xf]  ;;  %v9102_v35 = vld [vmem:[%s9917_s29 + $0x9fc] sm:$0xf0] }
 0x117   : > { %4302 = vmatpush.bf16.msrb.mxu0 %v6969_v45  ;;  %4315 = vmatpush.bf16.msrb.mxu1 %v7353_v46  ;;  %v10485_v45 = vld [vmem:[#allocation1 + $0x12] sm:$0xff] }
 0x118   : > { %4328 = vmatpush.bf16.msrb.mxu2 %v7737_v49  ;;  %4341 = vmatpush.bf16.msrb.mxu3 %v8121_v50  ;;  %v6349_v49 = vor.u32 %v8850_v27, %v6348_v16  ;;  %v6733_v50 = vor.u32 %v8946_v39, %v6732_v63  ;;  %v7357_v16 = vor.u32 %v9102_v35, %v7356_v34  ;;  %v6540_v27 = vld [vmem:[%s9917_s29 + $0x370] sm:$0xf]  ;;  %v6782_v34 = vld [vmem:[%s9917_s29 + $0x580] sm:$0xf0] }
 0x11b   : > { %4303 = vmatpush.bf16.msrb.mxu0 %v6921_v58  ;;  %4316 = vmatpush.bf16.msrb.mxu1 %v7305_v59  ;;  %v9030_v58 = vld [vmem:[%s9917_s29 + $0x7bc] sm:$0xf0]  ;;  %v7452_v59 = vld [vmem:[%s9917_s29 + $0xa90] sm:$0xf] }
 0x11c   : > { %4329 = vmatpush.bf16.msrb.mxu2 %v7689_v3  ;;  %4342 = vmatpush.bf16.msrb.mxu3 %v8073_v4  ;;  %v6252_v3 = vld [vmem:[%s9917_s29 + $0x130] sm:$0xf]  ;;  %v8826_v4 = vld [vmem:[%s9917_s29 + $0x15c] sm:$0xf0]  ;;  %v7069_v5 = vor.u32 %v9030_v58, %v7068_v56  ;;  %v7453_v6 = vor.u32 %v9126_v60, %v7452_v59 }
 0x11d   : > { %v6253_v28 = vor.u32 %v8826_v4, %v6252_v3  ;;  %v8982_v56 = vld [vmem:[%s9917_s29 + $0x63c] sm:$0xf0]  ;;  %v7980_v60 = vld [vmem:[%s9917_s29 + $0xeb0] sm:$0xf]  ;;  %v8868_v4 = vld [vmem:[%s9917_s29 + $0x2b4] sm:$0xf] }
 0x11e   : > { %v4046_v46 = vpop.f32.mrf.mxu0  ;;  %v4059_v47 = vpop.f32.mrf.mxu1  ;;  %v9078_v58 = vld [vmem:[%s9917_s29 + $0x93c] sm:$0xf0] }
 0x11f   : > { %4304 = vmatpush.bf16.msrb.mxu0 %v6873_v25  ;;  %4317 = vmatpush.bf16.msrb.mxu1 %v7257_v20  ;;  %v9114_v25 = vld [vmem:[%s9917_s29 + $0xa5c] sm:$0xf0] }
 0x120   : > { %4330 = vmatpush.bf16.msrb.mxu2 %v7641_v61  ;;  %4343 = vmatpush.bf16.msrb.mxu3 %v8025_v62  ;;  %v6637_v61 = vor.u32 %v8922_v9, %v6636_v7  ;;  %v6204_v62 = vld [vmem:[%s9917_s29 + $0xd0] sm:$0xf]  ;;  %v7405_v10 = vor.u32 %v9114_v25, %v7404_v19  ;;  %v9354_v3 = vld [vmem:[%s9917_s29 + $0x11dc] sm:$0xf0]  ;;  %v6446_v9 = vld [vmem:[%s9917_s29 + $0x2e0] sm:$0xf0] }
 0x122   : > { %4305 = vmatmul.bf16.vlgmr.msrb.gmra.mxu0 %v10485_v45  ;;  %4318 = vmatmul.bf16.vlgmr.msrb.gmra.mxu1 %v10489_v48 }
 0x123   : > { %4349 = vmatpush.bf16.msra.mxu0 %v6445_v29  ;;  %4362 = vmatpush.bf16.msra.mxu1 %v6829_v30  ;;  %v8814_v29 = vld [vmem:[%s9917_s29 + $0xfc] sm:$0xf0] }
 0x124   : > { %4375 = vmatpush.bf16.msra.mxu2 %v7213_v31  ;;  %4388 = vmatpush.bf16.msra.mxu3 %v7597_v32  ;;  %v8910_v31 = vld [vmem:[%s9917_s29 + $0x3fc] sm:$0xf0]  ;;  %v6972_v32 = vld [vmem:[%s9917_s29 + $0x6d0] sm:$0xf]  ;;  %v6205_v11 = vor.u32 %v8814_v29, %v6204_v62 }
 0x125   : > { %4331 = vmatmul.bf16.vlgmr.msrb.gmra.mxu2 %v10215_v41  ;;  %4344 = vmatmul.bf16.vlgmr.msrb.gmra.mxu3 %v10217_v42  ;;  %v4047_v41 = vadd.f32 %v4046_v46, %v1119_v15  ;;  %v7117_v42 = vor.u32 %v9042_v43, %v7116_v40  ;;  %v4072_v14 = vpop.f32.mrf.mxu2  ;;  %v4085_v18 = vpop.f32.mrf.mxu3  ;;  %v6589_v12 = vor.u32 %v8910_v31, %v6588_v22  ;;  %v8994_v40 = vld [vmem:[%s9917_s29 + $0x69c] sm:$0xf0]  ;;  %v7308_v43 = vld [vmem:[%s9917_s29 + $0x970] sm:$0xf] }
 0x126   : > { %v4048_v26 = vpop.f32.mrf.mxu0  ;;  %v4061_v21 = vpop.f32.mrf.mxu1  ;;  %v6973_v15 = vor.u32 %v9006_v33, %v6972_v32  ;;  %v7309_v55 = vor.u32 %v9090_v2, %v7308_v43  ;;  %v8316_v29 = vld [vmem:[%s9917_s29 + $0x1150] sm:$0xf]  ;;  %v6398_v32 = vld [vmem:[%s9917_s29 + $0x280] sm:$0xf0]  ;;  %v8952_v33 = vld [vmem:[%s9917_s29 + $0x554] sm:$0xf] }
 0x127   : > { %4350 = vmatpush.bf16.msra.mxu0 %v6397_v23  ;;  %4363 = vmatpush.bf16.msra.mxu1 %v6781_v36  ;;  %v4060_v57 = vadd.f32 %v4059_v47, %v4047_v41  ;;  %v6156_v23 = vld [vmem:[%s9917_s29 + $0x70] sm:$0xf]  ;;  %v8802_v36 = vld [vmem:[%s9917_s29 + $0x9c] sm:$0xf0] }
 0x128   : > { %4376 = vmatpush.bf16.msra.mxu2 %v7165_v37  ;;  %4389 = vmatpush.bf16.msra.mxu3 %v7549_v38  ;;  %v8898_v37 = vld [vmem:[%s9917_s29 + $0x39c] sm:$0xf0]  ;;  %v6924_v38 = vld [vmem:[%s9917_s29 + $0x670] sm:$0xf] }
 0x129   : > { %v4073_v20 = vadd.f32 %v4072_v14, %v4060_v57  ;;  %v6108_v47 = vld [vmem:[%s9917_s29 + $0x10] sm:$0xf]  ;;  %v8790_v41 = vld [vmem:[%s9917_s29 + $0x3c] sm:$0xf0]  ;;  %v6541_v51 = vor.u32 %v8898_v37, %v6540_v27  ;;  %v6925_v54 = vor.u32 %v8994_v40, %v6924_v38  ;;  %v6830_v14 = vld [vmem:[%s9917_s29 + $0x5e0] sm:$0xf0] }
 0x12a   : > { %v7260_v57 = vld [vmem:[%s9917_s29 + $0x910] sm:$0xf]  ;;  %v9246_v26 = vld [vmem:[%s9917_s29 + $0xe7c] sm:$0xf0]  ;;  %v6833_v62 = vor.u32 %v8964_v13, %v6830_v14  ;;  %v8844_v38 = vld [vmem:[%s9917_s29 + $0x1f4] sm:$0xf] }
 0x12b   : > { %4351 = vmatpush.bf16.msra.mxu0 %v6349_v49  ;;  %4364 = vmatpush.bf16.msra.mxu1 %v6733_v50  ;;  %v4086_v30 = vadd.f32 %v4085_v18, %v4073_v20  ;;  %v6157_v50 = vor.u32 %v8802_v36, %v6156_v23  ;;  %v7261_v24 = vor.u32 %v9078_v58, %v7260_v57  ;;  %v7932_v20 = vld [vmem:[%s9917_s29 + $0xe50] sm:$0xf]  ;;  %v9234_v36 = vld [vmem:[%s9917_s29 + $0xe1c] sm:$0xf0]  ;;  %v6734_v40 = vld [vmem:[%s9917_s29 + $0x520] sm:$0xf0] }
 0x12c   : > { %4377 = vmatpush.bf16.msra.mxu2 %v7117_v42  ;;  %4390 = vmatpush.bf16.msra.mxu3 %v7501_v53  ;;  %v8886_v42 = vld [vmem:[%s9917_s29 + $0x33c] sm:$0xf0]  ;;  %v6876_v53 = vld [vmem:[%s9917_s29 + $0x610] sm:$0xf]  ;;  %v6686_v57 = vld [vmem:[%s9917_s29 + $0x4c0] sm:$0xf0] }
 0x12d   : > { %v4074_v63 = vpop.f32.mrf.mxu2  ;;  %v4087_v39 = vpop.f32.mrf.mxu3  ;;  %v6493_v7 = vor.u32 %v8886_v42, %v6492_v52  ;;  %v6877_v18 = vor.u32 %v8982_v56, %v6876_v53  ;;  %v7884_v23 = vld [vmem:[%s9917_s29 + $0xdf0] sm:$0xf]  ;;  %v9330_v37 = vld [vmem:[%s9917_s29 + $0x111c] sm:$0xf0]  ;;  %v8928_v56 = vld [vmem:[%s9917_s29 + $0x494] sm:$0xf] }
 0x12e   : > { %v4098_v44 = vpop.f32.mrf.mxu0  ;;  %v4111_v46 = vpop.f32.mrf.mxu1  ;;  %v8268_v27 = vld [vmem:[%s9917_s29 + $0x10f0] sm:$0xf]  ;;  %v6350_v63 = vld [vmem:[%s9917_s29 + $0x220] sm:$0xf0]  ;;  %v8940_v39 = vld [vmem:[%s9917_s29 + $0x4f4] sm:$0xf] }
 0x12f   : > { %4352 = vmatpush.bf16.msra.mxu0 %v6301_v0  ;;  %4365 = vmatpush.bf16.msra.mxu1 %v6685_v1  ;;  %v4099_v49 = vadd.f32 %v4098_v44, %v4086_v30  ;;  %v9258_v0 = vld [vmem:[%s9917_s29 + $0xedc] sm:$0xf0]  ;;  %v8364_v1 = vld [vmem:[%s9917_s29 + $0x11b0] sm:$0xf]  ;;  %v7885_v44 = vor.u32 %v9234_v36, %v7884_v23  ;;  %v6737_v52 = vor.u32 %v8940_v39, %v6734_v40  ;;  %v8820_v14 = vld [vmem:[%s9917_s29 + $0x134] sm:$0xf] }
 0x130   : > { %4378 = vmatpush.bf16.msra.mxu2 %v7069_v5  ;;  %4391 = vmatpush.bf16.msra.mxu3 %v7453_v6  ;;  %v1120_v5 = vperm.slane %v10470_v17, 1  ;;  %v6109_v6 = vor.u32 %v8790_v41, %v6108_v47  ;;  %v7981_v19 = vor.u32 %v9258_v0, %v7980_v60  ;;  %v8365_v25 = vor.u32 %v9354_v3, %v8364_v1  ;;  %v9342_v30 = vld [vmem:[%s9917_s29 + $0x117c] sm:$0xf0]  ;;  %v10560_v43 = vld [vmem:[#allocation1] sm:$0xff]  ;;  %v6158_v40 = vld [vmem:[%s9917_s29 + $0xa0] sm:$0xf0] }
 0x131   : > { %v10532_v59 = vadd.f32 %v4111_v46, %v4099_v49  ;;  %v10564_v2 = vld [vmem:[#allocation1 + $0x9] sm:$0xff]  ;;  %v8269_v46 = vor.u32 %v9330_v37, %v8268_v27  ;;  %v7836_v47 = vld [vmem:[%s9917_s29 + $0xd90] sm:$0xf]  ;;  %v8796_v39 = vld [vmem:[%s9917_s29 + $0x74] sm:$0xf] }
 0x132   : > { %v9222_v41 = vld [vmem:[%s9917_s29 + $0xdbc] sm:$0xf0]  ;;  %v8220_v42 = vld [vmem:[%s9917_s29 + $0x1090] sm:$0xf] }
 0x133   : > { %4353 = vmatpush.bf16.msra.mxu0 %v6253_v28  ;;  %4366 = vmatpush.bf16.msra.mxu1 %v6637_v61  ;;  %v6449_v61 = vor.u32 %v8868_v4, %v6446_v9  ;;  %v9318_v53 = vld [vmem:[%s9917_s29 + $0x10bc] sm:$0xf0]  ;;  %v7837_v60 = vor.u32 %v9222_v41, %v7836_v47  ;;  %v7788_v1 = vld [vmem:[%s9917_s29 + $0xd30] sm:$0xf]  ;;  %9542 = vtanh.f32 %v10532_v59 }
 0x134   : > { %4379 = vmatpush.bf16.msra.mxu2 %v7021_v8  ;;  %4392 = vmatpush.bf16.msra.mxu3 %v7405_v10  ;;  %v8856_v8 = vld [vmem:[%s9917_s29 + $0x254] sm:$0xf]  ;;  %v8221_v0 = vor.u32 %v9318_v53, %v8220_v42  ;;  %v9210_v3 = vld [vmem:[%s9917_s29 + $0xd5c] sm:$0xf0]  ;;  %v8172_v9 = vld [vmem:[%s9917_s29 + $0x1030] sm:$0xf]  ;;  %v6161_v42 = vor.u32 %v8796_v39, %v6158_v40 }
 0x135   : > { %v4124_v21 = vpop.f32.mrf.mxu2  ;;  %v4137_v28 = vpop.f32.mrf.mxu3  ;;  %v9306_v13 = vld [vmem:[%s9917_s29 + $0x105c] sm:$0xf0]  ;;  %v7692_v23 = vld [vmem:[%s9917_s29 + $0xc70] sm:$0xf]  ;;  %v9024_v40 = vld [vmem:[%s9917_s29 + $0x794] sm:$0xf] }
 0x136   : > { %v4125_v10 = vadd.f32 %v4124_v21, %v1120_v5  ;;  %v4100_v22 = vpop.f32.mrf.mxu0  ;;  %v4113_v31 = vpop.f32.mrf.mxu1  ;;  %v7740_v21 = vld [vmem:[%s9917_s29 + $0xcd0] sm:$0xf]  ;;  %v9186_v36 = vld [vmem:[%s9917_s29 + $0xc9c] sm:$0xf0] }
 0x137   : > { %4354 = vmatpush.bf16.msra.mxu0 %v6205_v11  ;;  %4367 = vmatpush.bf16.msra.mxu1 %v6589_v12  ;;  %v7933_v11 = vor.u32 %v9246_v26, %v7932_v20  ;;  %v8317_v12 = vor.u32 %v9342_v30, %v8316_v29  ;;  %v7789_v20 = vor.u32 %v9210_v3, %v7788_v1  ;;  %v8124_v29 = vld [vmem:[%s9917_s29 + $0xfd0] sm:$0xf]  ;;  %v9294_v30 = vld [vmem:[%s9917_s29 + $0xffc] sm:$0xf0]  ;;  %v6206_v22 = vld [vmem:[%s9917_s29 + $0x100] sm:$0xf0] }
 0x138   : > { %4380 = vmatpush.bf16.msra.mxu2 %v6973_v15  ;;  %4393 = vmatpush.bf16.msra.mxu3 %v7357_v16  ;;  %v4138_v35 = vadd.f32 %v4137_v28, %v4125_v10  ;;  %v6401_v15 = vor.u32 %v8856_v8, %v6398_v32  ;;  %v6785_v16 = vor.u32 %v8952_v33, %v6782_v34  ;;  %v9198_v28 = vld [vmem:[%s9917_s29 + $0xcfc] sm:$0xf0]  ;;  %v8808_v8 = vld [vmem:[%s9917_s29 + $0xd4] sm:$0xf]  ;;  %v6590_v32 = vld [vmem:[%s9917_s29 + $0x400] sm:$0xf0] }
 0x139   : > { %v8173_v26 = vor.u32 %v9306_v13, %v8172_v9  ;;  %v8904_v31 = vld [vmem:[%s9917_s29 + $0x3d4] sm:$0xf]  ;;  %v6209_v27 = vor.u32 %v8808_v8, %v6206_v22  ;;  %v7644_v47 = vld [vmem:[%s9917_s29 + $0xc10] sm:$0xf]  ;;  %v7693_v41 = vor.u32 %v9186_v36, %v7692_v23  ;;  %v7982_v9 = vld [vmem:[%s9917_s29 + $0xee0] sm:$0xf0] }
 0x13a   : > { %v6593_v37 = vor.u32 %v8904_v31, %v6590_v32  ;;  %v9156_v3 = vld [vmem:[%s9917_s29 + $0xbb4] sm:$0xf]  ;;  %v7886_v36 = vld [vmem:[%s9917_s29 + $0xe20] sm:$0xf0] }
 0x13b   : > { %4355 = vmatpush.bf16.msra.mxu0 %v6157_v50  ;;  %4368 = vmatpush.bf16.msra.mxu1 %v6541_v51  ;;  %v6353_v51 = vor.u32 %v8844_v38, %v6350_v63  ;;  %v8076_v38 = vld [vmem:[%s9917_s29 + $0xf70] sm:$0xf]  ;;  %v9282_v63 = vld [vmem:[%s9917_s29 + $0xf9c] sm:$0xf0]  ;;  %v9348_v13 = vld [vmem:[%s9917_s29 + $0x11b4] sm:$0xf] }
 0x13c   : > { %4381 = vmatpush.bf16.msra.mxu2 %v6925_v54  ;;  %4394 = vmatpush.bf16.msra.mxu3 %v7309_v55  ;;  %v8832_v54 = vld [vmem:[%s9917_s29 + $0x194] sm:$0xf]  ;;  %v6302_v55 = vld [vmem:[%s9917_s29 + $0x1c0] sm:$0xf0] }
 0x13d   : > { %v4126_v49 = vpop.f32.mrf.mxu2  ;;  %v4139_v50 = vpop.f32.mrf.mxu3  ;;  %v9336_v8 = vld [vmem:[%s9917_s29 + $0x1154] sm:$0xf] }
 0x13e   : > { %v8077_v49 = vor.u32 %v9282_v63, %v8076_v38  ;;  %v9174_v50 = vld [vmem:[%s9917_s29 + $0xc3c] sm:$0xf0]  ;;  %v9036_v32 = vld [vmem:[%s9917_s29 + $0x7f4] sm:$0xf] }
 0x13f   : > { %4356 = vmatpush.bf16.msra.mxu0 %v6109_v6  ;;  %4369 = vmatpush.bf16.msra.mxu1 %v6493_v7  ;;  %v4150_v58 = vpop.f32.mrf.mxu0  ;;  %v4163_v5 = vpop.f32.mrf.mxu1  ;;  %v6305_v6 = vor.u32 %v8832_v54, %v6302_v55  ;;  %v6689_v7 = vor.u32 %v8928_v56, %v6686_v57  ;;  %v8784_v54 = vld [vmem:[%s9917_s29 + $0x14] sm:$0xf]  ;;  %v6110_v55 = vld [vmem:[%s9917_s29 + $0x40] sm:$0xf0] }
 0x140   : > { %4382 = vmatpush.bf16.msra.mxu2 %v6877_v18  ;;  %4395 = vmatpush.bf16.msra.mxu3 %v7261_v24  ;;  %v4151_v4 = vadd.f32 %v4150_v58, %v4138_v35  ;;  %v6254_v18 = vld [vmem:[%s9917_s29 + $0x160] sm:$0xf0]  ;;  %v8916_v24 = vld [vmem:[%s9917_s29 + $0x434] sm:$0xf] }
 0x141   : > { %v8880_v56 = vld [vmem:[%s9917_s29 + $0x314] sm:$0xf]  ;;  %v6494_v58 = vld [vmem:[%s9917_s29 + $0x340] sm:$0xf0] }
 0x142   : > { %4357 = vmatmul.bf16.vlgmr.msra.gmra.mxu0 %v10560_v43  ;;  %4370 = vmatmul.bf16.vlgmr.msra.gmra.mxu1 %v10564_v2  ;;  %v9228_v23 = vld [vmem:[%s9917_s29 + $0xdf4] sm:$0xf]  ;;  %v10636_v38 = vld [vmem:[#allocation1 + $0x2d] sm:$0xff] }
 0x143   : > { %4401 = vmatpush.bf16.msrb.mxu0 %v7981_v19  ;;  %4414 = vmatpush.bf16.msrb.mxu1 %v8365_v25  ;;  %v6638_v19 = vld [vmem:[%s9917_s29 + $0x460] sm:$0xf0]  ;;  %v4164_v25 = vadd.f32 %v4163_v5, %v4151_v4  ;;  %v9252_v5 = vld [vmem:[%s9917_s29 + $0xeb4] sm:$0xf] }
 0x144   : > { %4427 = vmatpush.bf16.msrb.mxu2 %v6449_v61  ;;  %4440 = vmatpush.bf16.msrb.mxu3 %v6833_v62  ;;  %v6257_v61 = vor.u32 %v8820_v14, %v6254_v18  ;;  %v6641_v62 = vor.u32 %v8916_v24, %v6638_v19  ;;  %v7598_v4 = vld [vmem:[%s9917_s29 + $0xbe0] sm:$0xf0]  ;;  %v6113_v18 = vor.u32 %v8784_v54, %v6110_v55 }
 0x145   : > { %4383 = vmatmul.bf16.vlgmr.msra.gmra.mxu2 %v10485_v45  ;;  %4396 = vmatmul.bf16.vlgmr.msra.gmra.mxu3 %v10489_v48  ;;  %v8366_v14 = vld [vmem:[%s9917_s29 + $0x11e0] sm:$0xf0]  ;;  %v6497_v24 = vor.u32 %v8880_v56, %v6494_v58 }
 0x146   : > { %v7022_v58 = vld [vmem:[%s9917_s29 + $0x760] sm:$0xf0] }
 0x147   : > { %4402 = vmatpush.bf16.msrb.mxu0 %v7933_v11  ;;  %4415 = vmatpush.bf16.msrb.mxu1 %v8317_v12  ;;  %v4152_v35 = vpop.f32.mrf.mxu0  ;;  %v7741_v11 = vor.u32 %v9198_v28, %v7740_v21  ;;  %v8125_v12 = vor.u32 %v9294_v30, %v8124_v29  ;;  %v7985_v21 = vor.u32 %v9252_v5, %v7982_v9  ;;  %v9240_v29 = vld [vmem:[%s9917_s29 + $0xe54] sm:$0xf]  ;;  %v7934_v30 = vld [vmem:[%s9917_s29 + $0xe80] sm:$0xf0] }
 0x148   : > { %4428 = vmatpush.bf16.msrb.mxu2 %v6401_v15  ;;  %4441 = vmatpush.bf16.msrb.mxu3 %v6785_v16  ;;  %v4176_v10 = vpop.f32.mrf.mxu2  ;;  %v4189_v34 = vpop.f32.mrf.mxu3  ;;  %v8369_v28 = vor.u32 %v9348_v13, %v8366_v14  ;;  %v7406_v5 = vld [vmem:[%s9917_s29 + $0xa60] sm:$0xf0]  ;;  %v9300_v9 = vld [vmem:[%s9917_s29 + $0x1034] sm:$0xf] }
 0x149   : > { %v4177_v33 = vadd.f32 %v4176_v10, %v4164_v25  ;;  %v4165_v16 = vpop.f32.mrf.mxu1  ;;  %v7601_v25 = vor.u32 %v9156_v3, %v7598_v4  ;;  %v8318_v10 = vld [vmem:[%s9917_s29 + $0x1180] sm:$0xf0]  ;;  %v9108_v4 = vld [vmem:[%s9917_s29 + $0xa34] sm:$0xf] }
 0x14a   : > { %v8321_v35 = vor.u32 %v9336_v8, %v8318_v10  ;;  %v9324_v16 = vld [vmem:[%s9917_s29 + $0x10f4] sm:$0xf]  ;;  %v8174_v13 = vld [vmem:[%s9917_s29 + $0x1060] sm:$0xf0] }
 0x14b   : > { %4403 = vmatpush.bf16.msrb.mxu0 %v7885_v44  ;;  %4416 = vmatpush.bf16.msrb.mxu1 %v8269_v46  ;;  %v10593_v15 = vadd.f32 %v4189_v34, %v4177_v33  ;;  %v8892_v44 = vld [vmem:[%s9917_s29 + $0x374] sm:$0xf]  ;;  %v6542_v46 = vld [vmem:[%s9917_s29 + $0x3a0] sm:$0xf0]  ;;  %v7937_v34 = vor.u32 %v9240_v29, %v7934_v30 }
 0x14c   : > { %4429 = vmatpush.bf16.msrb.mxu2 %v6353_v51  ;;  %4442 = vmatpush.bf16.msrb.mxu3 %v6737_v52  ;;  %v8028_v51 = vld [vmem:[%s9917_s29 + $0xf10] sm:$0xf]  ;;  %v9270_v52 = vld [vmem:[%s9917_s29 + $0xf3c] sm:$0xf0]  ;;  %v6545_v53 = vor.u32 %v8892_v44, %v6542_v46  ;;  %v7118_v33 = vld [vmem:[%s9917_s29 + $0x820] sm:$0xf0] }
 0x14d   : > { %v7121_v63 = vor.u32 %v9036_v32, %v7118_v33  ;;  %v7070_v44 = vld [vmem:[%s9917_s29 + $0x7c0] sm:$0xf0]  ;;  %v1121_v46 = vperm.slane %v10470_v17, 2  ;;  %v9288_v30 = vld [vmem:[%s9917_s29 + $0xfd4] sm:$0xf]  ;;  %9544 = vtanh.f32 %v10593_v15 }
 0x14e   : > { %v7073_v55 = vor.u32 %v9024_v40, %v7070_v44  ;;  %v7742_v29 = vld [vmem:[%s9917_s29 + $0xd00] sm:$0xf0]  ;;  %v9276_v40 = vld [vmem:[%s9917_s29 + $0xf74] sm:$0xf] }
 0x14f   : > { %4404 = vmatpush.bf16.msrb.mxu0 %v7837_v60  ;;  %4417 = vmatpush.bf16.msrb.mxu1 %v8221_v0  ;;  %v9060_v60 = vld [vmem:[%s9917_s29 + $0x8b4] sm:$0xf]  ;;  %v7214_v0 = vld [vmem:[%s9917_s29 + $0x8e0] sm:$0xf0] }
 0x150   : > { %4430 = vmatpush.bf16.msrb.mxu2 %v6305_v6  ;;  %4443 = vmatpush.bf16.msrb.mxu3 %v6689_v7  ;;  %v4178_v57 = vpop.f32.mrf.mxu2  ;;  %v4191_v1 = vpop.f32.mrf.mxu3  ;;  %v7645_v6 = vor.u32 %v9174_v50, %v7644_v47  ;;  %v8029_v7 = vor.u32 %v9270_v52, %v8028_v51  ;;  %v7217_v19 = vor.u32 %v9060_v60, %v7214_v0  ;;  %v7454_v50 = vld [vmem:[%s9917_s29 + $0xac0] sm:$0xf0]  ;;  %v9216_v51 = vld [vmem:[%s9917_s29 + $0xd94] sm:$0xf] }
 0x151   : > { %v7889_v47 = vor.u32 %v9228_v23, %v7886_v36  ;;  %v7838_v52 = vld [vmem:[%s9917_s29 + $0xdc0] sm:$0xf0]  ;;  %v9012_v57 = vld [vmem:[%s9917_s29 + $0x734] sm:$0xf] }
 0x152   : > { %v7841_v1 = vor.u32 %v9216_v51, %v7838_v52  ;;  %v8126_v8 = vld [vmem:[%s9917_s29 + $0x1000] sm:$0xf0] }
 0x153   : > { %4405 = vmatpush.bf16.msrb.mxu0 %v7789_v20  ;;  %4418 = vmatpush.bf16.msrb.mxu1 %v8173_v26  ;;  %v9048_v20 = vld [vmem:[%s9917_s29 + $0x854] sm:$0xf]  ;;  %v7166_v26 = vld [vmem:[%s9917_s29 + $0x880] sm:$0xf0]  ;;  %v8129_v36 = vor.u32 %v9288_v30, %v8126_v8  ;;  %v7556_v30 = vld [vmem:[%s9917_s29 + $0xb58] sm:$0xf] }
 0x154   : > { %4431 = vmatpush.bf16.msrb.mxu2 %v6257_v61  ;;  %4444 = vmatpush.bf16.msrb.mxu3 %v6641_v62  ;;  %v9144_v61 = vld [vmem:[%s9917_s29 + $0xb54] sm:$0xf]  ;;  %v7550_v62 = vld [vmem:[%s9917_s29 + $0xb80] sm:$0xf0]  ;;  %v7169_v22 = vor.u32 %v9048_v20, %v7166_v26  ;;  %v8177_v26 = vor.u32 %v9300_v9, %v8174_v13  ;;  %v7604_v9 = vld [vmem:[%s9917_s29 + $0xbb8] sm:$0xf] }
 0x155   : > { %v7553_v31 = vor.u32 %v9144_v61, %v7550_v62  ;;  %v9192_v61 = vld [vmem:[%s9917_s29 + $0xcd4] sm:$0xf]  ;;  %v8078_v44 = vld [vmem:[%s9917_s29 + $0xfa0] sm:$0xf0]  ;;  %v9163_v13 = vld [vmem:[%s9917_s29 + $0xbe4] sm:$0xf0] }
 0x156   : > { %v7745_v23 = vor.u32 %v9192_v61, %v7742_v29  ;;  %v7262_v51 = vld [vmem:[%s9917_s29 + $0x940] sm:$0xf0]  ;;  %v8959_v61 = vld [vmem:[%s9917_s29 + $0x584] sm:$0xf0] }
 0x157   : > { %4406 = vmatpush.bf16.msrb.mxu0 %v7741_v11  ;;  %4419 = vmatpush.bf16.msrb.mxu1 %v8125_v12  ;;  %v9132_v11 = vld [vmem:[%s9917_s29 + $0xaf4] sm:$0xf]  ;;  %v7502_v12 = vld [vmem:[%s9917_s29 + $0xb20] sm:$0xf0]  ;;  %v9055_v29 = vld [vmem:[%s9917_s29 + $0x884] sm:$0xf0] }
 0x158   : > { %4432 = vmatpush.bf16.msrb.mxu2 %v6209_v27  ;;  %4445 = vmatpush.bf16.msrb.mxu3 %v6593_v37  ;;  %v8270_v27 = vld [vmem:[%s9917_s29 + $0x1120] sm:$0xf0]  ;;  %v10633_v37 = vld [vmem:[#allocation1 + $0x24] sm:$0xff]  ;;  %v7505_v39 = vor.u32 %v9132_v11, %v7502_v12  ;;  %v9151_v8 = vld [vmem:[%s9917_s29 + $0xb84] sm:$0xf0] }
 0x15b   : > { %4407 = vmatpush.bf16.msrb.mxu0 %v7693_v41  ;;  %4420 = vmatpush.bf16.msrb.mxu1 %v8077_v49  ;;  %v8273_v41 = vor.u32 %v9324_v16, %v8270_v27  ;;  %v9120_v49 = vld [vmem:[%s9917_s29 + $0xa94] sm:$0xf]  ;;  %v7310_v27 = vld [vmem:[%s9917_s29 + $0x9a0] sm:$0xf0] }
 0x15c   : > { %4433 = vmatpush.bf16.msrb.mxu2 %v6161_v42  ;;  %4446 = vmatpush.bf16.msrb.mxu3 %v6545_v53  ;;  %v9312_v42 = vld [vmem:[%s9917_s29 + $0x1094] sm:$0xf]  ;;  %v8222_v53 = vld [vmem:[%s9917_s29 + $0x10c0] sm:$0xf0]  ;;  %v7457_v56 = vor.u32 %v9120_v49, %v7454_v50 }
 0x15d   : > { %v8225_v3 = vor.u32 %v9312_v42, %v8222_v53  ;;  %v9084_v16 = vld [vmem:[%s9917_s29 + $0x974] sm:$0xf]  ;;  %v6878_v49 = vld [vmem:[%s9917_s29 + $0x640] sm:$0xf0]  ;;  %v8081_v42 = vor.u32 %v9276_v40, %v8078_v44  ;;  %v6308_v40 = vld [vmem:[%s9917_s29 + $0x198] sm:$0xf] }
 0x15e   : > { %v9072_v50 = vld [vmem:[%s9917_s29 + $0x914] sm:$0xf]  ;;  %v8839_v44 = vld [vmem:[%s9917_s29 + $0x1c4] sm:$0xf0] }
 0x15f   : > { %4408 = vmatpush.bf16.msrb.mxu0 %v7645_v6  ;;  %4421 = vmatpush.bf16.msrb.mxu1 %v8029_v7  ;;  %v4202_v54 = vpop.f32.mrf.mxu0  ;;  %v4215_v0 = vpop.f32.mrf.mxu1  ;;  %v9204_v6 = vld [vmem:[%s9917_s29 + $0xd34] sm:$0xf]  ;;  %v7790_v7 = vld [vmem:[%s9917_s29 + $0xd60] sm:$0xf0] }
 0x160   : > { %4434 = vmatpush.bf16.msrb.mxu2 %v6113_v18  ;;  %4447 = vmatpush.bf16.msrb.mxu3 %v6497_v24  ;;  %v4203_v60 = vadd.f32 %v4202_v54, %v1121_v46  ;;  %v7025_v18 = vor.u32 %v9012_v57, %v7022_v58  ;;  %v7409_v24 = vor.u32 %v9108_v4, %v7406_v5  ;;  %v8976_v46 = vld [vmem:[%s9917_s29 + $0x614] sm:$0xf]  ;;  %v7646_v54 = vld [vmem:[%s9917_s29 + $0xc40] sm:$0xf0]  ;;  %v6452_v58 = vld [vmem:[%s9917_s29 + $0x2b8] sm:$0xf] }
 0x161   : > { %v7793_v20 = vor.u32 %v9204_v6, %v7790_v7  ;;  %v9168_v53 = vld [vmem:[%s9917_s29 + $0xc14] sm:$0xf]  ;;  %v8030_v57 = vld [vmem:[%s9917_s29 + $0xf40] sm:$0xf0]  ;;  %v7220_v4 = vld [vmem:[%s9917_s29 + $0x8b8] sm:$0xf]  ;;  %v6881_v5 = vor.u32 %v8976_v46, %v6878_v49  ;;  %v7265_v6 = vor.u32 %v9072_v50, %v7262_v51 }
 0x162   : > { %4409 = vmatmul.bf16.vlgmr.msrb.gmra.mxu0 %v10633_v37  ;;  %4422 = vmatmul.bf16.vlgmr.msrb.gmra.mxu1 %v10636_v38  ;;  %v4216_v14 = vadd.f32 %v4215_v0, %v4203_v60  ;;  %v8875_v60 = vld [vmem:[%s9917_s29 + $0x2e4] sm:$0xf0]  ;;  %v7076_v49 = vld [vmem:[%s9917_s29 + $0x798] sm:$0xf] }
 0x163   : > { %4453 = vmatpush.bf16.msra.mxu0 %v7217_v19  ;;  %4466 = vmatpush.bf16.msra.mxu1 %v7601_v25  ;;  %v9000_v19 = vld [vmem:[%s9917_s29 + $0x6d4] sm:$0xf]  ;;  %v6974_v25 = vld [vmem:[%s9917_s29 + $0x700] sm:$0xf0]  ;;  %v9067_v7 = vld [vmem:[%s9917_s29 + $0x8e4] sm:$0xf0] }
 0x164   : > { %4479 = vmatpush.bf16.msra.mxu2 %v7985_v21  ;;  %4492 = vmatpush.bf16.msra.mxu3 %v8369_v28  ;;  %v9096_v21 = vld [vmem:[%s9917_s29 + $0x9d4] sm:$0xf]  ;;  %v7358_v28 = vld [vmem:[%s9917_s29 + $0xa00] sm:$0xf0]  ;;  %v6977_v32 = vor.u32 %v9000_v19, %v6974_v25  ;;  %v6404_v25 = vld [vmem:[%s9917_s29 + $0x258] sm:$0xf] }
 0x165   : > { %4435 = vmatmul.bf16.vlgmr.msrb.gmra.mxu2 %v10560_v43  ;;  %4448 = vmatmul.bf16.vlgmr.msrb.gmra.mxu3 %v10564_v2  ;;  %v7361_v33 = vor.u32 %v9096_v21, %v7358_v28  ;;  %v7605_v21 = vor.u32 %v9163_v13, %v7604_v9  ;;  %v6788_v28 = vld [vmem:[%s9917_s29 + $0x558] sm:$0xf]  ;;  %v9031_v50 = vld [vmem:[%s9917_s29 + $0x7c4] sm:$0xf0] }
 0x166   : > { %v7460_v51 = vld [vmem:[%s9917_s29 + $0xa98] sm:$0xf] }
 0x167   : > { %4454 = vmatpush.bf16.msra.mxu0 %v7169_v22  ;;  %4467 = vmatpush.bf16.msra.mxu1 %v7553_v31  ;;  %v4204_v31 = vpop.f32.mrf.mxu0  ;;  %v4217_v12 = vpop.f32.mrf.mxu1 }
 0x168   : > { %4480 = vmatpush.bf16.msra.mxu2 %v7937_v34  ;;  %4493 = vmatpush.bf16.msra.mxu3 %v8321_v35  ;;  %v4228_v62 = vpop.f32.mrf.mxu2  ;;  %v4241_v22 = vpop.f32.mrf.mxu3  ;;  %v8988_v34 = vld [vmem:[%s9917_s29 + $0x674] sm:$0xf]  ;;  %v6926_v35 = vld [vmem:[%s9917_s29 + $0x6a0] sm:$0xf0]  ;;  %v6356_v31 = vld [vmem:[%s9917_s29 + $0x1f8] sm:$0xf] }
 0x169   : > { %v4229_v10 = vadd.f32 %v4228_v62, %v4216_v14  ;;  %v7649_v14 = vor.u32 %v9168_v53, %v7646_v54  ;;  %v7172_v62 = vld [vmem:[%s9917_s29 + $0x858] sm:$0xf]  ;;  %v8947_v12 = vld [vmem:[%s9917_s29 + $0x524] sm:$0xf0]  ;;  %v6309_v53 = vor.u32 %v8839_v44, %v6308_v40 }
 0x16b   : > { %4455 = vmatpush.bf16.msra.mxu0 %v7121_v63  ;;  %4468 = vmatpush.bf16.msra.mxu1 %v7505_v39  ;;  %v10668_v11 = vadd.f32 %v4241_v22, %v4229_v10  ;;  %v9180_v63 = vld [vmem:[%s9917_s29 + $0xc74] sm:$0xf]  ;;  %v7694_v39 = vld [vmem:[%s9917_s29 + $0xca0] sm:$0xf0]  ;;  %v6789_v22 = vor.u32 %v8959_v61, %v6788_v28  ;;  %v7364_v28 = vld [vmem:[%s9917_s29 + $0x9d8] sm:$0xf] }
 0x16c   : > { %4481 = vmatpush.bf16.msra.mxu2 %v7889_v47  ;;  %4494 = vmatpush.bf16.msra.mxu3 %v8273_v41  ;;  %v6929_v47 = vor.u32 %v8988_v34, %v6926_v35  ;;  %v7313_v41 = vor.u32 %v9084_v16, %v7310_v27  ;;  %v7697_v52 = vor.u32 %v9180_v63, %v7694_v39  ;;  %v6740_v35 = vld [vmem:[%s9917_s29 + $0x4f8] sm:$0xf]  ;;  %v9139_v27 = vld [vmem:[%s9917_s29 + $0xb24] sm:$0xf0] }
 0x16d   : > { %v7557_v34 = vor.u32 %v9151_v8, %v7556_v30  ;;  %v7508_v16 = vld [vmem:[%s9917_s29 + $0xaf8] sm:$0xf]  ;;  %v6741_v39 = vor.u32 %v8947_v12, %v6740_v35  ;;  %v9103_v61 = vld [vmem:[%s9917_s29 + $0xa04] sm:$0xf0] }
 0x16e   : > { %v6548_v35 = vld [vmem:[%s9917_s29 + $0x378] sm:$0xf]  ;;  %v8899_v12 = vld [vmem:[%s9917_s29 + $0x3a4] sm:$0xf0] }
 0x16f   : > { %4456 = vmatpush.bf16.msra.mxu0 %v7073_v55  ;;  %4469 = vmatpush.bf16.msra.mxu1 %v7457_v56  ;;  %v9264_v55 = vld [vmem:[%s9917_s29 + $0xf14] sm:$0xf]  ;;  %v6549_v44 = vor.u32 %v8899_v12, %v6548_v35  ;;  %v10782_v35 = vld [vmem:[#allocation1 + $0x12] sm:$0xff]  ;;  %v10786_v12 = vld [vmem:[#allocation1 + $0x1b] sm:$0xff] }
 0x170   : > { %4482 = vmatpush.bf16.msra.mxu2 %v7841_v1  ;;  %4495 = vmatpush.bf16.msra.mxu3 %v8225_v3  ;;  %v4230_v56 = vpop.f32.mrf.mxu2  ;;  %v4243_v0 = vpop.f32.mrf.mxu3  ;;  %v6836_v1 = vld [vmem:[%s9917_s29 + $0x5b8] sm:$0xf]  ;;  %v8971_v3 = vld [vmem:[%s9917_s29 + $0x5e4] sm:$0xf0] }
 0x171   : > { %v6837_v19 = vor.u32 %v8971_v3, %v6836_v1  ;;  %v8827_v56 = vld [vmem:[%s9917_s29 + $0x164] sm:$0xf0]  ;;  %v6644_v0 = vld [vmem:[%s9917_s29 + $0x438] sm:$0xf] }
 0x172   : > { %v8923_v1 = vld [vmem:[%s9917_s29 + $0x464] sm:$0xf0]  ;;  %v7028_v3 = vld [vmem:[%s9917_s29 + $0x738] sm:$0xf] }
 0x173   : > { %4457 = vmatpush.bf16.msra.mxu0 %v7025_v18  ;;  %4470 = vmatpush.bf16.msra.mxu1 %v7409_v24  ;;  %v8033_v18 = vor.u32 %v9264_v55, %v8030_v57  ;;  %v6453_v24 = vor.u32 %v8875_v60, %v6452_v58  ;;  %v6260_v55 = vld [vmem:[%s9917_s29 + $0x138] sm:$0xf]  ;;  %v7077_v58 = vor.u32 %v9031_v50, %v7076_v49 }
 0x174   : > { %4483 = vmatpush.bf16.msra.mxu2 %v7793_v20  ;;  %4496 = vmatpush.bf16.msra.mxu3 %v8177_v26  ;;  %v8863_v20 = vld [vmem:[%s9917_s29 + $0x284] sm:$0xf0]  ;;  %v7221_v26 = vor.u32 %v9067_v7, %v7220_v4  ;;  %v6261_v9 = vor.u32 %v8827_v56, %v6260_v55  ;;  %v6645_v13 = vor.u32 %v8923_v1, %v6644_v0  ;;  %v6884_v50 = vld [vmem:[%s9917_s29 + $0x618] sm:$0xf]  ;;  %v6454_v1 = vld [vmem:[%s9917_s29 + $0x2e8] sm:$0xf0] }
 0x175   : > { %v6405_v10 = vor.u32 %v8863_v20, %v6404_v25  ;;  %v9019_v4 = vld [vmem:[%s9917_s29 + $0x764] sm:$0xf0]  ;;  %v6596_v25 = vld [vmem:[%s9917_s29 + $0x3d8] sm:$0xf] }
 0x176   : > { %v8911_v20 = vld [vmem:[%s9917_s29 + $0x404] sm:$0xf0]  ;;  %v8372_v56 = vld [vmem:[%s9917_s29 + $0x11b8] sm:$0xf] }
 0x177   : > { %4458 = vmatpush.bf16.msra.mxu0 %v6977_v32  ;;  %4471 = vmatpush.bf16.msra.mxu1 %v7361_v33  ;;  %v8851_v32 = vld [vmem:[%s9917_s29 + $0x224] sm:$0xf0]  ;;  %v7173_v33 = vor.u32 %v9055_v29, %v7172_v62 }
 0x178   : > { %4484 = vmatpush.bf16.msra.mxu2 %v7745_v23  ;;  %4497 = vmatpush.bf16.msra.mxu3 %v8129_v36  ;;  %v7124_v23 = vld [vmem:[%s9917_s29 + $0x7f8] sm:$0xf]  ;;  %v9043_v36 = vld [vmem:[%s9917_s29 + $0x824] sm:$0xf0]  ;;  %v6357_v63 = vor.u32 %v8851_v32, %v6356_v31 }
 0x179   : > { %v7125_v46 = vor.u32 %v9043_v36, %v7124_v23  ;;  %v6164_v31 = vld [vmem:[%s9917_s29 + $0x78] sm:$0xf]  ;;  %v8803_v32 = vld [vmem:[%s9917_s29 + $0xa4] sm:$0xf0] }
 0x17a   : > { %v6932_v23 = vld [vmem:[%s9917_s29 + $0x678] sm:$0xf]  ;;  %v6165_v40 = vor.u32 %v8803_v32, %v6164_v31  ;;  %v8845_v31 = vld [vmem:[%s9917_s29 + $0x1fc] sm:$0xf]  ;;  %v6358_v32 = vld [vmem:[%s9917_s29 + $0x228] sm:$0xf0] }
 0x17b   : > { %4459 = vmatpush.bf16.msra.mxu0 %v6929_v47  ;;  %4472 = vmatpush.bf16.msra.mxu1 %v7313_v41  ;;  %v7509_v47 = vor.u32 %v9139_v27, %v7508_v16  ;;  %v8935_v41 = vld [vmem:[%s9917_s29 + $0x4c4] sm:$0xf0]  ;;  %v7316_v27 = vld [vmem:[%s9917_s29 + $0x978] sm:$0xf] }
 0x17c   : > { %4485 = vmatpush.bf16.msra.mxu2 %v7697_v52  ;;  %4498 = vmatpush.bf16.msra.mxu3 %v8081_v42  ;;  %v8995_v16 = vld [vmem:[%s9917_s29 + $0x6a4] sm:$0xf0] }
 0x17f   : > { %4460 = vmatpush.bf16.msra.mxu0 %v6881_v5  ;;  %4473 = vmatpush.bf16.msra.mxu1 %v7265_v6  ;;  %v4254_v52 = vpop.f32.mrf.mxu0  ;;  %v4267_v42 = vpop.f32.mrf.mxu1  ;;  %v7412_v5 = vld [vmem:[%s9917_s29 + $0xa38] sm:$0xf]  ;;  %v9115_v6 = vld [vmem:[%s9917_s29 + $0xa64] sm:$0xf0] }
 0x180   : > { %4486 = vmatpush.bf16.msra.mxu2 %v7649_v14  ;;  %4499 = vmatpush.bf16.msra.mxu3 %v8033_v18  ;;  %v4255_v57 = vadd.f32 %v4254_v52, %v10668_v11  ;;  %v1122_v11 = vperm.slane %v10470_v17, 3  ;;  %v6212_v14 = vld [vmem:[%s9917_s29 + $0xd8] sm:$0xf]  ;;  %v8815_v18 = vld [vmem:[%s9917_s29 + $0x104] sm:$0xf0] }
 0x181   : > { %v9079_v52 = vld [vmem:[%s9917_s29 + $0x944] sm:$0xf0] }
 0x182   : > { %4461 = vmatmul.bf16.vlgmr.msra.gmra.mxu0 %v10485_v45  ;;  %4474 = vmatmul.bf16.vlgmr.msra.gmra.mxu1 %v10489_v48  ;;  %v6692_v45 = vld [vmem:[%s9917_s29 + $0x498] sm:$0xf]  ;;  %v9127_v48 = vld [vmem:[%s9917_s29 + $0xac4] sm:$0xf0]  ;;  %v10729_v7 = vadd.f32 %v4267_v42, %v4255_v57 }
 0x183   : > { %4505 = vmatpush.bf16.msrb.mxu0 %v6453_v24  ;;  %4518 = vmatpush.bf16.msrb.mxu1 %v6837_v19  ;;  %v6693_v54 = vor.u32 %v8935_v41, %v6692_v45  ;;  %v7461_v60 = vor.u32 %v9127_v48, %v7460_v51  ;;  %v7029_v24 = vor.u32 %v9019_v4, %v7028_v3  ;;  %v8887_v45 = vld [vmem:[%s9917_s29 + $0x344] sm:$0xf0]  ;;  %v7268_v48 = vld [vmem:[%s9917_s29 + $0x918] sm:$0xf]  ;;  %v8965_v3 = vld [vmem:[%s9917_s29 + $0x5bc] sm:$0xf] }
 0x184   : > { %4531 = vmatpush.bf16.msrb.mxu2 %v7221_v26  ;;  %4544 = vmatpush.bf16.msrb.mxu3 %v7605_v21  ;;  %v7413_v19 = vor.u32 %v9115_v6, %v7412_v5  ;;  %v6980_v26 = vld [vmem:[%s9917_s29 + $0x6d8] sm:$0xf]  ;;  %v9007_v21 = vld [vmem:[%s9917_s29 + $0x704] sm:$0xf0]  ;;  %v6933_v41 = vor.u32 %v8995_v16, %v6932_v23  ;;  %v6838_v4 = vld [vmem:[%s9917_s29 + $0x5e8] sm:$0xf0]  ;;  %v7269_v6 = vor.u32 %v9079_v52, %v7268_v48  ;;  %9546 = vtanh.f32 %v10729_v7 }
 0x185   : > { %4487 = vmatmul.bf16.vlgmr.msra.gmra.mxu2 %v10633_v37  ;;  %4500 = vmatmul.bf16.vlgmr.msra.gmra.mxu3 %v10636_v38  ;;  %v8983_v51 = vld [vmem:[%s9917_s29 + $0x644] sm:$0xf0]  ;;  %v7988_v42 = vld [vmem:[%s9917_s29 + $0xeb8] sm:$0xf]  ;;  %v9374_v7 = vld [vmem:[%s11379_s6 + $0x80] sm:$0xff] }
 0x186   : > { %v9355_v57 = vld [vmem:[%s9917_s29 + $0x11e4] sm:$0xf0]  ;;  %v6885_v5 = vor.u32 %v8983_v51, %v6884_v50  ;;  %v7796_v51 = vld [vmem:[%s9917_s29 + $0xd38] sm:$0xf] }
 0x187   : > { %4506 = vmatpush.bf16.msrb.mxu0 %v6405_v10  ;;  %4519 = vmatpush.bf16.msrb.mxu1 %v6789_v22  ;;  %v4256_v30 = vpop.f32.mrf.mxu0  ;;  %v4269_v8 = vpop.f32.mrf.mxu1  ;;  %v6213_v10 = vor.u32 %v8815_v18, %v6212_v14  ;;  %v6597_v22 = vor.u32 %v8911_v20, %v6596_v25  ;;  %v9247_v14 = vld [vmem:[%s9917_s29 + $0xe84] sm:$0xf0]  ;;  %v8857_v20 = vld [vmem:[%s9917_s29 + $0x25c] sm:$0xf] }
 0x188   : > { %4532 = vmatpush.bf16.msrb.mxu2 %v7173_v33  ;;  %4545 = vmatpush.bf16.msrb.mxu3 %v7557_v34  ;;  %v4280_v17 = vpop.f32.mrf.mxu2  ;;  %v4293_v62 = vpop.f32.mrf.mxu3  ;;  %v6981_v33 = vor.u32 %v9007_v21, %v6980_v26  ;;  %v7365_v34 = vor.u32 %v9103_v61, %v7364_v28  ;;  %v9343_v25 = vld [vmem:[%s9917_s29 + $0x1184] sm:$0xf0]  ;;  %v6406_v26 = vld [vmem:[%s9917_s29 + $0x288] sm:$0xf0]  ;;  %v8953_v21 = vld [vmem:[%s9917_s29 + $0x55c] sm:$0xf] }
 0x189   : > { %v4281_v29 = vadd.f32 %v4280_v17, %v1122_v11  ;;  %v6790_v28 = vld [vmem:[%s9917_s29 + $0x588] sm:$0xf0]  ;;  %v6409_v30 = vor.u32 %v8857_v20, %v6406_v26  ;;  %v9211_v48 = vld [vmem:[%s9917_s29 + $0xd64] sm:$0xf0] }
 0x18a   : > { %v6793_v8 = vor.u32 %v8953_v21, %v6790_v28 }
 0x18b   : > { %4507 = vmatpush.bf16.msrb.mxu0 %v6357_v63  ;;  %4520 = vmatpush.bf16.msrb.mxu1 %v6741_v39  ;;  %v10745_v36 = vadd.f32 %v4293_v62, %v4281_v29  ;;  %v9091_v63 = vld [vmem:[%s9917_s29 + $0x9a4] sm:$0xf0]  ;;  %v6116_v39 = vld [vmem:[%s9917_s29 + $0x18] sm:$0xf] }
 0x18c   : > { %4533 = vmatpush.bf16.msrb.mxu2 %v7125_v46  ;;  %4546 = vmatpush.bf16.msrb.mxu3 %v7509_v47  ;;  %v8791_v46 = vld [vmem:[%s9917_s29 + $0x44] sm:$0xf0]  ;;  %v6500_v47 = vld [vmem:[%s9917_s29 + $0x318] sm:$0xf]  ;;  %v7317_v49 = vor.u32 %v9091_v63, %v7316_v27 }
 0x18d   : > { %v6501_v0 = vor.u32 %v8887_v45, %v6500_v47  ;;  %v7892_v62 = vld [vmem:[%s9917_s29 + $0xdf8] sm:$0xf]  ;;  %v9235_v29 = vld [vmem:[%s9917_s29 + $0xe24] sm:$0xf0]  ;;  %v6310_v47 = vld [vmem:[%s9917_s29 + $0x1c8] sm:$0xf0] }
 0x18e   : > { %v7893_v23 = vor.u32 %v9235_v29, %v7892_v62  ;;  %v7844_v27 = vld [vmem:[%s9917_s29 + $0xd98] sm:$0xf]  ;;  %v9223_v63 = vld [vmem:[%s9917_s29 + $0xdc4] sm:$0xf0]  ;;  %v8929_v45 = vld [vmem:[%s9917_s29 + $0x49c] sm:$0xf] }
 0x18f   : > { %4508 = vmatpush.bf16.msrb.mxu0 %v6309_v53  ;;  %4521 = vmatpush.bf16.msrb.mxu1 %v6693_v54  ;;  %v9259_v53 = vld [vmem:[%s9917_s29 + $0xee4] sm:$0xf0] }
 0x190   : > { %4534 = vmatpush.bf16.msrb.mxu2 %v7077_v58  ;;  %4547 = vmatpush.bf16.msrb.mxu3 %v7461_v60  ;;  %v4282_v54 = vpop.f32.mrf.mxu2  ;;  %v4295_v55 = vpop.f32.mrf.mxu3  ;;  %v8869_v58 = vld [vmem:[%s9917_s29 + $0x2bc] sm:$0xf]  ;;  %v6117_v60 = vor.u32 %v8791_v46, %v6116_v39  ;;  %v7989_v11 = vor.u32 %v9259_v53, %v7988_v42  ;;  %v9187_v62 = vld [vmem:[%s9917_s29 + $0xca4] sm:$0xf0] }
 0x191   : > { %v6457_v18 = vor.u32 %v8869_v58, %v6454_v1  ;;  %v8833_v46 = vld [vmem:[%s9917_s29 + $0x19c] sm:$0xf]  ;;  %v8180_v55 = vld [vmem:[%s9917_s29 + $0x1038] sm:$0xf]  ;;  %v6262_v58 = vld [vmem:[%s9917_s29 + $0x168] sm:$0xf0] }
 0x192   : > { %v6313_v53 = vor.u32 %v8833_v46, %v6310_v47  ;;  %v8785_v47 = vld [vmem:[%s9917_s29 + $0x1c] sm:$0xf] }
 0x193   : > { %4509 = vmatpush.bf16.msrb.mxu0 %v6261_v9  ;;  %4522 = vmatpush.bf16.msrb.mxu1 %v6645_v13  ;;  %v8373_v9 = vor.u32 %v9355_v57, %v8372_v56  ;;  %v7940_v13 = vld [vmem:[%s9917_s29 + $0xe58] sm:$0xf]  ;;  %v9307_v56 = vld [vmem:[%s9917_s29 + $0x1064] sm:$0xf0]  ;;  %v8821_v57 = vld [vmem:[%s9917_s29 + $0x13c] sm:$0xf] }
 0x194   : > { %4535 = vmatpush.bf16.msrb.mxu2 %v7029_v24  ;;  %4548 = vmatpush.bf16.msrb.mxu3 %v7413_v19  ;;  %v6841_v24 = vor.u32 %v8965_v3, %v6838_v4  ;;  %v8324_v19 = vld [vmem:[%s9917_s29 + $0x1158] sm:$0xf]  ;;  %v7941_v61 = vor.u32 %v9247_v14, %v7940_v13  ;;  %v8181_v3 = vor.u32 %v9307_v56, %v8180_v55  ;;  %v9295_v13 = vld [vmem:[%s9917_s29 + $0x1004] sm:$0xf0]  ;;  %v8809_v14 = vld [vmem:[%s9917_s29 + $0xdc] sm:$0xf] }
 0x195   : > { %v8325_v17 = vor.u32 %v9343_v25, %v8324_v19  ;;  %v7748_v4 = vld [vmem:[%s9917_s29 + $0xcd8] sm:$0xf]  ;;  %v8905_v19 = vld [vmem:[%s9917_s29 + $0x3dc] sm:$0xf]  ;;  %v6598_v25 = vld [vmem:[%s9917_s29 + $0x408] sm:$0xf0] }
 0x196   : > { %v7990_v56 = vld [vmem:[%s9917_s29 + $0xee8] sm:$0xf0] }
 0x197   : > { %4510 = vmatpush.bf16.msrb.mxu0 %v6213_v10  ;;  %4523 = vmatpush.bf16.msrb.mxu1 %v6597_v22  ;;  %v8276_v10 = vld [vmem:[%s9917_s29 + $0x10f8] sm:$0xf]  ;;  %v9331_v22 = vld [vmem:[%s9917_s29 + $0x1124] sm:$0xf0] }
 0x198   : > { %4536 = vmatpush.bf16.msrb.mxu2 %v6981_v33  ;;  %4549 = vmatpush.bf16.msrb.mxu3 %v7365_v34  ;;  %v8941_v33 = vld [vmem:[%s9917_s29 + $0x4fc] sm:$0xf]  ;;  %v6742_v34 = vld [vmem:[%s9917_s29 + $0x528] sm:$0xf0]  ;;  %v8277_v16 = vor.u32 %v9331_v22, %v8276_v10  ;;  %v6601_v10 = vor.u32 %v8905_v19, %v6598_v25  ;;  %v8084_v22 = vld [vmem:[%s9917_s29 + $0xf78] sm:$0xf] }
 0x199   : > { %v6745_v39 = vor.u32 %v8941_v33, %v6742_v34  ;;  %v6166_v33 = vld [vmem:[%s9917_s29 + $0xa8] sm:$0xf0]  ;;  %v8893_v34 = vld [vmem:[%s9917_s29 + $0x37c] sm:$0xf] }
 0x19b   : > { %4511 = vmatpush.bf16.msrb.mxu0 %v6165_v40  ;;  %4524 = vmatpush.bf16.msrb.mxu1 %v6549_v44  ;;  %v8228_v40 = vld [vmem:[%s9917_s29 + $0x1098] sm:$0xf]  ;;  %v9319_v44 = vld [vmem:[%s9917_s29 + $0x10c4] sm:$0xf0] }
 0x19c   : > { %4537 = vmatpush.bf16.msrb.mxu2 %v6933_v41  ;;  %4550 = vmatpush.bf16.msrb.mxu3 %v7317_v49  ;;  %v7845_v49 = vor.u32 %v9223_v63, %v7844_v27  ;;  %v8229_v50 = vor.u32 %v9319_v44, %v8228_v40  ;;  %v9271_v40 = vld [vmem:[%s9917_s29 + $0xf44] sm:$0xf0] }
 0x19f   : > { %4512 = vmatpush.bf16.msrb.mxu0 %v6117_v60  ;;  %4525 = vmatpush.bf16.msrb.mxu1 %v6501_v0  ;;  %v4306_v41 = vpop.f32.mrf.mxu0  ;;  %v4319_v42 = vpop.f32.mrf.mxu1  ;;  %v8917_v60 = vld [vmem:[%s9917_s29 + $0x43c] sm:$0xf]  ;;  %v6646_v0 = vld [vmem:[%s9917_s29 + $0x468] sm:$0xf0] }
 0x1a0   : > { %4538 = vmatpush.bf16.msrb.mxu2 %v6885_v5  ;;  %4551 = vmatpush.bf16.msrb.mxu3 %v7269_v6  ;;  %v4307_v52 = vadd.f32 %v4306_v41, %v10745_v36  ;;  %v7797_v36 = vor.u32 %v9211_v48, %v7796_v51  ;;  %v9199_v5 = vld [vmem:[%s9917_s29 + $0xd04] sm:$0xf0]  ;;  %v6265_v6 = vor.u32 %v8821_v57, %v6262_v58  ;;  %v7222_v51 = vld [vmem:[%s9917_s29 + $0x8e8] sm:$0xf0]  ;;  %v9349_v57 = vld [vmem:[%s9917_s29 + $0x11bc] sm:$0xf] }
 0x1a1   : > { %v7749_v28 = vor.u32 %v9199_v5, %v7748_v4  ;;  %v8374_v58 = vld [vmem:[%s9917_s29 + $0x11e8] sm:$0xf0] }
 0x1a2   : > { %4513 = vmatmul.bf16.vlgmr.msrb.gmra.mxu0 %v10560_v43  ;;  %4526 = vmatmul.bf16.vlgmr.msrb.gmra.mxu1 %v10564_v2  ;;  %v6361_v43 = vor.u32 %v8845_v31, %v6358_v32  ;;  %v6694_v2 = vld [vmem:[%s9917_s29 + $0x4c8] sm:$0xf0]  ;;  %v4320_v1 = vadd.f32 %v4319_v42, %v4307_v52  ;;  %v9283_v31 = vld [vmem:[%s9917_s29 + $0xfa4] sm:$0xf0]  ;;  %v8797_v32 = vld [vmem:[%s9917_s29 + $0x7c] sm:$0xf] }
 0x1a3   : > { %4557 = vmatpush.bf16.msra.mxu0 %v7989_v11  ;;  %4570 = vmatpush.bf16.msra.mxu1 %v8373_v9  ;;  %v6697_v54 = vor.u32 %v8929_v45, %v6694_v2  ;;  %v6649_v11 = vor.u32 %v8917_v60, %v6646_v0  ;;  %v8132_v9 = vld [vmem:[%s9917_s29 + $0xfd8] sm:$0xf]  ;;  %v8085_v63 = vor.u32 %v9283_v31, %v8084_v22  ;;  %v6118_v45 = vld [vmem:[%s9917_s29 + $0x48] sm:$0xf0]  ;;  %v8881_v2 = vld [vmem:[%s9917_s29 + $0x31c] sm:$0xf] }
 0x1a4   : > { %4583 = vmatpush.bf16.msra.mxu2 %v6457_v18  ;;  %4596 = vmatpush.bf16.msra.mxu3 %v6841_v24  ;;  %v6214_v24 = vld [vmem:[%s9917_s29 + $0x108] sm:$0xf0]  ;;  %v6169_v44 = vor.u32 %v8797_v32, %v6166_v33  ;;  %v9157_v52 = vld [vmem:[%s9917_s29 + $0xbbc] sm:$0xf]  ;;  %v6121_v60 = vor.u32 %v8785_v47, %v6118_v45  ;;  %v10859_v22 = vld [vmem:[#allocation1] sm:$0xff] }
 0x1a5   : > { %4539 = vmatmul.bf16.vlgmr.msrb.gmra.mxu2 %v10782_v35  ;;  %4552 = vmatmul.bf16.vlgmr.msrb.gmra.mxu3 %v10786_v12  ;;  %v7606_v42 = vld [vmem:[%s9917_s29 + $0xbe8] sm:$0xf0]  ;;  %v10862_v31 = vld [vmem:[#allocation1 + $0x9] sm:$0xff] }
 0x1a6   : > { %v7174_v4 = vld [vmem:[%s9917_s29 + $0x888] sm:$0xf0]  ;;  %v9025_v33 = vld [vmem:[%s9917_s29 + $0x79c] sm:$0xf] }
 0x1a7   : > { %4558 = vmatpush.bf16.msra.mxu0 %v7941_v61  ;;  %4571 = vmatpush.bf16.msra.mxu1 %v8325_v17  ;;  %v4308_v21 = vpop.f32.mrf.mxu0  ;;  %v8133_v61 = vor.u32 %v9295_v13, %v8132_v9  ;;  %v7700_v17 = vld [vmem:[%s9917_s29 + $0xc78] sm:$0xf]  ;;  %v7558_v9 = vld [vmem:[%s9917_s29 + $0xb88] sm:$0xf0]  ;;  %v9241_v13 = vld [vmem:[%s9917_s29 + $0xe5c] sm:$0xf] }
 0x1a8   : > { %4584 = vmatpush.bf16.msra.mxu2 %v6409_v30  ;;  %4597 = vmatpush.bf16.msra.mxu3 %v6793_v8  ;;  %v4332_v18 = vpop.f32.mrf.mxu2  ;;  %v4345_v26 = vpop.f32.mrf.mxu3  ;;  %v6217_v8 = vor.u32 %v8809_v14, %v6214_v24  ;;  %v7701_v27 = vor.u32 %v9187_v62, %v7700_v17  ;;  %v7942_v14 = vld [vmem:[%s9917_s29 + $0xe88] sm:$0xf0]  ;;  %v9229_v62 = vld [vmem:[%s9917_s29 + $0xdfc] sm:$0xf] }
 0x1a9   : > { %v4333_v20 = vadd.f32 %v4332_v18, %v4320_v1  ;;  %v4321_v30 = vpop.f32.mrf.mxu1  ;;  %v9337_v18 = vld [vmem:[%s9917_s29 + $0x115c] sm:$0xf]  ;;  %v8326_v24 = vld [vmem:[%s9917_s29 + $0x1188] sm:$0xf0]  ;;  %v7945_v21 = vor.u32 %v9241_v13, %v7942_v14 }
 0x1aa   : > { %v7510_v17 = vld [vmem:[%s9917_s29 + $0xb28] sm:$0xf0]  ;;  %v9289_v14 = vld [vmem:[%s9917_s29 + $0xfdc] sm:$0xf] }
 0x1ab   : > { %4559 = vmatpush.bf16.msra.mxu0 %v7893_v23  ;;  %4572 = vmatpush.bf16.msra.mxu1 %v8277_v16  ;;  %v10817_v29 = vadd.f32 %v4345_v26, %v4333_v20  ;;  %v6550_v23 = vld [vmem:[%s9917_s29 + $0x3a8] sm:$0xf0]  ;;  %v7652_v16 = vld [vmem:[%s9917_s29 + $0xc18] sm:$0xf]  ;;  %v9037_v20 = vld [vmem:[%s9917_s29 + $0x7fc] sm:$0xf] }
 0x1ac   : > { %4585 = vmatpush.bf16.msra.mxu2 %v6361_v43  ;;  %4598 = vmatpush.bf16.msra.mxu3 %v6745_v39  ;;  %v9175_v43 = vld [vmem:[%s9917_s29 + $0xc44] sm:$0xf0]  ;;  %v8036_v39 = vld [vmem:[%s9917_s29 + $0xf18] sm:$0xf]  ;;  %v6553_v46 = vor.u32 %v8893_v34, %v6550_v23  ;;  %v7126_v26 = vld [vmem:[%s9917_s29 + $0x828] sm:$0xf0] }
 0x1ad   : > { %v8037_v55 = vor.u32 %v9271_v40, %v8036_v39  ;;  %v7894_v30 = vld [vmem:[%s9917_s29 + $0xe28] sm:$0xf0]  ;;  %v7129_v32 = vor.u32 %v9037_v20, %v7126_v26  ;;  %v9217_v39 = vld [vmem:[%s9917_s29 + $0xd9c] sm:$0xf]  ;;  %9548 = vtanh.f32 %v10817_v29 }
 0x1ae   : > { %v10868_v34 = vld [vmem:[%s10467_s10] sm:$0xff] }
 0x1af   : > { %4560 = vmatpush.bf16.msra.mxu0 %v7845_v49  ;;  %4573 = vmatpush.bf16.msra.mxu1 %v8229_v50  ;;  %v6502_v49 = vld [vmem:[%s9917_s29 + $0x348] sm:$0xf0]  ;;  %v9061_v50 = vld [vmem:[%s9917_s29 + $0x8bc] sm:$0xf]  ;;  %v1123_v23 = vperm.slane %v10868_v34, 4 }
 0x1b0   : > { %4586 = vmatpush.bf16.msra.mxu2 %v6313_v53  ;;  %4599 = vmatpush.bf16.msra.mxu3 %v6697_v54  ;;  %v4334_v41 = vpop.f32.mrf.mxu2  ;;  %v4347_v48 = vpop.f32.mrf.mxu3  ;;  %v9253_v53 = vld [vmem:[%s9917_s29 + $0xebc] sm:$0xf]  ;;  %v7653_v54 = vor.u32 %v9175_v43, %v7652_v16  ;;  %v6505_v0 = vor.u32 %v8881_v2, %v6502_v49  ;;  %v7225_v1 = vor.u32 %v9061_v50, %v7222_v51  ;;  %v7462_v43 = vld [vmem:[%s9917_s29 + $0xac8] sm:$0xf0] }
 0x1b1   : > { %v7993_v5 = vor.u32 %v9253_v53, %v7990_v56  ;;  %v7897_v16 = vor.u32 %v9229_v62, %v7894_v30  ;;  %v7846_v40 = vld [vmem:[%s9917_s29 + $0xdc8] sm:$0xf0]  ;;  %v9013_v41 = vld [vmem:[%s9917_s29 + $0x73c] sm:$0xf] }
 0x1b2   : > { %v7030_v49 = vld [vmem:[%s9917_s29 + $0x768] sm:$0xf0]  ;;  %v7849_v48 = vor.u32 %v9217_v39, %v7846_v40  ;;  %v9301_v56 = vld [vmem:[%s9917_s29 + $0x103c] sm:$0xf] }
 0x1b3   : > { %4561 = vmatpush.bf16.msra.mxu0 %v7797_v36  ;;  %4574 = vmatpush.bf16.msra.mxu1 %v8181_v3  ;;  %v7609_v36 = vor.u32 %v9157_v52, %v7606_v42  ;;  %v9049_v3 = vld [vmem:[%s9917_s29 + $0x85c] sm:$0xf]  ;;  %v7414_v53 = vld [vmem:[%s9917_s29 + $0xa68] sm:$0xf0] }
 0x1b4   : > { %4587 = vmatpush.bf16.msra.mxu2 %v6265_v6  ;;  %4600 = vmatpush.bf16.msra.mxu3 %v6649_v11  ;;  %v8377_v6 = vor.u32 %v9349_v57, %v8374_v58  ;;  %v9145_v11 = vld [vmem:[%s9917_s29 + $0xb5c] sm:$0xf]  ;;  %v7177_v19 = vor.u32 %v9049_v3, %v7174_v4  ;;  %v8182_v57 = vld [vmem:[%s9917_s29 + $0x1068] sm:$0xf0] }
 0x1b5   : > { %v7561_v25 = vor.u32 %v9145_v11, %v7558_v9  ;;  %v9109_v42 = vld [vmem:[%s9917_s29 + $0xa3c] sm:$0xf]  ;;  %v8185_v4 = vor.u32 %v9301_v56, %v8182_v57  ;;  %v7750_v13 = vld [vmem:[%s9917_s29 + $0xd08] sm:$0xf0]  ;;  %v7612_v56 = vld [vmem:[%s9917_s29 + $0xbc0] sm:$0xf] }
 0x1b6   : > { %v9193_v11 = vld [vmem:[%s9917_s29 + $0xcdc] sm:$0xf]  ;;  %v7270_v39 = vld [vmem:[%s9917_s29 + $0x948] sm:$0xf0]  ;;  %v9164_v57 = vld [vmem:[%s9917_s29 + $0xbec] sm:$0xf0] }
 0x1b7   : > { %4562 = vmatpush.bf16.msra.mxu0 %v7749_v28  ;;  %4575 = vmatpush.bf16.msra.mxu1 %v8133_v61  ;;  %v8329_v28 = vor.u32 %v9337_v18, %v8326_v24  ;;  %v9133_v61 = vld [vmem:[%s9917_s29 + $0xafc] sm:$0xf]  ;;  %v8134_v18 = vld [vmem:[%s9917_s29 + $0x1008] sm:$0xf0]  ;;  %v7753_v62 = vor.u32 %v9193_v11, %v7750_v13  ;;  %v8960_v11 = vld [vmem:[%s9917_s29 + $0x58c] sm:$0xf0] }
 0x1b8   : > { %4588 = vmatpush.bf16.msra.mxu2 %v6217_v8  ;;  %4601 = vmatpush.bf16.msra.mxu3 %v6601_v10  ;;  %v9325_v8 = vld [vmem:[%s9917_s29 + $0x10fc] sm:$0xf]  ;;  %v8278_v10 = vld [vmem:[%s9917_s29 + $0x1128] sm:$0xf0]  ;;  %v8137_v30 = vor.u32 %v9289_v14, %v8134_v18  ;;  %v9056_v13 = vld [vmem:[%s9917_s29 + $0x88c] sm:$0xf0] }
 0x1b9   : > { %v7564_v14 = vld [vmem:[%s9917_s29 + $0xb60] sm:$0xf]  ;;  %v9152_v18 = vld [vmem:[%s9917_s29 + $0xb8c] sm:$0xf0]  ;;  %v9413_v29 = vld [vmem:[%s11379_s6 + $0x1b8] sm:$0xff] }
 0x1bb   : > { %4563 = vmatpush.bf16.msra.mxu0 %v7701_v27  ;;  %4576 = vmatpush.bf16.msra.mxu1 %v8085_v63  ;;  %v8281_v27 = vor.u32 %v9325_v8, %v8278_v10  ;;  %v9121_v63 = vld [vmem:[%s9917_s29 + $0xa9c] sm:$0xf]  ;;  %v7318_v10 = vld [vmem:[%s9917_s29 + $0x9a8] sm:$0xf0] }
 0x1bc   : > { %4589 = vmatpush.bf16.msra.mxu2 %v6169_v44  ;;  %4602 = vmatpush.bf16.msra.mxu3 %v6553_v46  ;;  %v9313_v44 = vld [vmem:[%s9917_s29 + $0x109c] sm:$0xf]  ;;  %v8230_v46 = vld [vmem:[%s9917_s29 + $0x10c8] sm:$0xf0]  ;;  %v7465_v2 = vor.u32 %v9121_v63, %v7462_v43 }
 0x1bd   : > { %v8233_v52 = vor.u32 %v9313_v44, %v8230_v46  ;;  %v9085_v8 = vld [vmem:[%s9917_s29 + $0x97c] sm:$0xf]  ;;  %v6886_v63 = vld [vmem:[%s9917_s29 + $0x648] sm:$0xf0] }
 0x1be   : > { %v9073_v43 = vld [vmem:[%s9917_s29 + $0x91c] sm:$0xf] }
 0x1bf   : > { %4564 = vmatpush.bf16.msra.mxu0 %v7653_v54  ;;  %4577 = vmatpush.bf16.msra.mxu1 %v8037_v55  ;;  %v4358_v47 = vpop.f32.mrf.mxu0  ;;  %v4371_v51 = vpop.f32.mrf.mxu1  ;;  %v9205_v54 = vld [vmem:[%s9917_s29 + $0xd3c] sm:$0xf]  ;;  %v7798_v55 = vld [vmem:[%s9917_s29 + $0xd68] sm:$0xf0] }
 0x1c0   : > { %4590 = vmatpush.bf16.msra.mxu2 %v6121_v60  ;;  %4603 = vmatpush.bf16.msra.mxu3 %v6505_v0  ;;  %v4359_v50 = vadd.f32 %v4358_v47, %v1123_v23  ;;  %v7033_v60 = vor.u32 %v9013_v41, %v7030_v49  ;;  %v7417_v0 = vor.u32 %v9109_v42, %v7414_v53  ;;  %v8977_v23 = vld [vmem:[%s9917_s29 + $0x61c] sm:$0xf]  ;;  %v7654_v47 = vld [vmem:[%s9917_s29 + $0xc48] sm:$0xf0]  ;;  %v6460_v49 = vld [vmem:[%s9917_s29 + $0x2c0] sm:$0xf] }
 0x1c1   : > { %v7801_v3 = vor.u32 %v9205_v54, %v7798_v55  ;;  %v9169_v46 = vld [vmem:[%s9917_s29 + $0xc1c] sm:$0xf]  ;;  %v8038_v41 = vld [vmem:[%s9917_s29 + $0xf48] sm:$0xf0]  ;;  %v7228_v42 = vld [vmem:[%s9917_s29 + $0x8c0] sm:$0xf]  ;;  %v6889_v53 = vor.u32 %v8977_v23, %v6886_v63  ;;  %v7273_v54 = vor.u32 %v9073_v43, %v7270_v39 }
 0x1c2   : > { %4565 = vmatmul.bf16.vlgmr.msra.gmra.mxu0 %v10633_v37  ;;  %4578 = vmatmul.bf16.vlgmr.msra.gmra.mxu1 %v10636_v38  ;;  %v7513_v37 = vor.u32 %v9133_v61, %v7510_v17  ;;  %v7078_v38 = vld [vmem:[%s9917_s29 + $0x7c8] sm:$0xf0]  ;;  %v4372_v58 = vadd.f32 %v4371_v51, %v4359_v50  ;;  %v8876_v50 = vld [vmem:[%s9917_s29 + $0x2ec] sm:$0xf0]  ;;  %v6316_v23 = vld [vmem:[%s9917_s29 + $0x1a0] sm:$0xf] }
 0x1c3   : > { %4609 = vmatpush.bf16.msrb.mxu0 %v7225_v1  ;;  %4622 = vmatpush.bf16.msrb.mxu1 %v7609_v36  ;;  %v7081_v45 = vor.u32 %v9025_v33, %v7078_v38  ;;  %v9001_v1 = vld [vmem:[%s9917_s29 + $0x6dc] sm:$0xf]  ;;  %v6982_v36 = vld [vmem:[%s9917_s29 + $0x708] sm:$0xf0]  ;;  %v9068_v55 = vld [vmem:[%s9917_s29 + $0x8ec] sm:$0xf0] }
 0x1c4   : > { %4635 = vmatpush.bf16.msrb.mxu2 %v7993_v5  ;;  %4648 = vmatpush.bf16.msrb.mxu3 %v8377_v6  ;;  %v9097_v5 = vld [vmem:[%s9917_s29 + $0x9dc] sm:$0xf]  ;;  %v7366_v6 = vld [vmem:[%s9917_s29 + $0xa08] sm:$0xf0]  ;;  %v6985_v20 = vor.u32 %v9001_v1, %v6982_v36  ;;  %v6412_v36 = vld [vmem:[%s9917_s29 + $0x260] sm:$0xf] }
 0x1c5   : > { %4591 = vmatmul.bf16.vlgmr.msra.gmra.mxu2 %v10859_v22  ;;  %4604 = vmatmul.bf16.vlgmr.msra.gmra.mxu3 %v10862_v31  ;;  %v7369_v26 = vor.u32 %v9097_v5, %v7366_v6  ;;  %v9277_v33 = vld [vmem:[%s9917_s29 + $0xf7c] sm:$0xf]  ;;  %v8086_v38 = vld [vmem:[%s9917_s29 + $0xfa8] sm:$0xf0]  ;;  %v7613_v5 = vor.u32 %v9164_v57, %v7612_v56  ;;  %v6796_v6 = vld [vmem:[%s9917_s29 + $0x560] sm:$0xf] }
 0x1c6   : > { %v8089_v44 = vor.u32 %v9277_v33, %v8086_v38  ;;  %v6700_v43 = vld [vmem:[%s9917_s29 + $0x4a0] sm:$0xf]  ;;  %v8936_v39 = vld [vmem:[%s9917_s29 + $0x4cc] sm:$0xf0] }
 0x1c7   : > { %4610 = vmatpush.bf16.msrb.mxu0 %v7177_v19  ;;  %4623 = vmatpush.bf16.msrb.mxu1 %v7561_v25  ;;  %v4360_v25 = vpop.f32.mrf.mxu0  ;;  %v4373_v17 = vpop.f32.mrf.mxu1  ;;  %v9020_v56 = vld [vmem:[%s9917_s29 + $0x76c] sm:$0xf0]  ;;  %v7420_v57 = vld [vmem:[%s9917_s29 + $0xa40] sm:$0xf] }
 0x1c8   : > { %4636 = vmatpush.bf16.msrb.mxu2 %v7945_v21  ;;  %4649 = vmatpush.bf16.msrb.mxu3 %v8329_v28  ;;  %v4384_v9 = vpop.f32.mrf.mxu2  ;;  %v4397_v19 = vpop.f32.mrf.mxu3  ;;  %v8989_v21 = vld [vmem:[%s9917_s29 + $0x67c] sm:$0xf]  ;;  %v6934_v28 = vld [vmem:[%s9917_s29 + $0x6a8] sm:$0xf0]  ;;  %v6364_v25 = vld [vmem:[%s9917_s29 + $0x200] sm:$0xf] }
 0x1c9   : > { %v4385_v24 = vadd.f32 %v4384_v9, %v4372_v58  ;;  %v7657_v58 = vor.u32 %v9169_v46, %v7654_v47  ;;  %v7180_v9 = vld [vmem:[%s9917_s29 + $0x860] sm:$0xf]  ;;  %v8948_v17 = vld [vmem:[%s9917_s29 + $0x52c] sm:$0xf0] }
 0x1ca   : > { %v7468_v46 = vld [vmem:[%s9917_s29 + $0xaa0] sm:$0xf]  ;;  %v9128_v47 = vld [vmem:[%s9917_s29 + $0xacc] sm:$0xf0] }
 0x1cb   : > { %4611 = vmatpush.bf16.msrb.mxu0 %v7129_v32  ;;  %4624 = vmatpush.bf16.msrb.mxu1 %v7513_v37  ;;  %v10895_v61 = vadd.f32 %v4397_v19, %v4385_v24  ;;  %v9181_v32 = vld [vmem:[%s9917_s29 + $0xc7c] sm:$0xf]  ;;  %v7702_v37 = vld [vmem:[%s9917_s29 + $0xca8] sm:$0xf0]  ;;  %v6797_v19 = vor.u32 %v8960_v11, %v6796_v6  ;;  %v6604_v6 = vld [vmem:[%s9917_s29 + $0x3e0] sm:$0xf] }
 0x1cc   : > { %4637 = vmatpush.bf16.msrb.mxu2 %v7897_v16  ;;  %4650 = vmatpush.bf16.msrb.mxu3 %v8281_v27  ;;  %v6937_v16 = vor.u32 %v8989_v21, %v6934_v28  ;;  %v7321_v27 = vor.u32 %v9085_v8, %v7318_v10  ;;  %v7705_v40 = vor.u32 %v9181_v32, %v7702_v37  ;;  %v6748_v28 = vld [vmem:[%s9917_s29 + $0x500] sm:$0xf]  ;;  %v9044_v8 = vld [vmem:[%s9917_s29 + $0x82c] sm:$0xf0] }
 0x1cd   : > { %v7565_v21 = vor.u32 %v9152_v18, %v7564_v14  ;;  %v7516_v10 = vld [vmem:[%s9917_s29 + $0xb00] sm:$0xf]  ;;  %v9140_v32 = vld [vmem:[%s9917_s29 + $0xb2c] sm:$0xf0]  ;;  %v6749_v38 = vor.u32 %v8948_v17, %v6748_v28 }
 0x1ce   : > { %v10939_v37 = vld [vmem:[#allocation1 + $0x2d] sm:$0xff]  ;;  %v7517_v63 = vor.u32 %v9140_v32, %v7516_v10  ;;  %v8912_v11 = vld [vmem:[%s9917_s29 + $0x40c] sm:$0xf0] }
 0x1cf   : > { %4612 = vmatpush.bf16.msrb.mxu0 %v7081_v45  ;;  %4625 = vmatpush.bf16.msrb.mxu1 %v7465_v2  ;;  %v9265_v45 = vld [vmem:[%s9917_s29 + $0xf1c] sm:$0xf]  ;;  %v7372_v14 = vld [vmem:[%s9917_s29 + $0x9e0] sm:$0xf]  ;;  %v9104_v18 = vld [vmem:[%s9917_s29 + $0xa0c] sm:$0xf0]  ;;  %v6605_v28 = vor.u32 %v8912_v11, %v6604_v6 }
 0x1d0   : > { %4638 = vmatpush.bf16.msrb.mxu2 %v7849_v48  ;;  %4651 = vmatpush.bf16.msrb.mxu3 %v8233_v52  ;;  %v4386_v2 = vpop.f32.mrf.mxu2  ;;  %v4399_v51 = vpop.f32.mrf.mxu3  ;;  %v6844_v48 = vld [vmem:[%s9917_s29 + $0x5c0] sm:$0xf]  ;;  %v8972_v52 = vld [vmem:[%s9917_s29 + $0x5ec] sm:$0xf0]  ;;  %v7373_v10 = vor.u32 %v9104_v18, %v7372_v14 }
 0x1d1   : > { %v6845_v1 = vor.u32 %v8972_v52, %v6844_v48  ;;  %v8828_v51 = vld [vmem:[%s9917_s29 + $0x16c] sm:$0xf0]  ;;  %v6172_v17 = vld [vmem:[%s9917_s29 + $0x80] sm:$0xf] }
 0x1d2   : > { %v6556_v32 = vld [vmem:[%s9917_s29 + $0x380] sm:$0xf]  ;;  %v9248_v11 = vld [vmem:[%s9917_s29 + $0xe8c] sm:$0xf0] }
 0x1d3   : > { %4613 = vmatpush.bf16.msrb.mxu0 %v7033_v60  ;;  %4626 = vmatpush.bf16.msrb.mxu1 %v7417_v0  ;;  %v8041_v60 = vor.u32 %v9265_v45, %v8038_v41  ;;  %v6461_v0 = vor.u32 %v8876_v50, %v6460_v49  ;;  %v6701_v49 = vor.u32 %v8936_v39, %v6700_v43  ;;  %v6268_v50 = vld [vmem:[%s9917_s29 + $0x140] sm:$0xf]  ;;  %v9344_v18 = vld [vmem:[%s9917_s29 + $0x118c] sm:$0xf0] }
 0x1d4   : > { %4639 = vmatpush.bf16.msrb.mxu2 %v7801_v3  ;;  %4652 = vmatpush.bf16.msrb.mxu3 %v8185_v4  ;;  %v8864_v3 = vld [vmem:[%s9917_s29 + $0x28c] sm:$0xf0]  ;;  %v7229_v4 = vor.u32 %v9068_v55, %v7228_v42  ;;  %v7469_v42 = vor.u32 %v9128_v47, %v7468_v46  ;;  %v7036_v55 = vld [vmem:[%s9917_s29 + $0x740] sm:$0xf] }
 0x1d5   : > { %v6413_v24 = vor.u32 %v8864_v3, %v6412_v36  ;;  %v6220_v36 = vld [vmem:[%s9917_s29 + $0xe0] sm:$0xf]  ;;  %v8816_v3 = vld [vmem:[%s9917_s29 + $0x10c] sm:$0xf0] }
 0x1d6   : > { %v6124_v43 = vld [vmem:[%s9917_s29 + $0x20] sm:$0xf]  ;;  %v8888_v47 = vld [vmem:[%s9917_s29 + $0x34c] sm:$0xf0] }
 0x1d7   : > { %4614 = vmatpush.bf16.msrb.mxu0 %v6985_v20  ;;  %4627 = vmatpush.bf16.msrb.mxu1 %v7369_v26  ;;  %v8852_v20 = vld [vmem:[%s9917_s29 + $0x22c] sm:$0xf0]  ;;  %v7181_v26 = vor.u32 %v9056_v13, %v7180_v9  ;;  %v6988_v9 = vld [vmem:[%s9917_s29 + $0x6e0] sm:$0xf] }
 0x1d8   : > { %4640 = vmatpush.bf16.msrb.mxu2 %v7753_v62  ;;  %4653 = vmatpush.bf16.msrb.mxu3 %v8137_v30  ;;  %v7132_v62 = vld [vmem:[%s9917_s29 + $0x800] sm:$0xf]  ;;  %v10932_v30 = vld [vmem:[#allocation1 + $0x24] sm:$0xff]  ;;  %v6365_v33 = vor.u32 %v8852_v20, %v6364_v25  ;;  %v9008_v13 = vld [vmem:[%s9917_s29 + $0x70c] sm:$0xf0] }
 0x1d9   : > { %v6508_v46 = vld [vmem:[%s9917_s29 + $0x320] sm:$0xf] }
 0x1da   : > { %v7948_v6 = vld [vmem:[%s9917_s29 + $0xe60] sm:$0xf] }
 0x1db   : > { %4615 = vmatpush.bf16.msrb.mxu0 %v6937_v16  ;;  %4628 = vmatpush.bf16.msrb.mxu1 %v7321_v27  ;;  %v8840_v16 = vld [vmem:[%s9917_s29 + $0x1cc] sm:$0xf0]  ;;  %v7133_v27 = vor.u32 %v9044_v8, %v7132_v62  ;;  %v6989_v8 = vor.u32 %v9008_v13, %v6988_v9  ;;  %v8332_v14 = vld [vmem:[%s9917_s29 + $0x1160] sm:$0xf] }
 0x1dc   : > { %4641 = vmatpush.bf16.msrb.mxu2 %v7705_v40  ;;  %4654 = vmatpush.bf16.msrb.mxu3 %v8089_v44  ;;  %v7084_v40 = vld [vmem:[%s9917_s29 + $0x7a0] sm:$0xf]  ;;  %v9032_v44 = vld [vmem:[%s9917_s29 + $0x7cc] sm:$0xf0]  ;;  %v6317_v41 = vor.u32 %v8840_v16, %v6316_v23 }
 0x1dd   : > { %v7085_v52 = vor.u32 %v9032_v44, %v7084_v40  ;;  %v8804_v62 = vld [vmem:[%s9917_s29 + $0xac] sm:$0xf0] }
 0x1de   : > { %v8996_v16 = vld [vmem:[%s9917_s29 + $0x6ac] sm:$0xf0]  ;;  %v6173_v39 = vor.u32 %v8804_v62, %v6172_v17 }
 0x1df   : > { %4616 = vmatpush.bf16.msrb.mxu0 %v6889_v53  ;;  %4629 = vmatpush.bf16.msrb.mxu1 %v7273_v54  ;;  %v4410_v45 = vpop.f32.mrf.mxu0  ;;  %v4423_v2 = vpop.f32.mrf.mxu1  ;;  %v6652_v53 = vld [vmem:[%s9917_s29 + $0x440] sm:$0xf]  ;;  %v8924_v54 = vld [vmem:[%s9917_s29 + $0x46c] sm:$0xf0] }
 0x1e0   : > { %4642 = vmatpush.bf16.msrb.mxu2 %v7657_v58  ;;  %4655 = vmatpush.bf16.msrb.mxu3 %v8041_v60  ;;  %v4411_v48 = vadd.f32 %v4410_v45, %v10895_v61  ;;  %v9116_v58 = vld [vmem:[%s9917_s29 + $0xa6c] sm:$0xf0]  ;;  %v1124_v61 = vperm.slane %v10868_v34, 5 }
 0x1e1   : > { %v8792_v44 = vld [vmem:[%s9917_s29 + $0x4c] sm:$0xf0] }
 0x1e2   : > { %4617 = vmatmul.bf16.vlgmr.msrb.gmra.mxu0 %v10782_v35  ;;  %4630 = vmatmul.bf16.vlgmr.msrb.gmra.mxu1 %v10786_v12  ;;  %v10960_v60 = vadd.f32 %v4423_v2, %v4411_v48  ;;  %v7996_v48 = vld [vmem:[%s9917_s29 + $0xec0] sm:$0xf]  ;;  %v9236_v17 = vld [vmem:[%s9917_s29 + $0xe2c] sm:$0xf0] }
 0x1e3   : > { %4661 = vmatpush.bf16.msra.mxu0 %v6461_v0  ;;  %4674 = vmatpush.bf16.msra.mxu1 %v6845_v1  ;;  %v6269_v0 = vor.u32 %v8828_v51, %v6268_v50  ;;  %v6653_v1 = vor.u32 %v8924_v54, %v6652_v53  ;;  %v7276_v50 = vld [vmem:[%s9917_s29 + $0x920] sm:$0xf]  ;;  %v9080_v51 = vld [vmem:[%s9917_s29 + $0x94c] sm:$0xf0] }
 0x1e4   : > { %4687 = vmatpush.bf16.msra.mxu2 %v7229_v4  ;;  %4700 = vmatpush.bf16.msra.mxu3 %v7613_v5  ;;  %v7037_v4 = vor.u32 %v9020_v56, %v7036_v55  ;;  %v7421_v5 = vor.u32 %v9116_v58, %v7420_v57  ;;  %v8380_v54 = vld [vmem:[%s9917_s29 + $0x11c0] sm:$0xf]  ;;  %v9356_v55 = vld [vmem:[%s9917_s29 + $0x11ec] sm:$0xf0]  ;;  %v8870_v56 = vld [vmem:[%s9917_s29 + $0x2c4] sm:$0xf]  ;;  %v6125_v57 = vor.u32 %v8792_v44, %v6124_v43  ;;  %9550 = vtanh.f32 %v10960_v60 }
 0x1e5   : > { %4643 = vmatmul.bf16.vlgmr.msrb.gmra.mxu2 %v10932_v30  ;;  %4656 = vmatmul.bf16.vlgmr.msrb.gmra.mxu3 %v10939_v37  ;;  %v6509_v58 = vor.u32 %v8888_v47, %v6508_v46  ;;  %v8236_v46 = vld [vmem:[%s9917_s29 + $0x10a0] sm:$0xf]  ;;  %v9320_v47 = vld [vmem:[%s9917_s29 + $0x10cc] sm:$0xf0] }
 0x1e7   : > { %4662 = vmatpush.bf16.msra.mxu0 %v6413_v24  ;;  %4675 = vmatpush.bf16.msra.mxu1 %v6797_v19  ;;  %v4412_v20 = vpop.f32.mrf.mxu0 }
 0x1e8   : > { %4688 = vmatpush.bf16.msra.mxu2 %v7181_v26  ;;  %4701 = vmatpush.bf16.msra.mxu3 %v7565_v21  ;;  %v4436_v24 = vpop.f32.mrf.mxu2  ;;  %v4449_v19 = vpop.f32.mrf.mxu3  ;;  %v6221_v21 = vor.u32 %v8816_v3, %v6220_v36  ;;  %v7277_v3 = vor.u32 %v9080_v51, %v7276_v50  ;;  %v6798_v20 = vld [vmem:[%s9917_s29 + $0x590] sm:$0xf0]  ;;  %v8237_v51 = vor.u32 %v9320_v47, %v8236_v46  ;;  %v9176_v47 = vld [vmem:[%s9917_s29 + $0xc4c] sm:$0xf0] }
 0x1e9   : > { %v4437_v25 = vadd.f32 %v4436_v24, %v1124_v61  ;;  %v4425_v26 = vpop.f32.mrf.mxu1  ;;  %v6462_v61 = vld [vmem:[%s9917_s29 + $0x2f0] sm:$0xf0]  ;;  %v8858_v24 = vld [vmem:[%s9917_s29 + $0x264] sm:$0xf] }
 0x1ea   : > { %v6465_v9 = vor.u32 %v8870_v56, %v6462_v61  ;;  %v7949_v26 = vor.u32 %v9248_v11, %v7948_v6  ;;  %v8188_v56 = vld [vmem:[%s9917_s29 + $0x1040] sm:$0xf]  ;;  %v6270_v61 = vld [vmem:[%s9917_s29 + $0x170] sm:$0xf0] }
 0x1eb   : > { %4663 = vmatpush.bf16.msra.mxu0 %v6365_v33  ;;  %4676 = vmatpush.bf16.msra.mxu1 %v6749_v38  ;;  %v8900_v33 = vld [vmem:[%s9917_s29 + $0x3ac] sm:$0xf0]  ;;  %v6940_v38 = vld [vmem:[%s9917_s29 + $0x680] sm:$0xf]  ;;  %v10976_v23 = vadd.f32 %v4449_v19, %v4437_v25  ;;  %v6414_v19 = vld [vmem:[%s9917_s29 + $0x290] sm:$0xf0] }
 0x1ec   : > { %4689 = vmatpush.bf16.msra.mxu2 %v7133_v27  ;;  %4702 = vmatpush.bf16.msra.mxu3 %v7517_v63  ;;  %v7324_v27 = vld [vmem:[%s9917_s29 + $0x980] sm:$0xf]  ;;  %v9092_v63 = vld [vmem:[%s9917_s29 + $0x9ac] sm:$0xf0]  ;;  %v6557_v40 = vor.u32 %v8900_v33, %v6556_v32  ;;  %v6941_v45 = vor.u32 %v8996_v16, %v6940_v38  ;;  %v8954_v25 = vld [vmem:[%s9917_s29 + $0x564] sm:$0xf]  ;;  %v6417_v62 = vor.u32 %v8858_v24, %v6414_v19 }
 0x1ed   : > { %v7325_v2 = vor.u32 %v9092_v63, %v7324_v27  ;;  %v9332_v32 = vld [vmem:[%s9917_s29 + $0x112c] sm:$0xf0]  ;;  %v8846_v33 = vld [vmem:[%s9917_s29 + $0x204] sm:$0xf]  ;;  %v6366_v38 = vld [vmem:[%s9917_s29 + $0x230] sm:$0xf0] }
 0x1ee   : > { %v8942_v16 = vld [vmem:[%s9917_s29 + $0x504] sm:$0xf]  ;;  %v6750_v27 = vld [vmem:[%s9917_s29 + $0x530] sm:$0xf0] }
 0x1ef   : > { %4664 = vmatpush.bf16.msra.mxu0 %v6317_v41  ;;  %4677 = vmatpush.bf16.msra.mxu1 %v6701_v49  ;;  %v6892_v41 = vld [vmem:[%s9917_s29 + $0x620] sm:$0xf]  ;;  %v8984_v49 = vld [vmem:[%s9917_s29 + $0x64c] sm:$0xf0]  ;;  %v6753_v44 = vor.u32 %v8942_v16, %v6750_v27  ;;  %v6222_v24 = vld [vmem:[%s9917_s29 + $0x110] sm:$0xf0] }
 0x1f0   : > { %4690 = vmatpush.bf16.msra.mxu2 %v7085_v52  ;;  %4703 = vmatpush.bf16.msra.mxu3 %v7469_v42  ;;  %v9260_v52 = vld [vmem:[%s9917_s29 + $0xeec] sm:$0xf0]  ;;  %v4438_v42 = vpop.f32.mrf.mxu2  ;;  %v4451_v53 = vpop.f32.mrf.mxu3  ;;  %v6893_v36 = vor.u32 %v8984_v49, %v6892_v41  ;;  %v6702_v41 = vld [vmem:[%s9917_s29 + $0x4d0] sm:$0xf0]  ;;  %v8906_v19 = vld [vmem:[%s9917_s29 + $0x3e4] sm:$0xf] }
 0x1f1   : > { %v8092_v16 = vld [vmem:[%s9917_s29 + $0xf80] sm:$0xf]  ;;  %v9284_v27 = vld [vmem:[%s9917_s29 + $0xfac] sm:$0xf0] }
 0x1f2   : > { %v8093_v46 = vor.u32 %v9284_v27, %v8092_v16  ;;  %v7902_v16 = vld [vmem:[%s9917_s29 + $0xe30] sm:$0xf0]  ;;  %v9326_v27 = vld [vmem:[%s9917_s29 + $0x1104] sm:$0xf] }
 0x1f3   : > { %4665 = vmatpush.bf16.msra.mxu0 %v6269_v0  ;;  %4678 = vmatpush.bf16.msra.mxu1 %v6653_v1  ;;  %v8966_v0 = vld [vmem:[%s9917_s29 + $0x5c4] sm:$0xf]  ;;  %v6846_v1 = vld [vmem:[%s9917_s29 + $0x5f0] sm:$0xf0] }
 0x1f4   : > { %4691 = vmatpush.bf16.msra.mxu2 %v7037_v4  ;;  %4704 = vmatpush.bf16.msra.mxu3 %v7421_v5  ;;  %v7997_v4 = vor.u32 %v9260_v52, %v7996_v48  ;;  %v8381_v5 = vor.u32 %v9356_v55, %v8380_v54  ;;  %v6849_v13 = vor.u32 %v8966_v0, %v6846_v1  ;;  %v7804_v48 = vld [vmem:[%s9917_s29 + $0xd40] sm:$0xf]  ;;  %v9212_v52 = vld [vmem:[%s9917_s29 + $0xd6c] sm:$0xf0]  ;;  %v8918_v0 = vld [vmem:[%s9917_s29 + $0x444] sm:$0xf] }
 0x1f5   : > { %v6654_v1 = vld [vmem:[%s9917_s29 + $0x470] sm:$0xf0] }
 0x1f6   : > { %v6657_v11 = vor.u32 %v8918_v0, %v6654_v1  ;;  %v7998_v0 = vld [vmem:[%s9917_s29 + $0xef0] sm:$0xf0]  ;;  %v9350_v1 = vld [vmem:[%s9917_s29 + $0x11c4] sm:$0xf] }
 0x1f7   : > { %4666 = vmatpush.bf16.msra.mxu0 %v6221_v21  ;;  %4679 = vmatpush.bf16.msra.mxu1 %v6605_v28  ;;  %v8333_v21 = vor.u32 %v9344_v18, %v8332_v14  ;;  %v7900_v28 = vld [vmem:[%s9917_s29 + $0xe00] sm:$0xf]  ;;  %v8810_v14 = vld [vmem:[%s9917_s29 + $0xe4] sm:$0xf] }
 0x1f8   : > { %4692 = vmatpush.bf16.msra.mxu2 %v6989_v8  ;;  %4705 = vmatpush.bf16.msra.mxu3 %v7373_v10  ;;  %v6801_v8 = vor.u32 %v8954_v25, %v6798_v20  ;;  %v8284_v10 = vld [vmem:[%s9917_s29 + $0x1100] sm:$0xf]  ;;  %v7901_v63 = vor.u32 %v9236_v17, %v7900_v28  ;;  %v6606_v25 = vld [vmem:[%s9917_s29 + $0x410] sm:$0xf0] }
 0x1f9   : > { %v8285_v43 = vor.u32 %v9332_v32, %v8284_v10 }
 0x1fb   : > { %4667 = vmatpush.bf16.msra.mxu0 %v6173_v39  ;;  %4680 = vmatpush.bf16.msra.mxu1 %v6557_v40  ;;  %v7852_v39 = vld [vmem:[%s9917_s29 + $0xda0] sm:$0xf]  ;;  %v9224_v40 = vld [vmem:[%s9917_s29 + $0xdcc] sm:$0xf0] }
 0x1fc   : > { %4693 = vmatpush.bf16.msra.mxu2 %v6941_v45  ;;  %4706 = vmatpush.bf16.msra.mxu3 %v7325_v2  ;;  %v8834_v45 = vld [vmem:[%s9917_s29 + $0x1a4] sm:$0xf]  ;;  %v7853_v50 = vor.u32 %v9224_v40, %v7852_v39  ;;  %v6558_v40 = vld [vmem:[%s9917_s29 + $0x3b0] sm:$0xf0] }
 0x1fd   : > { %v8930_v2 = vld [vmem:[%s9917_s29 + $0x4a4] sm:$0xf] }
 0x1fe   : > { %v6705_v55 = vor.u32 %v8930_v2, %v6702_v41  ;;  %v8894_v39 = vld [vmem:[%s9917_s29 + $0x384] sm:$0xf] }
 0x1ff   : > { %4668 = vmatpush.bf16.msra.mxu0 %v6125_v57  ;;  %4681 = vmatpush.bf16.msra.mxu1 %v6509_v58  ;;  %v4462_v49 = vpop.f32.mrf.mxu0  ;;  %v4475_v53 = vpop.f32.mrf.mxu1  ;;  %v9308_v57 = vld [vmem:[%s9917_s29 + $0x106c] sm:$0xf0]  ;;  %v8822_v58 = vld [vmem:[%s9917_s29 + $0x144] sm:$0xf]  ;;  %v6561_v41 = vor.u32 %v8894_v39, %v6558_v40 }
 0x200   : > { %4694 = vmatpush.bf16.msra.mxu2 %v6893_v36  ;;  %4707 = vmatpush.bf16.msra.mxu3 %v7277_v3  ;;  %v4463_v42 = vadd.f32 %v4462_v49, %v10976_v23  ;;  %v7805_v23 = vor.u32 %v9212_v52, %v7804_v48  ;;  %v8189_v3 = vor.u32 %v9308_v57, %v8188_v56  ;;  %v8786_v49 = vld [vmem:[%s9917_s29 + $0x24] sm:$0xf]  ;;  %v6510_v52 = vld [vmem:[%s9917_s29 + $0x350] sm:$0xf0] }
 0x201   : > { %v6273_v6 = vor.u32 %v8822_v58, %v6270_v61  ;;  %v7614_v56 = vld [vmem:[%s9917_s29 + $0xbf0] sm:$0xf0]  ;;  %v9254_v57 = vld [vmem:[%s9917_s29 + $0xec4] sm:$0xf] }
 0x202   : > { %4669 = vmatmul.bf16.vlgmr.msra.gmra.mxu0 %v10859_v22  ;;  %4682 = vmatmul.bf16.vlgmr.msra.gmra.mxu1 %v10862_v31  ;;  %v4476_v36 = vadd.f32 %v4475_v53, %v4463_v42  ;;  %v9062_v42 = vld [vmem:[%s9917_s29 + $0x8c4] sm:$0xf]  ;;  %v7230_v53 = vld [vmem:[%s9917_s29 + $0x8f0] sm:$0xf0] }
 0x203   : > { %4713 = vmatpush.bf16.msrb.mxu0 %v7997_v4  ;;  %4726 = vmatpush.bf16.msrb.mxu1 %v8381_v5  ;;  %v7756_v4 = vld [vmem:[%s9917_s29 + $0xce0] sm:$0xf]  ;;  %v9200_v5 = vld [vmem:[%s9917_s29 + $0xd0c] sm:$0xf0]  ;;  %v9026_v40 = vld [vmem:[%s9917_s29 + $0x7a4] sm:$0xf] }
 0x204   : > { %4739 = vmatpush.bf16.msrb.mxu2 %v6465_v9  ;;  %4752 = vmatpush.bf16.msrb.mxu3 %v6849_v13  ;;  %v8140_v9 = vld [vmem:[%s9917_s29 + $0xfe0] sm:$0xf]  ;;  %v9296_v13 = vld [vmem:[%s9917_s29 + $0x100c] sm:$0xf0]  ;;  %v7757_v28 = vor.u32 %v9200_v5, %v7756_v4  ;;  %v7233_v4 = vor.u32 %v9062_v42, %v7230_v53 }
 0x205   : > { %4695 = vmatmul.bf16.vlgmr.msra.gmra.mxu2 %v10782_v35  ;;  %4708 = vmatmul.bf16.vlgmr.msra.gmra.mxu3 %v10786_v12  ;;  %v6369_v35 = vor.u32 %v8846_v33, %v6366_v38  ;;  %v6318_v12 = vld [vmem:[%s9917_s29 + $0x1d0] sm:$0xf0]  ;;  %v8141_v17 = vor.u32 %v9296_v13, %v8140_v9  ;;  %v6225_v33 = vor.u32 %v8810_v14, %v6222_v24  ;;  %v9146_v14 = vld [vmem:[%s9917_s29 + $0xb64] sm:$0xf] }
 0x206   : > { %v6321_v54 = vor.u32 %v8834_v45, %v6318_v12  ;;  %v6609_v38 = vor.u32 %v8906_v19, %v6606_v25  ;;  %v8044_v45 = vld [vmem:[%s9917_s29 + $0xf20] sm:$0xf]  ;;  %v9272_v12 = vld [vmem:[%s9917_s29 + $0xf4c] sm:$0xf0]  ;;  %v8001_v9 = vor.u32 %v9254_v57, %v7998_v0  ;;  %v9242_v24 = vld [vmem:[%s9917_s29 + $0xe64] sm:$0xf] }
 0x207   : > { %4714 = vmatpush.bf16.msrb.mxu0 %v7949_v26  ;;  %4727 = vmatpush.bf16.msrb.mxu1 %v8333_v21  ;;  %v4464_v21 = vpop.f32.mrf.mxu0  ;;  %v4477_v32 = vpop.f32.mrf.mxu1  ;;  %v8045_v61 = vor.u32 %v9272_v12, %v8044_v45  ;;  %v7950_v19 = vld [vmem:[%s9917_s29 + $0xe90] sm:$0xf0]  ;;  %v9338_v25 = vld [vmem:[%s9917_s29 + $0x1164] sm:$0xf] }
 0x208   : > { %4740 = vmatpush.bf16.msrb.mxu2 %v6417_v62  ;;  %4753 = vmatpush.bf16.msrb.mxu3 %v6801_v8  ;;  %v4488_v18 = vpop.f32.mrf.mxu2  ;;  %v4501_v26 = vpop.f32.mrf.mxu3  ;;  %v7708_v62 = vld [vmem:[%s9917_s29 + $0xc80] sm:$0xf]  ;;  %v9188_v8 = vld [vmem:[%s9917_s29 + $0xcac] sm:$0xf0]  ;;  %v9134_v32 = vld [vmem:[%s9917_s29 + $0xb04] sm:$0xf] }
 0x209   : > { %v4489_v20 = vadd.f32 %v4488_v18, %v4476_v36  ;;  %v8382_v36 = vld [vmem:[%s9917_s29 + $0x11f0] sm:$0xf0]  ;;  %v9218_v12 = vld [vmem:[%s9917_s29 + $0xda4] sm:$0xf] }
 0x20a   : > { %v8385_v13 = vor.u32 %v9350_v1, %v8382_v36  ;;  %v7566_v18 = vld [vmem:[%s9917_s29 + $0xb90] sm:$0xf0]  ;;  %v9206_v57 = vld [vmem:[%s9917_s29 + $0xd44] sm:$0xf] }
 0x20b   : > { %4715 = vmatpush.bf16.msrb.mxu0 %v7901_v63  ;;  %4728 = vmatpush.bf16.msrb.mxu1 %v8285_v43  ;;  %v11044_v10 = vadd.f32 %v4501_v26, %v4489_v20  ;;  %v8798_v63 = vld [vmem:[%s9917_s29 + $0x84] sm:$0xf]  ;;  %v6174_v43 = vld [vmem:[%s9917_s29 + $0xb0] sm:$0xf0]  ;;  %v7569_v21 = vor.u32 %v9146_v14, %v7566_v18 }
 0x20c   : > { %4741 = vmatpush.bf16.msrb.mxu2 %v6369_v35  ;;  %4754 = vmatpush.bf16.msrb.mxu3 %v6753_v44  ;;  %v7660_v35 = vld [vmem:[%s9917_s29 + $0xc20] sm:$0xf]  ;;  %v7709_v44 = vor.u32 %v9188_v8, %v7708_v62  ;;  %v6177_v2 = vor.u32 %v8798_v63, %v6174_v43  ;;  %v8334_v20 = vld [vmem:[%s9917_s29 + $0x1190] sm:$0xf0]  ;;  %v7953_v62 = vor.u32 %v9242_v24, %v7950_v19  ;;  %v9290_v24 = vld [vmem:[%s9917_s29 + $0xfe4] sm:$0xf] }
 0x20d   : > { %v7661_v58 = vor.u32 %v9176_v47, %v7660_v35  ;;  %v8337_v8 = vor.u32 %v9338_v25, %v8334_v20  ;;  %v8286_v63 = vld [vmem:[%s9917_s29 + $0x1130] sm:$0xf0]  ;;  %9552 = vtanh.f32 %v11044_v10 }
 0x20e   : > { %v7086_v35 = vld [vmem:[%s9917_s29 + $0x7d0] sm:$0xf0]  ;;  %v8289_v47 = vor.u32 %v9326_v27, %v8286_v63  ;;  %v9182_v63 = vld [vmem:[%s9917_s29 + $0xc84] sm:$0xf] }
 0x20f   : > { %4716 = vmatpush.bf16.msrb.mxu0 %v7853_v50  ;;  %4729 = vmatpush.bf16.msrb.mxu1 %v8237_v51  ;;  %v6126_v50 = vld [vmem:[%s9917_s29 + $0x50] sm:$0xf0]  ;;  %v8882_v51 = vld [vmem:[%s9917_s29 + $0x324] sm:$0xf] }
 0x210   : > { %4742 = vmatpush.bf16.msrb.mxu2 %v6321_v54  ;;  %4755 = vmatpush.bf16.msrb.mxu3 %v6705_v55  ;;  %v4490_v48 = vpop.f32.mrf.mxu2  ;;  %v4503_v54 = vpop.f32.mrf.mxu3  ;;  %v9158_v55 = vld [vmem:[%s9917_s29 + $0xbc4] sm:$0xf]  ;;  %v7470_v45 = vld [vmem:[%s9917_s29 + $0xad0] sm:$0xf0] }
 0x211   : > { %v7617_v5 = vor.u32 %v9158_v55, %v7614_v56  ;;  %v7038_v48 = vld [vmem:[%s9917_s29 + $0x770] sm:$0xf0]  ;;  %v9110_v55 = vld [vmem:[%s9917_s29 + $0xa44] sm:$0xf] }
 0x212   : > { %v7422_v56 = vld [vmem:[%s9917_s29 + $0xa70] sm:$0xf0] }
 0x213   : > { %4717 = vmatpush.bf16.msrb.mxu0 %v7805_v23  ;;  %4730 = vmatpush.bf16.msrb.mxu1 %v8189_v3  ;;  %v6129_v23 = vor.u32 %v8786_v49, %v6126_v50  ;;  %v6513_v3 = vor.u32 %v8882_v51, %v6510_v52  ;;  %v9014_v51 = vld [vmem:[%s9917_s29 + $0x744] sm:$0xf]  ;;  %v8190_v0 = vld [vmem:[%s9917_s29 + $0x1070] sm:$0xf0] }
 0x214   : > { %4743 = vmatpush.bf16.msrb.mxu2 %v6273_v6  ;;  %4756 = vmatpush.bf16.msrb.mxu3 %v6657_v11  ;;  %v9050_v6 = vld [vmem:[%s9917_s29 + $0x864] sm:$0xf]  ;;  %v7182_v11 = vld [vmem:[%s9917_s29 + $0x890] sm:$0xf0]  ;;  %v7041_v36 = vor.u32 %v9014_v51, %v7038_v48  ;;  %v6468_v51 = vld [vmem:[%s9917_s29 + $0x2c8] sm:$0xf] }
 0x215   : > { %v7185_v26 = vor.u32 %v9050_v6, %v7182_v11  ;;  %v9098_v11 = vld [vmem:[%s9917_s29 + $0x9e4] sm:$0xf]  ;;  %v7758_v18 = vld [vmem:[%s9917_s29 + $0xd10] sm:$0xf0]  ;;  %v8877_v48 = vld [vmem:[%s9917_s29 + $0x2f4] sm:$0xf0] }
 0x216   : > { %v8142_v19 = vld [vmem:[%s9917_s29 + $0x1010] sm:$0xf0] }
 0x217   : > { %4718 = vmatpush.bf16.msrb.mxu0 %v7757_v28  ;;  %4731 = vmatpush.bf16.msrb.mxu1 %v8141_v17  ;;  %v9038_v28 = vld [vmem:[%s9917_s29 + $0x804] sm:$0xf]  ;;  %v7134_v17 = vld [vmem:[%s9917_s29 + $0x830] sm:$0xf0] }
 0x218   : > { %4744 = vmatpush.bf16.msrb.mxu2 %v6225_v33  ;;  %4757 = vmatpush.bf16.msrb.mxu3 %v6609_v38  ;;  %v7518_v33 = vld [vmem:[%s9917_s29 + $0xb30] sm:$0xf0]  ;;  %v9230_v38 = vld [vmem:[%s9917_s29 + $0xe04] sm:$0xf]  ;;  %v7137_v43 = vor.u32 %v9038_v28, %v7134_v17 }
 0x219   : > { %v7521_v39 = vor.u32 %v9134_v32, %v7518_v33  ;;  %v8990_v17 = vld [vmem:[%s9917_s29 + $0x684] sm:$0xf]  ;;  %v7326_v27 = vld [vmem:[%s9917_s29 + $0x9b0] sm:$0xf0] }
 0x21b   : > { %4719 = vmatpush.bf16.msrb.mxu0 %v7709_v44  ;;  %4732 = vmatpush.bf16.msrb.mxu1 %v8093_v46  ;;  %v1125_v44 = vperm.slane %v10868_v34, 6  ;;  %v7905_v46 = vor.u32 %v9230_v38, %v7902_v16  ;;  %v7089_v34 = vor.u32 %v9026_v40, %v7086_v35  ;;  %v8145_v38 = vor.u32 %v9290_v24, %v8142_v19  ;;  %v9086_v16 = vld [vmem:[%s9917_s29 + $0x984] sm:$0xf]  ;;  %v8094_v40 = vld [vmem:[%s9917_s29 + $0xfb0] sm:$0xf0] }
 0x21c   : > { %4745 = vmatpush.bf16.msrb.mxu2 %v6177_v2  ;;  %4758 = vmatpush.bf16.msrb.mxu3 %v6561_v41  ;;  %v9314_v2 = vld [vmem:[%s9917_s29 + $0x10a4] sm:$0xf]  ;;  %v8238_v41 = vld [vmem:[%s9917_s29 + $0x10d0] sm:$0xf0]  ;;  %v9153_v24 = vld [vmem:[%s9917_s29 + $0xb94] sm:$0xf0] }
 0x21d   : > { %v8241_v54 = vor.u32 %v9314_v2, %v8238_v41  ;;  %v8978_v35 = vld [vmem:[%s9917_s29 + $0x624] sm:$0xf]  ;;  %v7662_v41 = vld [vmem:[%s9917_s29 + $0xc50] sm:$0xf0] }
 0x21e   : > { %v9170_v2 = vld [vmem:[%s9917_s29 + $0xc24] sm:$0xf] }
 0x21f   : > { %4720 = vmatpush.bf16.msrb.mxu0 %v7661_v58  ;;  %4733 = vmatpush.bf16.msrb.mxu1 %v8045_v61  ;;  %v4514_v49 = vpop.f32.mrf.mxu0  ;;  %v4527_v42 = vpop.f32.mrf.mxu1  ;;  %v7806_v58 = vld [vmem:[%s9917_s29 + $0xd70] sm:$0xf0]  ;;  %v9302_v61 = vld [vmem:[%s9917_s29 + $0x1044] sm:$0xf] }
 0x220   : > { %4746 = vmatpush.bf16.msrb.mxu2 %v6129_v23  ;;  %4759 = vmatpush.bf16.msrb.mxu3 %v6513_v3  ;;  %v4515_v52 = vadd.f32 %v4514_v49, %v1125_v44  ;;  %v7425_v23 = vor.u32 %v9110_v55, %v7422_v56  ;;  %v9002_v3 = vld [vmem:[%s9917_s29 + $0x6e4] sm:$0xf]  ;;  %v8193_v6 = vor.u32 %v9302_v61, %v8190_v0  ;;  %v9165_v61 = vld [vmem:[%s9917_s29 + $0xbf4] sm:$0xf0] }
 0x221   : > { %v9266_v49 = vld [vmem:[%s9917_s29 + $0xf24] sm:$0xf]  ;;  %v7665_v0 = vor.u32 %v9170_v2, %v7662_v41 }
 0x222   : > { %4721 = vmatmul.bf16.vlgmr.msrb.gmra.mxu0 %v10932_v30  ;;  %4734 = vmatmul.bf16.vlgmr.msrb.gmra.mxu1 %v10939_v37  ;;  %v4528_v1 = vadd.f32 %v4527_v42, %v4515_v52  ;;  %v6852_v42 = vld [vmem:[%s9917_s29 + $0x5c8] sm:$0xf] }
 0x223   : > { %4765 = vmatpush.bf16.msra.mxu0 %v7233_v4  ;;  %4778 = vmatpush.bf16.msra.mxu1 %v7617_v5  ;;  %v6990_v4 = vld [vmem:[%s9917_s29 + $0x710] sm:$0xf0]  ;;  %v7809_v5 = vor.u32 %v9206_v57, %v7806_v58  ;;  %v9069_v57 = vld [vmem:[%s9917_s29 + $0x8f4] sm:$0xf0]  ;;  %v7620_v58 = vld [vmem:[%s9917_s29 + $0xbc8] sm:$0xf] }
 0x224   : > { %4791 = vmatpush.bf16.msra.mxu2 %v8001_v9  ;;  %4804 = vmatpush.bf16.msra.mxu3 %v8385_v13  ;;  %v7374_v9 = vld [vmem:[%s9917_s29 + $0xa10] sm:$0xf0]  ;;  %v9194_v13 = vld [vmem:[%s9917_s29 + $0xce4] sm:$0xf] }
 0x225   : > { %4747 = vmatmul.bf16.vlgmr.msrb.gmra.mxu2 %v10859_v22  ;;  %4760 = vmatmul.bf16.vlgmr.msrb.gmra.mxu3 %v10862_v31  ;;  %v9122_v22 = vld [vmem:[%s9917_s29 + $0xaa4] sm:$0xf]  ;;  %v7854_v31 = vld [vmem:[%s9917_s29 + $0xdd0] sm:$0xf0]  ;;  %v7377_v28 = vor.u32 %v9098_v11, %v7374_v9  ;;  %v7761_v33 = vor.u32 %v9194_v13, %v7758_v18  ;;  %v6804_v11 = vld [vmem:[%s9917_s29 + $0x568] sm:$0xf] }
 0x226   : > { %v7473_v50 = vor.u32 %v9122_v22, %v7470_v45  ;;  %v7857_v53 = vor.u32 %v9218_v12, %v7854_v31  ;;  %v9074_v22 = vld [vmem:[%s9917_s29 + $0x924] sm:$0xf]  ;;  %v7278_v45 = vld [vmem:[%s9917_s29 + $0x950] sm:$0xf0]  ;;  %v8961_v9 = vld [vmem:[%s9917_s29 + $0x594] sm:$0xf0] }
 0x227   : > { %4766 = vmatpush.bf16.msra.mxu0 %v7185_v26  ;;  %4779 = vmatpush.bf16.msra.mxu1 %v7569_v21  ;;  %v4516_v26 = vpop.f32.mrf.mxu0  ;;  %v6993_v21 = vor.u32 %v9002_v3, %v6990_v4  ;;  %v4529_v32 = vpop.f32.mrf.mxu1  ;;  %v7281_v56 = vor.u32 %v9074_v22, %v7278_v45  ;;  %v6420_v3 = vld [vmem:[%s9917_s29 + $0x268] sm:$0xf]  ;;  %v8865_v4 = vld [vmem:[%s9917_s29 + $0x294] sm:$0xf0] }
 0x228   : > { %4792 = vmatpush.bf16.msra.mxu2 %v7953_v62  ;;  %4805 = vmatpush.bf16.msra.mxu3 %v8337_v8  ;;  %v4540_v14 = vpop.f32.mrf.mxu2  ;;  %v4553_v20 = vpop.f32.mrf.mxu3  ;;  %v6942_v62 = vld [vmem:[%s9917_s29 + $0x6b0] sm:$0xf0]  ;;  %v7188_v13 = vld [vmem:[%s9917_s29 + $0x868] sm:$0xf]  ;;  %v6421_v19 = vor.u32 %v8865_v4, %v6420_v3  ;;  %v8853_v26 = vld [vmem:[%s9917_s29 + $0x234] sm:$0xf0] }
 0x229   : > { %v4541_v25 = vadd.f32 %v4540_v14, %v4528_v1  ;;  %v6945_v44 = vor.u32 %v8990_v17, %v6942_v62  ;;  %v9057_v14 = vld [vmem:[%s9917_s29 + $0x894] sm:$0xf0]  ;;  %v7572_v18 = vld [vmem:[%s9917_s29 + $0xb68] sm:$0xf] }
 0x22a   : > { %v6756_v17 = vld [vmem:[%s9917_s29 + $0x508] sm:$0xf]  ;;  %v8949_v62 = vld [vmem:[%s9917_s29 + $0x534] sm:$0xf0] }
 0x22b   : > { %4767 = vmatpush.bf16.msra.mxu0 %v7137_v43  ;;  %4780 = vmatpush.bf16.msra.mxu1 %v7521_v39  ;;  %v11115_v8 = vadd.f32 %v4553_v20, %v4541_v25  ;;  %v7710_v43 = vld [vmem:[%s9917_s29 + $0xcb0] sm:$0xf0]  ;;  %v9278_v39 = vld [vmem:[%s9917_s29 + $0xf84] sm:$0xf]  ;;  %v6805_v25 = vor.u32 %v8961_v9, %v6804_v11  ;;  %v6372_v20 = vld [vmem:[%s9917_s29 + $0x208] sm:$0xf] }
 0x22c   : > { %4793 = vmatpush.bf16.msra.mxu2 %v7905_v46  ;;  %4806 = vmatpush.bf16.msra.mxu3 %v8289_v47  ;;  %v7329_v46 = vor.u32 %v9086_v16, %v7326_v27  ;;  %v6894_v47 = vld [vmem:[%s9917_s29 + $0x650] sm:$0xf0]  ;;  %v7713_v12 = vor.u32 %v9182_v63, %v7710_v43  ;;  %v8097_v31 = vor.u32 %v9278_v39, %v8094_v40  ;;  %v7140_v32 = vld [vmem:[%s9917_s29 + $0x808] sm:$0xf]  ;;  %v9141_v16 = vld [vmem:[%s9917_s29 + $0xb34] sm:$0xf0] }
 0x22d   : > { %v6897_v55 = vor.u32 %v8978_v35, %v6894_v47  ;;  %v11156_v27 = vld [vmem:[#allocation1 + $0x12] sm:$0xff]  ;;  %v11160_v63 = vld [vmem:[#allocation1 + $0x1b] sm:$0xff]  ;;  %v6757_v43 = vor.u32 %v8949_v62, %v6756_v17  ;;  %v8841_v40 = vld [vmem:[%s9917_s29 + $0x1d4] sm:$0xf0] }
 0x22e   : > { %v6324_v39 = vld [vmem:[%s9917_s29 + $0x1a8] sm:$0xf]  ;;  %v9033_v22 = vld [vmem:[%s9917_s29 + $0x7d4] sm:$0xf0] }
 0x22f   : > { %4768 = vmatpush.bf16.msra.mxu0 %v7089_v34  ;;  %4781 = vmatpush.bf16.msra.mxu1 %v7473_v50  ;;  %v8046_v50 = vld [vmem:[%s9917_s29 + $0xf50] sm:$0xf0]  ;;  %v7092_v47 = vld [vmem:[%s9917_s29 + $0x7a8] sm:$0xf]  ;;  %v6325_v41 = vor.u32 %v8841_v40, %v6324_v39  ;;  %v9009_v9 = vld [vmem:[%s9917_s29 + $0x714] sm:$0xf0] }
 0x230   : > { %4794 = vmatpush.bf16.msra.mxu2 %v7857_v53  ;;  %4807 = vmatpush.bf16.msra.mxu3 %v8241_v54  ;;  %v4542_v34 = vpop.f32.mrf.mxu2  ;;  %v4555_v52 = vpop.f32.mrf.mxu3  ;;  %v8973_v53 = vld [vmem:[%s9917_s29 + $0x5f4] sm:$0xf0]  ;;  %v7236_v54 = vld [vmem:[%s9917_s29 + $0x8c8] sm:$0xf]  ;;  %v8049_v1 = vor.u32 %v9266_v49, %v8046_v50 }
 0x231   : > { %v7476_v45 = vld [vmem:[%s9917_s29 + $0xaa8] sm:$0xf]  ;;  %v8829_v50 = vld [vmem:[%s9917_s29 + $0x174] sm:$0xf0] }
 0x232   : > { %v6276_v34 = vld [vmem:[%s9917_s29 + $0x148] sm:$0xf]  ;;  %v8805_v17 = vld [vmem:[%s9917_s29 + $0xb4] sm:$0xf0] }
 0x233   : > { %4769 = vmatpush.bf16.msra.mxu0 %v7041_v36  ;;  %4782 = vmatpush.bf16.msra.mxu1 %v7425_v23  ;;  %v6469_v36 = vor.u32 %v8877_v48, %v6468_v51  ;;  %v6853_v23 = vor.u32 %v8973_v53, %v6852_v42  ;;  %v7093_v48 = vor.u32 %v9033_v22, %v7092_v47  ;;  %v6660_v42 = vld [vmem:[%s9917_s29 + $0x448] sm:$0xf]  ;;  %v8925_v53 = vld [vmem:[%s9917_s29 + $0x474] sm:$0xf0] }
 0x234   : > { %4795 = vmatpush.bf16.msra.mxu2 %v7809_v5  ;;  %4808 = vmatpush.bf16.msra.mxu3 %v8193_v6  ;;  %v7237_v5 = vor.u32 %v9069_v57, %v7236_v54  ;;  %v7621_v6 = vor.u32 %v9165_v61, %v7620_v58  ;;  %v7044_v54 = vld [vmem:[%s9917_s29 + $0x748] sm:$0xf]  ;;  %v9117_v57 = vld [vmem:[%s9917_s29 + $0xa74] sm:$0xf0]  ;;  %v9581_v61 = vld [vmem:[%s10467_s10] sm:$0xff] }
 0x235   : > { %v6996_v11 = vld [vmem:[%s9917_s29 + $0x6e8] sm:$0xf]  ;;  %v9093_v40 = vld [vmem:[%s9917_s29 + $0x9b4] sm:$0xf0] }
 0x236   : > { %v6997_v62 = vor.u32 %v9009_v9, %v6996_v11  ;;  %v7332_v39 = vld [vmem:[%s9917_s29 + $0x988] sm:$0xf]  ;;  %v8889_v22 = vld [vmem:[%s9917_s29 + $0x354] sm:$0xf0]  ;;  %v8859_v9 = vld [vmem:[%s9917_s29 + $0x26c] sm:$0xf] }
 0x237   : > { %4770 = vmatpush.bf16.msra.mxu0 %v6993_v21  ;;  %4783 = vmatpush.bf16.msra.mxu1 %v7377_v28  ;;  %v7189_v21 = vor.u32 %v9057_v14, %v7188_v13  ;;  %v7573_v28 = vor.u32 %v9153_v24, %v7572_v18  ;;  %v7380_v13 = vld [vmem:[%s9917_s29 + $0x9e8] sm:$0xf]  ;;  %v9105_v14 = vld [vmem:[%s9917_s29 + $0xa14] sm:$0xf0] }
 0x238   : > { %4796 = vmatpush.bf16.msra.mxu2 %v7761_v33  ;;  %4809 = vmatpush.bf16.msra.mxu3 %v8145_v38  ;;  %v9045_v33 = vld [vmem:[%s9917_s29 + $0x834] sm:$0xf0]  ;;  %v7524_v38 = vld [vmem:[%s9917_s29 + $0xb08] sm:$0xf] }
 0x239   : > { %v7141_v35 = vor.u32 %v9045_v33, %v7140_v32  ;;  %v7381_v32 = vor.u32 %v9105_v14, %v7380_v13  ;;  %v6564_v33 = vld [vmem:[%s9917_s29 + $0x388] sm:$0xf]  ;;  %v9345_v11 = vld [vmem:[%s9917_s29 + $0x1194] sm:$0xf0]  ;;  %v6422_v13 = vld [vmem:[%s9917_s29 + $0x298] sm:$0xf0] }
 0x23a   : > { %v6516_v47 = vld [vmem:[%s9917_s29 + $0x328] sm:$0xf]  ;;  %v8955_v14 = vld [vmem:[%s9917_s29 + $0x56c] sm:$0xf] }
 0x23b   : > { %4771 = vmatpush.bf16.msra.mxu0 %v6945_v44  ;;  %4784 = vmatpush.bf16.msra.mxu1 %v7329_v46  ;;  %v7525_v44 = vor.u32 %v9141_v16, %v7524_v38  ;;  %v8937_v46 = vld [vmem:[%s9917_s29 + $0x4d4] sm:$0xf0]  ;;  %v6948_v16 = vld [vmem:[%s9917_s29 + $0x688] sm:$0xf] }
 0x23c   : > { %4797 = vmatpush.bf16.msra.mxu2 %v7713_v12  ;;  %4810 = vmatpush.bf16.msra.mxu3 %v8097_v31  ;;  %v9129_v12 = vld [vmem:[%s9917_s29 + $0xad4] sm:$0xf0] }
 0x23d   : > { %v7477_v52 = vor.u32 %v9129_v12, %v7476_v45  ;;  %v8901_v38 = vld [vmem:[%s9917_s29 + $0x3b4] sm:$0xf0]  ;;  %v7333_v12 = vor.u32 %v9093_v40, %v7332_v39 }
 0x23f   : > { %4772 = vmatpush.bf16.msra.mxu0 %v6897_v55  ;;  %4785 = vmatpush.bf16.msra.mxu1 %v7281_v56  ;;  %v4566_v31 = vpop.f32.mrf.mxu0  ;;  %v4579_v2 = vpop.f32.mrf.mxu1  ;;  %v9021_v55 = vld [vmem:[%s9917_s29 + $0x774] sm:$0xf0]  ;;  %v7428_v56 = vld [vmem:[%s9917_s29 + $0xa48] sm:$0xf] }
 0x240   : > { %4798 = vmatpush.bf16.msra.mxu2 %v7665_v0  ;;  %4811 = vmatpush.bf16.msra.mxu3 %v8049_v1  ;;  %v4567_v51 = vadd.f32 %v4566_v31, %v11115_v8  ;;  %v1126_v8 = vperm.slane %v9581_v61, 7  ;;  %v6277_v0 = vor.u32 %v8829_v50, %v6276_v34  ;;  %v6661_v1 = vor.u32 %v8925_v53, %v6660_v42  ;;  %v6900_v31 = vld [vmem:[%s9917_s29 + $0x628] sm:$0xf]  ;;  %v9261_v50 = vld [vmem:[%s9917_s29 + $0xef4] sm:$0xf0] }
 0x241   : > { %v7045_v3 = vor.u32 %v9021_v55, %v7044_v54  ;;  %v7429_v4 = vor.u32 %v9117_v57, %v7428_v56  ;;  %v8004_v34 = vld [vmem:[%s9917_s29 + $0xec8] sm:$0xf]  ;;  %v9357_v42 = vld [vmem:[%s9917_s29 + $0x11f4] sm:$0xf0]  ;;  %v8871_v53 = vld [vmem:[%s9917_s29 + $0x2cc] sm:$0xf]  ;;  %v6517_v55 = vor.u32 %v8889_v22, %v6516_v47 }
 0x242   : > { %4773 = vmatmul.bf16.vlgmr.msra.gmra.mxu0 %v11156_v27  ;;  %4786 = vmatmul.bf16.vlgmr.msra.gmra.mxu1 %v11160_v63  ;;  %v11180_v58 = vadd.f32 %v4579_v2, %v4567_v51  ;;  %v8985_v2 = vld [vmem:[%s9917_s29 + $0x654] sm:$0xf0]  ;;  %v6470_v56 = vld [vmem:[%s9917_s29 + $0x2f8] sm:$0xf0]  ;;  %v8967_v57 = vld [vmem:[%s9917_s29 + $0x5cc] sm:$0xf] }
 0x243   : > { %4817 = vmatpush.bf16.msrb.mxu0 %v6469_v36  ;;  %4830 = vmatpush.bf16.msrb.mxu1 %v6853_v23  ;;  %v6228_v36 = vld [vmem:[%s9917_s29 + $0xe8] sm:$0xf]  ;;  %v8817_v23 = vld [vmem:[%s9917_s29 + $0x114] sm:$0xf0]  ;;  %v6854_v61 = vld [vmem:[%s9917_s29 + $0x5f8] sm:$0xf0] }
 0x244   : > { %4843 = vmatpush.bf16.msrb.mxu2 %v7237_v5  ;;  %4856 = vmatpush.bf16.msrb.mxu3 %v7621_v6  ;;  %v6612_v5 = vld [vmem:[%s9917_s29 + $0x3e8] sm:$0xf]  ;;  %v8913_v6 = vld [vmem:[%s9917_s29 + $0x414] sm:$0xf0]  ;;  %9554 = vtanh.f32 %v11180_v58 }
 0x245   : > { %4799 = vmatmul.bf16.vlgmr.msra.gmra.mxu2 %v10932_v30  ;;  %4812 = vmatmul.bf16.vlgmr.msra.gmra.mxu3 %v10939_v37  ;;  %v6373_v30 = vor.u32 %v8853_v26, %v6372_v20  ;;  %v6708_v37 = vld [vmem:[%s9917_s29 + $0x4a8] sm:$0xf]  ;;  %v6229_v26 = vor.u32 %v8817_v23, %v6228_v36  ;;  %v9321_v22 = vld [vmem:[%s9917_s29 + $0x10d4] sm:$0xf0] }
 0x246   : > { %v6709_v49 = vor.u32 %v8937_v46, %v6708_v37  ;;  %v6565_v37 = vor.u32 %v8901_v38, %v6564_v33  ;;  %v8793_v46 = vld [vmem:[%s9917_s29 + $0x54] sm:$0xf0]  ;;  %v7956_v23 = vld [vmem:[%s9917_s29 + $0xe68] sm:$0xf]  ;;  %v8943_v33 = vld [vmem:[%s9917_s29 + $0x50c] sm:$0xf] }
 0x247   : > { %4818 = vmatpush.bf16.msrb.mxu0 %v6421_v19  ;;  %4831 = vmatpush.bf16.msrb.mxu1 %v6805_v25  ;;  %v4568_v25 = vpop.f32.mrf.mxu0  ;;  %v4581_v20 = vpop.f32.mrf.mxu1  ;;  %v6758_v38 = vld [vmem:[%s9917_s29 + $0x538] sm:$0xf0]  ;;  %v8244_v47 = vld [vmem:[%s9917_s29 + $0x10a8] sm:$0xf] }
 0x248   : > { %4844 = vmatpush.bf16.msrb.mxu2 %v7189_v21  ;;  %4857 = vmatpush.bf16.msrb.mxu3 %v7573_v28  ;;  %v4592_v18 = vpop.f32.mrf.mxu2  ;;  %v4605_v24 = vpop.f32.mrf.mxu3  ;;  %v6613_v21 = vor.u32 %v8913_v6, %v6612_v5  ;;  %v6180_v28 = vld [vmem:[%s9917_s29 + $0x88] sm:$0xf]  ;;  %v6857_v5 = vor.u32 %v8967_v57, %v6854_v61  ;;  %v9237_v20 = vld [vmem:[%s9917_s29 + $0xe34] sm:$0xf0]  ;;  %v6278_v57 = vld [vmem:[%s9917_s29 + $0x178] sm:$0xf0] }
 0x249   : > { %v4593_v19 = vadd.f32 %v4592_v18, %v1126_v8  ;;  %v6901_v8 = vor.u32 %v8985_v2, %v6900_v31  ;;  %v8340_v6 = vld [vmem:[%s9917_s29 + $0x1168] sm:$0xf]  ;;  %v6806_v18 = vld [vmem:[%s9917_s29 + $0x598] sm:$0xf0]  ;;  %v8931_v31 = vld [vmem:[%s9917_s29 + $0x4ac] sm:$0xf] }
 0x24a   : > { %v7908_v25 = vld [vmem:[%s9917_s29 + $0xe08] sm:$0xf]  ;;  %v6710_v2 = vld [vmem:[%s9917_s29 + $0x4d8] sm:$0xf0]  ;;  %v8919_v61 = vld [vmem:[%s9917_s29 + $0x44c] sm:$0xf] }
 0x24b   : > { %4819 = vmatpush.bf16.msrb.mxu0 %v6373_v30  ;;  %4832 = vmatpush.bf16.msrb.mxu1 %v6757_v43  ;;  %v11196_v30 = vadd.f32 %v4605_v24, %v4593_v19  ;;  %v8997_v43 = vld [vmem:[%s9917_s29 + $0x6b4] sm:$0xf0]  ;;  %v8341_v19 = vor.u32 %v9345_v11, %v8340_v6  ;;  %v7909_v39 = vor.u32 %v9237_v20, %v7908_v25  ;;  %v8811_v11 = vld [vmem:[%s9917_s29 + $0xec] sm:$0xf] }
 0x24c   : > { %4845 = vmatpush.bf16.msrb.mxu2 %v7141_v35  ;;  %4858 = vmatpush.bf16.msrb.mxu3 %v7525_v44  ;;  %v6132_v35 = vld [vmem:[%s9917_s29 + $0x28] sm:$0xf]  ;;  %v6181_v44 = vor.u32 %v8805_v17, %v6180_v28  ;;  %v6949_v45 = vor.u32 %v8997_v43, %v6948_v16  ;;  %v9333_v17 = vld [vmem:[%s9917_s29 + $0x1134] sm:$0xf0]  ;;  %v11233_v16 = vld [vmem:[#allocation1] sm:$0xff] }
 0x24d   : > { %v6133_v54 = vor.u32 %v8793_v46, %v6132_v35  ;;  %v8292_v28 = vld [vmem:[%s9917_s29 + $0x1108] sm:$0xf]  ;;  %v11236_v43 = vld [vmem:[#allocation1 + $0x9] sm:$0xff]  ;;  %v6761_v46 = vor.u32 %v8943_v33, %v6758_v38 }
 0x24e   : > { %v8293_v40 = vor.u32 %v9333_v17, %v8292_v28  ;;  %v7860_v35 = vld [vmem:[%s9917_s29 + $0xda8] sm:$0xf]  ;;  %v9297_v6 = vld [vmem:[%s9917_s29 + $0x1014] sm:$0xf0] }
 0x24f   : > { %4820 = vmatpush.bf16.msrb.mxu0 %v6325_v41  ;;  %4833 = vmatpush.bf16.msrb.mxu1 %v6709_v49  ;;  %v7284_v41 = vld [vmem:[%s9917_s29 + $0x928] sm:$0xf]  ;;  %v9081_v49 = vld [vmem:[%s9917_s29 + $0x954] sm:$0xf0] }
 0x250   : > { %4846 = vmatpush.bf16.msrb.mxu2 %v7093_v48  ;;  %4859 = vmatpush.bf16.msrb.mxu3 %v7477_v52  ;;  %v4594_v51 = vpop.f32.mrf.mxu2  ;;  %v4607_v48 = vpop.f32.mrf.mxu3  ;;  %v8388_v52 = vld [vmem:[%s9917_s29 + $0x11c8] sm:$0xf]  ;;  %v9189_v28 = vld [vmem:[%s9917_s29 + $0xcb4] sm:$0xf0] }
 0x251   : > { %v8389_v36 = vor.u32 %v9357_v42, %v8388_v52  ;;  %v9213_v51 = vld [vmem:[%s9917_s29 + $0xd74] sm:$0xf0]  ;;  %v8100_v38 = vld [vmem:[%s9917_s29 + $0xf88] sm:$0xf] }
 0x253   : > { %4821 = vmatpush.bf16.msrb.mxu0 %v6277_v0  ;;  %4834 = vmatpush.bf16.msrb.mxu1 %v6661_v1  ;;  %v7285_v0 = vor.u32 %v9081_v49, %v7284_v41  ;;  %v8005_v1 = vor.u32 %v9261_v50, %v8004_v34  ;;  %v8245_v34 = vor.u32 %v9321_v22, %v8244_v47  ;;  %v7812_v50 = vld [vmem:[%s9917_s29 + $0xd48] sm:$0xf] }
 0x254   : > { %4847 = vmatpush.bf16.msrb.mxu2 %v7045_v3  ;;  %4860 = vmatpush.bf16.msrb.mxu3 %v7429_v4  ;;  %v9249_v3 = vld [vmem:[%s9917_s29 + $0xe94] sm:$0xf0]  ;;  %v6473_v4 = vor.u32 %v8871_v53, %v6470_v56  ;;  %v6713_v53 = vor.u32 %v8931_v31, %v6710_v2  ;;  %v8823_v56 = vld [vmem:[%s9917_s29 + $0x14c] sm:$0xf] }
 0x255   : > { %v7957_v24 = vor.u32 %v9249_v3, %v7956_v23  ;;  %v9201_v23 = vld [vmem:[%s9917_s29 + $0xd14] sm:$0xf0]  ;;  %v6281_v3 = vor.u32 %v8823_v56, %v6278_v57  ;;  %v9255_v56 = vld [vmem:[%s9917_s29 + $0xecc] sm:$0xf] }
 0x256   : > { %v9273_v31 = vld [vmem:[%s9917_s29 + $0xf54] sm:$0xf0] }
 0x257   : > { %4822 = vmatpush.bf16.msrb.mxu0 %v6229_v26  ;;  %4835 = vmatpush.bf16.msrb.mxu1 %v6613_v21  ;;  %v6425_v26 = vor.u32 %v8859_v9, %v6422_v13  ;;  %v6809_v21 = vor.u32 %v8955_v14, %v6806_v18  ;;  %v6230_v13 = vld [vmem:[%s9917_s29 + $0x118] sm:$0xf0]  ;;  %v8907_v14 = vld [vmem:[%s9917_s29 + $0x3ec] sm:$0xf] }
 0x258   : > { %4848 = vmatpush.bf16.msrb.mxu2 %v6997_v62  ;;  %4861 = vmatpush.bf16.msrb.mxu3 %v7381_v32  ;;  %v8847_v62 = vld [vmem:[%s9917_s29 + $0x20c] sm:$0xf]  ;;  %v6374_v32 = vld [vmem:[%s9917_s29 + $0x238] sm:$0xf0] }
 0x259   : > { %v6614_v18 = vld [vmem:[%s9917_s29 + $0x418] sm:$0xf0] }
 0x25a   : > { %v6617_v33 = vor.u32 %v8907_v14, %v6614_v18  ;;  %v9243_v14 = vld [vmem:[%s9917_s29 + $0xe6c] sm:$0xf]  ;;  %v7958_v18 = vld [vmem:[%s9917_s29 + $0xe98] sm:$0xf0] }
 0x25b   : > { %4823 = vmatpush.bf16.msrb.mxu0 %v6181_v44  ;;  %4836 = vmatpush.bf16.msrb.mxu1 %v6565_v37  ;;  %v9225_v44 = vld [vmem:[%s9917_s29 + $0xdd4] sm:$0xf0]  ;;  %v6377_v37 = vor.u32 %v8847_v62, %v6374_v32  ;;  %v6233_v32 = vor.u32 %v8811_v11, %v6230_v13  ;;  %v7574_v13 = vld [vmem:[%s9917_s29 + $0xb98] sm:$0xf0] }
 0x25c   : > { %4849 = vmatpush.bf16.msrb.mxu2 %v6949_v45  ;;  %4862 = vmatpush.bf16.msrb.mxu3 %v7333_v12  ;;  %v8835_v45 = vld [vmem:[%s9917_s29 + $0x1ac] sm:$0xf]  ;;  %v6326_v12 = vld [vmem:[%s9917_s29 + $0x1d8] sm:$0xf0]  ;;  %v7861_v49 = vor.u32 %v9225_v44, %v7860_v35 }
 0x25d   : > { %v6329_v42 = vor.u32 %v8835_v45, %v6326_v12  ;;  %v6182_v35 = vld [vmem:[%s9917_s29 + $0xb8] sm:$0xf0]  ;;  %v8895_v44 = vld [vmem:[%s9917_s29 + $0x38c] sm:$0xf]  ;;  %v9177_v45 = vld [vmem:[%s9917_s29 + $0xc54] sm:$0xf0] }
 0x25e   : > { %v8052_v12 = vld [vmem:[%s9917_s29 + $0xf28] sm:$0xf] }
 0x25f   : > { %4824 = vmatpush.bf16.msrb.mxu0 %v6133_v54  ;;  %4837 = vmatpush.bf16.msrb.mxu1 %v6517_v55  ;;  %v4618_v41 = vpop.f32.mrf.mxu0  ;;  %v4631_v52 = vpop.f32.mrf.mxu1  ;;  %v8196_v54 = vld [vmem:[%s9917_s29 + $0x1048] sm:$0xf]  ;;  %v9309_v55 = vld [vmem:[%s9917_s29 + $0x1074] sm:$0xf0] }
 0x260   : > { %4850 = vmatpush.bf16.msrb.mxu2 %v6901_v8  ;;  %4863 = vmatpush.bf16.msrb.mxu3 %v7285_v0  ;;  %v4619_v48 = vadd.f32 %v4618_v41, %v11196_v30  ;;  %v6662_v8 = vld [vmem:[%s9917_s29 + $0x478] sm:$0xf0]  ;;  %v7813_v30 = vor.u32 %v9213_v51, %v7812_v50  ;;  %v8883_v50 = vld [vmem:[%s9917_s29 + $0x32c] sm:$0xf] }
 0x262   : > { %4825 = vmatmul.bf16.vlgmr.msrb.gmra.mxu0 %v11233_v16  ;;  %4838 = vmatmul.bf16.vlgmr.msrb.gmra.mxu1 %v11236_v43  ;;  %v4632_v0 = vadd.f32 %v4631_v52, %v4619_v48  ;;  %v6518_v48 = vld [vmem:[%s9917_s29 + $0x358] sm:$0xf0]  ;;  %v9063_v52 = vld [vmem:[%s9917_s29 + $0x8cc] sm:$0xf] }
 0x263   : > { %4869 = vmatpush.bf16.msra.mxu0 %v8005_v1  ;;  %4882 = vmatpush.bf16.msra.mxu1 %v8389_v36  ;;  %v8197_v1 = vor.u32 %v9309_v55, %v8196_v54  ;;  %v7764_v36 = vld [vmem:[%s9917_s29 + $0xce8] sm:$0xf]  ;;  %v9159_v54 = vld [vmem:[%s9917_s29 + $0xbcc] sm:$0xf]  ;;  %v7622_v55 = vld [vmem:[%s9917_s29 + $0xbf8] sm:$0xf0] }
 0x264   : > { %4895 = vmatpush.bf16.msra.mxu2 %v6473_v4  ;;  %4908 = vmatpush.bf16.msra.mxu3 %v6857_v5  ;;  %v6665_v4 = vor.u32 %v8919_v61, %v6662_v8  ;;  %v8148_v5 = vld [vmem:[%s9917_s29 + $0xfe8] sm:$0xf]  ;;  %v7765_v20 = vor.u32 %v9201_v23, %v7764_v36  ;;  %v8053_v61 = vor.u32 %v9273_v31, %v8052_v12  ;;  %v8006_v8 = vld [vmem:[%s9917_s29 + $0xef8] sm:$0xf0] }
 0x265   : > { %4851 = vmatmul.bf16.vlgmr.msrb.gmra.mxu2 %v11156_v27  ;;  %4864 = vmatmul.bf16.vlgmr.msrb.gmra.mxu3 %v11160_v63  ;;  %v6521_v36 = vor.u32 %v8883_v50, %v6518_v48  ;;  %v7094_v12 = vld [vmem:[%s9917_s29 + $0x7d8] sm:$0xf0]  ;;  %v9315_v50 = vld [vmem:[%s9917_s29 + $0x10ac] sm:$0xf] }
 0x267   : > { %4870 = vmatpush.bf16.msra.mxu0 %v7957_v24  ;;  %4883 = vmatpush.bf16.msra.mxu1 %v8341_v19  ;;  %v4620_v25 = vpop.f32.mrf.mxu0  ;;  %v4633_v62 = vpop.f32.mrf.mxu1 }
 0x268   : > { %4896 = vmatpush.bf16.msra.mxu2 %v6425_v26  ;;  %4909 = vmatpush.bf16.msra.mxu3 %v6809_v21  ;;  %v4644_v9 = vpop.f32.mrf.mxu2  ;;  %v4657_v19 = vpop.f32.mrf.mxu3  ;;  %v8149_v26 = vor.u32 %v9297_v6, %v8148_v5  ;;  %v7716_v21 = vld [vmem:[%s9917_s29 + $0xc88] sm:$0xf]  ;;  %v7190_v5 = vld [vmem:[%s9917_s29 + $0x898] sm:$0xf0]  ;;  %v8009_v6 = vor.u32 %v9255_v56, %v8006_v8  ;;  %v7961_v62 = vor.u32 %v9243_v14, %v7958_v18  ;;  %v9111_v8 = vld [vmem:[%s9917_s29 + $0xa4c] sm:$0xf] }
 0x269   : > { %v4645_v24 = vadd.f32 %v4644_v9, %v4632_v0  ;;  %v7717_v47 = vor.u32 %v9189_v28, %v7716_v21  ;;  %v9351_v0 = vld [vmem:[%s9917_s29 + $0x11cc] sm:$0xf]  ;;  %v7142_v21 = vld [vmem:[%s9917_s29 + $0x838] sm:$0xf0] }
 0x26a   : > { %v9147_v9 = vld [vmem:[%s9917_s29 + $0xb6c] sm:$0xf]  ;;  %v7382_v18 = vld [vmem:[%s9917_s29 + $0xa18] sm:$0xf0] }
 0x26b   : > { %4871 = vmatpush.bf16.msra.mxu0 %v7909_v39  ;;  %4884 = vmatpush.bf16.msra.mxu1 %v8293_v40  ;;  %v11268_v17 = vadd.f32 %v4657_v19, %v4645_v24  ;;  %v9285_v39 = vld [vmem:[%s9917_s29 + $0xfb4] sm:$0xf0]  ;;  %v8799_v40 = vld [vmem:[%s9917_s29 + $0x8c] sm:$0xf]  ;;  %v8342_v19 = vld [vmem:[%s9917_s29 + $0x1198] sm:$0xf0] }
 0x26c   : > { %4897 = vmatpush.bf16.msra.mxu2 %v6377_v37  ;;  %4910 = vmatpush.bf16.msra.mxu3 %v6761_v46  ;;  %v6566_v37 = vld [vmem:[%s9917_s29 + $0x3b8] sm:$0xf0]  ;;  %v7668_v46 = vld [vmem:[%s9917_s29 + $0xc28] sm:$0xf]  ;;  %v8101_v22 = vor.u32 %v9285_v39, %v8100_v38  ;;  %v6185_v2 = vor.u32 %v8799_v40, %v6182_v35  ;;  %v9339_v24 = vld [vmem:[%s9917_s29 + $0x116c] sm:$0xf] }
 0x26d   : > { %v6569_v41 = vor.u32 %v8895_v44, %v6566_v37  ;;  %v7669_v57 = vor.u32 %v9177_v45, %v7668_v46  ;;  %v9135_v28 = vld [vmem:[%s9917_s29 + $0xb0c] sm:$0xf]  ;;  %v11306_v39 = vld [vmem:[%s10467_s10 + $0x8] sm:$0xf]  ;;  %v11311_v35 = vld [vmem:[#allocation1 + $0x2d] sm:$0xff]  ;;  %9556 = vtanh.f32 %v11268_v17 }
 0x26e   : > { %v9231_v38 = vld [vmem:[%s9917_s29 + $0xe0c] sm:$0xf]  ;;  %v11308_v40 = vld [vmem:[#allocation1 + $0x24] sm:$0xff]  ;;  %v7910_v44 = vld [vmem:[%s9917_s29 + $0xe38] sm:$0xf0]  ;;  %v1127_v31 = vperm.slane %v11306_v39, 0 }
 0x26f   : > { %4872 = vmatpush.bf16.msra.mxu0 %v7861_v49  ;;  %4885 = vmatpush.bf16.msra.mxu1 %v8245_v34  ;;  %v8787_v49 = vld [vmem:[%s9917_s29 + $0x2c] sm:$0xf]  ;;  %v6134_v34 = vld [vmem:[%s9917_s29 + $0x58] sm:$0xf0]  ;;  %v1128_v10 = vperm.slane %v11306_v39, 1  ;;  %v9406_v17 = vld [vmem:[%s11379_s6 + $0x180] sm:$0xff] }
 0x270   : > { %4898 = vmatpush.bf16.msra.mxu2 %v6329_v42  ;;  %4911 = vmatpush.bf16.msra.mxu3 %v6713_v53  ;;  %v4646_v51 = vpop.f32.mrf.mxu2  ;;  %v7238_v42 = vld [vmem:[%s9917_s29 + $0x8f8] sm:$0xf0]  ;;  %v4659_v53 = vpop.f32.mrf.mxu3  ;;  %v9327_v37 = vld [vmem:[%s9917_s29 + $0x110c] sm:$0xf] }
 0x271   : > { %v7241_v23 = vor.u32 %v9063_v52, %v7238_v42  ;;  %v8294_v46 = vld [vmem:[%s9917_s29 + $0x1138] sm:$0xf0]  ;;  %v9027_v45 = vld [vmem:[%s9917_s29 + $0x7ac] sm:$0xf] }
 0x272   : > { %v8246_v51 = vld [vmem:[%s9917_s29 + $0x10d8] sm:$0xf0]  ;;  %v7097_v52 = vor.u32 %v9027_v45, %v7094_v12  ;;  %v9015_v53 = vld [vmem:[%s9917_s29 + $0x74c] sm:$0xf] }
 0x273   : > { %4873 = vmatpush.bf16.msra.mxu0 %v7813_v30  ;;  %4886 = vmatpush.bf16.msra.mxu1 %v8197_v1  ;;  %v8390_v30 = vld [vmem:[%s9917_s29 + $0x11f8] sm:$0xf0]  ;;  %v6137_v1 = vor.u32 %v8787_v49, %v6134_v34  ;;  %v9099_v14 = vld [vmem:[%s9917_s29 + $0x9ec] sm:$0xf] }
 0x274   : > { %4899 = vmatpush.bf16.msra.mxu2 %v6281_v3  ;;  %4912 = vmatpush.bf16.msra.mxu3 %v6665_v4  ;;  %v7625_v3 = vor.u32 %v9159_v54, %v7622_v55  ;;  %v9051_v4 = vld [vmem:[%s9917_s29 + $0x86c] sm:$0xf]  ;;  %v8393_v11 = vor.u32 %v9351_v0, %v8390_v30  ;;  %v7478_v49 = vld [vmem:[%s9917_s29 + $0xad8] sm:$0xf0] }
 0x275   : > { %v7193_v25 = vor.u32 %v9051_v4, %v7190_v5  ;;  %v7862_v34 = vld [vmem:[%s9917_s29 + $0xdd8] sm:$0xf0]  ;;  %v9207_v30 = vld [vmem:[%s9917_s29 + $0xd4c] sm:$0xf] }
 0x276   : > { %v7046_v54 = vld [vmem:[%s9917_s29 + $0x778] sm:$0xf0]  ;;  %v9087_v45 = vld [vmem:[%s9917_s29 + $0x98c] sm:$0xf] }
 0x277   : > { %4874 = vmatpush.bf16.msra.mxu0 %v7765_v20  ;;  %4887 = vmatpush.bf16.msra.mxu1 %v8149_v26  ;;  %v7577_v20 = vor.u32 %v9147_v9, %v7574_v13  ;;  %v9039_v26 = vld [vmem:[%s9917_s29 + $0x80c] sm:$0xf]  ;;  %v7430_v0 = vld [vmem:[%s9917_s29 + $0xa78] sm:$0xf0]  ;;  %v7049_v4 = vor.u32 %v9015_v53, %v7046_v54 }
 0x278   : > { %4900 = vmatpush.bf16.msra.mxu2 %v6233_v32  ;;  %4913 = vmatpush.bf16.msra.mxu3 %v6617_v33  ;;  %v8345_v32 = vor.u32 %v9339_v24, %v8342_v19  ;;  %v7526_v33 = vld [vmem:[%s9917_s29 + $0xb38] sm:$0xf0]  ;;  %v7433_v5 = vor.u32 %v9111_v8, %v7430_v0  ;;  %v9195_v24 = vld [vmem:[%s9917_s29 + $0xcec] sm:$0xf] }
 0x279   : > { %v7334_v12 = vld [vmem:[%s9917_s29 + $0x9b8] sm:$0xf0]  ;;  %v9171_v53 = vld [vmem:[%s9917_s29 + $0xc2c] sm:$0xf] }
 0x27b   : > { %4875 = vmatpush.bf16.msra.mxu0 %v7717_v47  ;;  %4888 = vmatpush.bf16.msra.mxu1 %v8101_v22  ;;  %v7145_v47 = vor.u32 %v9039_v26, %v7142_v21  ;;  %v7529_v22 = vor.u32 %v9135_v28, %v7526_v33  ;;  %v8150_v26 = vld [vmem:[%s9917_s29 + $0x1018] sm:$0xf0]  ;;  %v7385_v33 = vor.u32 %v9099_v14, %v7382_v18 }
 0x27c   : > { %4901 = vmatpush.bf16.msra.mxu2 %v6185_v2  ;;  %4914 = vmatpush.bf16.msra.mxu3 %v6569_v41  ;;  %v7913_v2 = vor.u32 %v9231_v38, %v7910_v44  ;;  %v9123_v41 = vld [vmem:[%s9917_s29 + $0xaac] sm:$0xf]  ;;  %v6950_v44 = vld [vmem:[%s9917_s29 + $0x6b8] sm:$0xf0] }
 0x27d   : > { %v7481_v42 = vor.u32 %v9123_v41, %v7478_v49  ;;  %v8991_v38 = vld [vmem:[%s9917_s29 + $0x68c] sm:$0xf]  ;;  %v8102_v41 = vld [vmem:[%s9917_s29 + $0xfb8] sm:$0xf0] }
 0x27e   : > { %v6953_v49 = vor.u32 %v8991_v38, %v6950_v44  ;;  %v9371_v14 = vld [vmem:[%s11379_s6 + $0x68] sm:$0xff] }
 0x27f   : > { %4876 = vmatpush.bf16.msra.mxu0 %v7669_v57  ;;  %4889 = vmatpush.bf16.msra.mxu1 %v8053_v61  ;;  %v4670_v48 = vpop.f32.mrf.mxu0  ;;  %v4683_v56 = vpop.f32.mrf.mxu1  ;;  %v8249_v61 = vor.u32 %v9315_v50, %v8246_v51  ;;  %v6902_v50 = vld [vmem:[%s9917_s29 + $0x658] sm:$0xf0] }
 0x280   : > { %4902 = vmatpush.bf16.msra.mxu2 %v6137_v1  ;;  %4915 = vmatpush.bf16.msra.mxu3 %v6521_v36  ;;  %v4671_v55 = vadd.f32 %v4670_v48, %v1127_v31  ;;  %v7814_v1 = vld [vmem:[%s9917_s29 + $0xd78] sm:$0xf0]  ;;  %v9303_v36 = vld [vmem:[%s9917_s29 + $0x104c] sm:$0xf] }
 0x281   : > { %v7817_v9 = vor.u32 %v9207_v30, %v7814_v1  ;;  %v9183_v31 = vld [vmem:[%s9917_s29 + $0xc8c] sm:$0xf]  ;;  %v9379_v18 = vld [vmem:[%s11379_s6 + $0xa8] sm:$0xff] }
 0x282   : > { %4877 = vmatmul.bf16.vlgmr.msra.gmra.mxu0 %v11308_v40  ;;  %4890 = vmatmul.bf16.vlgmr.msra.gmra.mxu1 %v11311_v35 }
 0x283   : > { %4921 = vmatpush.bf16.msrb.mxu0 %v7241_v23  ;;  %4934 = vmatpush.bf16.msrb.mxu1 %v7625_v3  ;;  %v8198_v23 = vld [vmem:[%s9917_s29 + $0x1078] sm:$0xf0]  ;;  %v4684_v3 = vadd.f32 %v4683_v56, %v4671_v55  ;;  %v9267_v56 = vld [vmem:[%s9917_s29 + $0xf2c] sm:$0xf] }
 0x284   : > { %4947 = vmatpush.bf16.msrb.mxu2 %v8009_v6  ;;  %4960 = vmatpush.bf16.msrb.mxu3 %v8393_v11  ;;  %v9003_v6 = vld [vmem:[%s9917_s29 + $0x6ec] sm:$0xf]  ;;  %v6998_v11 = vld [vmem:[%s9917_s29 + $0x718] sm:$0xf0]  ;;  %v8201_v13 = vor.u32 %v9303_v36, %v8198_v23 }
 0x285   : > { %4903 = vmatmul.bf16.vlgmr.msra.gmra.mxu2 %v11233_v16  ;;  %4916 = vmatmul.bf16.vlgmr.msra.gmra.mxu3 %v11236_v43  ;;  %v8297_v16 = vor.u32 %v9327_v37, %v8294_v46  ;;  %v9219_v43 = vld [vmem:[%s9917_s29 + $0xdac] sm:$0xf]  ;;  %v7670_v55 = vld [vmem:[%s9917_s29 + $0xc58] sm:$0xf0] }
 0x286   : > { %v7865_v57 = vor.u32 %v9219_v43, %v7862_v34  ;;  %v7337_v43 = vor.u32 %v9087_v45, %v7334_v12  ;;  %v8979_v34 = vld [vmem:[%s9917_s29 + $0x62c] sm:$0xf]  ;;  %v7673_v30 = vor.u32 %v9171_v53, %v7670_v55  ;;  %v9384_v45 = vld [vmem:[%s11379_s6 + $0xd0] sm:$0xff]  ;;  %v9359_v12 = vld [vmem:[%s11379_s6 + $0x8] sm:$0xff] }
 0x287   : > { %4922 = vmatpush.bf16.msrb.mxu0 %v7193_v25  ;;  %4935 = vmatpush.bf16.msrb.mxu1 %v7577_v20  ;;  %v7766_v25 = vld [vmem:[%s9917_s29 + $0xd18] sm:$0xf0]  ;;  %v9291_v20 = vld [vmem:[%s9917_s29 + $0xfec] sm:$0xf]  ;;  %v4685_v46 = vpop.f32.mrf.mxu1  ;;  %v6905_v8 = vor.u32 %v8979_v34, %v6902_v50  ;;  %v9382_v34 = vld [vmem:[%s11379_s6 + $0xc0] sm:$0xff] }
 0x288   : > { %4948 = vmatpush.bf16.msrb.mxu2 %v7961_v62  ;;  %4961 = vmatpush.bf16.msrb.mxu3 %v8345_v32  ;;  %v4696_v19 = vpop.f32.mrf.mxu2  ;;  %v4709_v28 = vpop.f32.mrf.mxu3  ;;  %v7001_v32 = vor.u32 %v9003_v6, %v6998_v11  ;;  %v9365_v36 = vld [vmem:[%s11379_s6 + $0x38] sm:$0xff]  ;;  %v9372_v6 = vld [vmem:[%s11379_s6 + $0x70] sm:$0xff] }
 0x289   : > { %v4697_v21 = vadd.f32 %v4696_v19, %v4684_v3  ;;  %v4672_v62 = vpop.f32.mrf.mxu0  ;;  %v9373_v23 = vld [vmem:[%s11379_s6 + $0x78] sm:$0xff]  ;;  %v9380_v11 = vld [vmem:[%s11379_s6 + $0xb0] sm:$0xff] }
 0x28a   : > { %v9381_v3 = vld [vmem:[%s11379_s6 + $0xb8] sm:$0xff]  ;;  %v9360_v46 = vld [vmem:[%s11379_s6 + $0x10] sm:$0xff] }
 0x28b   : > { %4923 = vmatpush.bf16.msrb.mxu0 %v7145_v47  ;;  %4936 = vmatpush.bf16.msrb.mxu1 %v7529_v22  ;;  %v11359_v37 = vadd.f32 %v4709_v28, %v4697_v21  ;;  %v7769_v47 = vor.u32 %v9195_v24, %v7766_v25  ;;  %v8153_v22 = vor.u32 %v9291_v20, %v8150_v26  ;;  %v9387_v24 = vld [vmem:[%s11379_s6 + $0xe8] sm:$0xff]  ;;  %v9378_v25 = vld [vmem:[%s11379_s6 + $0xa0] sm:$0xff]  ;;  %v9361_v21 = vld [vmem:[%s11379_s6 + $0x18] sm:$0xff] }
 0x28c   : > { %4949 = vmatpush.bf16.msrb.mxu2 %v7913_v2  ;;  %4962 = vmatpush.bf16.msrb.mxu3 %v8297_v16  ;;  %v7718_v2 = vld [vmem:[%s9917_s29 + $0xcb8] sm:$0xf0]  ;;  %v9279_v16 = vld [vmem:[%s9917_s29 + $0xf8c] sm:$0xf]  ;;  %v9386_v20 = vld [vmem:[%s11379_s6 + $0xe0] sm:$0xff] }
 0x28d   : > { %v7721_v51 = vor.u32 %v9183_v31, %v7718_v2  ;;  %v8105_v48 = vor.u32 %v9279_v16, %v8102_v41  ;;  %v9369_v28 = vld [vmem:[%s11379_s6 + $0x58] sm:$0xff]  ;;  %v9367_v31 = vld [vmem:[%s11379_s6 + $0x48] sm:$0xff]  ;;  %v9358_v41 = vld [vmem:[%s11379_s6] sm:$0xff] }
 0x28e   : > { %v9377_v62 = vld [vmem:[%s11379_s6 + $0x98] sm:$0xff]  ;;  %v9375_v2 = vld [vmem:[%s11379_s6 + $0x88] sm:$0xff] }
 0x28f   : > { %4924 = vmatpush.bf16.msrb.mxu0 %v7097_v52  ;;  %4937 = vmatpush.bf16.msrb.mxu1 %v7481_v42  ;;  %v9075_v52 = vld [vmem:[%s9917_s29 + $0x92c] sm:$0xf]  ;;  %v7286_v42 = vld [vmem:[%s9917_s29 + $0x958] sm:$0xf0] }
 0x290   : > { %4950 = vmatpush.bf16.msrb.mxu2 %v7865_v57  ;;  %4963 = vmatpush.bf16.msrb.mxu3 %v8249_v61  ;;  %v4698_v54 = vpop.f32.mrf.mxu2  ;;  %v8054_v57 = vld [vmem:[%s9917_s29 + $0xf58] sm:$0xf0]  ;;  %v4711_v61 = vpop.f32.mrf.mxu3  ;;  %v7289_v0 = vor.u32 %v9075_v52, %v7286_v42  ;;  %v9421_v42 = vld [vmem:[%s11379_s6 + $0x1f8] sm:$0xff]  ;;  %s9690_s29 = sshra.s32 %s5956_s0, 4  ;;  %s9691_s29 = int_to_ptr.hbm [resolvable:$true] %s9690_s29 }
 0x291   : > { %v8057_v1 = vor.u32 %v9267_v56, %v8054_v57  ;;  %v9383_v16 = vld [vmem:[%s11379_s6 + $0xc8] sm:$0xff]  ;;  %v9396_v56 = vld [vmem:[%s11379_s6 + $0x130] sm:$0xff]  ;;  %s9692_s21 = scalar_lea.hbm %s9691_s29, 2  ;;  %p9697_p11 = scmp.lt.s32.totalorder %s9691_s29, %s11557_s4 }
 0x292   : > { %v9404_v57 = vld [vmem:[%s11379_s6 + $0x170] sm:$0xff]  ;;  %p9693_p8 = scmp.ne.s32.totalorder %s9691_s29, %s9692_s21  ;;  %p9698_p12 = scmp.lt.s32.totalorder %s9696_s12, %s9692_s21 }
 0x293   : > { %4925 = vmatpush.bf16.msrb.mxu0 %v7049_v4  ;;  %4938 = vmatpush.bf16.msrb.mxu1 %v7433_v5  ;;  %v9389_v4 = vld [vmem:[%s11379_s6 + $0xf8] sm:$0xff]  ;;  %v9364_v5 = vld [vmem:[%s11379_s6 + $0x30] sm:$0xff] }
 0x294   : > { %4951 = vmatpush.bf16.msrb.mxu2 %v7817_v9  ;;  %4964 = vmatpush.bf16.msrb.mxu3 %v8201_v13  ;;  %v9388_v9 = vld [vmem:[%s11379_s6 + $0xf0] sm:$0xff]  ;;  %v9363_v13 = vld [vmem:[%s11379_s6 + $0x28] sm:$0xff]  ;;  %p9694_p9 = pnand %p9693_p8, %p9876_p0  ;;  %p9699_p13 = por %p9698_p12, %p9697_p11 }
 0x296   : > { %p9695_p10 = pneg %p9694_p9 }
 0x297   : > { %4926 = vmatpush.bf16.msrb.mxu0 %v7001_v32  ;;  %4939 = vmatpush.bf16.msrb.mxu1 %v7385_v33  ;;  %v9385_v32 = vld [vmem:[%s11379_s6 + $0xd8] sm:$0xff] }
 0x298   : > { %4952 = vmatpush.bf16.msrb.mxu2 %v7769_v47  ;;  %4965 = vmatpush.bf16.msrb.mxu3 %v8153_v22  ;;  %v9368_v47 = vld [vmem:[%s11379_s6 + $0x50] sm:$0xff]  ;;  %p9700_p3 = pnand %p9699_p13, %p9695_p10 }
 0x299   : > { %v9376_v22 = vld [vmem:[%s11379_s6 + $0x90] sm:$0xff] }
 0x29b   : > { %4927 = vmatpush.bf16.msrb.mxu0 %v6953_v49  ;;  %4940 = vmatpush.bf16.msrb.mxu1 %v7337_v43  ;;  %v9366_v49 = vld [vmem:[%s11379_s6 + $0x40] sm:$0xff]  ;;  %v9543_v43 = vpop.eup %9542 }
 0x29c   : > { %4953 = vmatpush.bf16.msrb.mxu2 %v7721_v51  ;;  %4966 = vmatpush.bf16.msrb.mxu3 %v8105_v48  ;;  %v9545_v50 = vpop.eup %9544  ;;  %v9397_v51 = vld [vmem:[%s11379_s6 + $0x138] sm:$0xff]  ;;  %v4985_v54 = vpack.c.bf16 %v9543_v43, %v9543_v43 }
 0x29d   : > { %v9405_v48 = vld [vmem:[%s11379_s6 + $0x178] sm:$0xff]  ;;  %v9547_v52 = vpop.eup %9546  ;;  %v4986_v55 = vpack.c.bf16 %v9545_v50, %v9545_v50 }
 0x29e   : > { %v9549_v53 = vpop.eup %9548  ;;  %v4987_v61 = vpack.c.bf16 %v9547_v52, %v9547_v52  ;;  %v9445_v43 = vld [vmem:[%s11379_s6 + $0x2b8] sm:$0xff] }
 0x29f   : > { %4928 = vmatpush.bf16.msrb.mxu0 %v6905_v8  ;;  %4941 = vmatpush.bf16.msrb.mxu1 %v7289_v0  ;;  %v4735_v19 = vpop.f32.mrf.mxu1  ;;  %v4988_v8 = vpack.c.bf16 %v9549_v53, %v9549_v53  ;;  %v9412_v0 = vld [vmem:[%s11379_s6 + $0x1b0] sm:$0xff] }
 0x2a0   : > { %4954 = vmatpush.bf16.msrb.mxu2 %v7673_v30  ;;  %4967 = vmatpush.bf16.msrb.mxu3 %v8057_v1  ;;  %v9420_v30 = vld [vmem:[%s11379_s6 + $0x1f0] sm:$0xff]  ;;  %v9395_v1 = vld [vmem:[%s11379_s6 + $0x128] sm:$0xff] }
 0x2a2   : > { %4929 = vmatmul.bf16.vlgmr.msrb.gmra.mxu0 %v11156_v27  ;;  %4942 = vmatmul.bf16.vlgmr.msrb.gmra.mxu1 %v11160_v63  ;;  %v4722_v27 = vpop.f32.mrf.mxu0  ;;  %v9362_v63 = vld [vmem:[%s11379_s6 + $0x20] sm:$0xff] }
 0x2a3   : > { %5765 = vmatpush.bf16.msra.mxu0 %v9365_v36  ;;  %5778 = vmatpush.bf16.msra.mxu1 %v9373_v23  ;;  %v9403_v36 = vld [vmem:[%s11379_s6 + $0x168] sm:$0xff] }
 0x2a4   : > { %5791 = vmatpush.bf16.msra.mxu2 %v9381_v3  ;;  %5804 = vmatpush.bf16.msra.mxu3 %v9389_v4  ;;  %v9411_v23 = vld [vmem:[%s11379_s6 + $0x1a8] sm:$0xff] }
 0x2a5   : > { %4955 = vmatmul.bf16.vlgmr.msrb.gmra.mxu2 %v11308_v40  ;;  %4968 = vmatmul.bf16.vlgmr.msrb.gmra.mxu3 %v11311_v35  ;;  %v9370_v40 = vld [vmem:[%s11379_s6 + $0x60] sm:$0xff]  ;;  %v4723_v35 = vadd.f32 %v4722_v27, %v11359_v37  ;;  %v9419_v3 = vld [vmem:[%s11379_s6 + $0x1e8] sm:$0xff]  ;;  %v9417_v27 = vld [vmem:[%s11379_s6 + $0x1d8] sm:$0xff] }
 0x2a7   : > { %5766 = vmatpush.bf16.msra.mxu0 %v9364_v5  ;;  %5779 = vmatpush.bf16.msra.mxu1 %v9372_v6  ;;  %v11402_v26 = vadd.f32 %v4735_v19, %v4723_v35  ;;  %v4737_v37 = vpop.f32.mrf.mxu1  ;;  %v9394_v5 = vld [vmem:[%s11379_s6 + $0x120] sm:$0xff]  ;;  %v9392_v35 = vld [vmem:[%s11379_s6 + $0x110] sm:$0xff] }
 0x2a8   : > { %5792 = vmatpush.bf16.msra.mxu2 %v9380_v11  ;;  %5805 = vmatpush.bf16.msra.mxu3 %v9388_v9  ;;  %v11408_v33 = vpop.f32.mrf.mxu2  ;;  %v11410_v38 = vpop.f32.mrf.mxu3  ;;  %v9402_v6 = vld [vmem:[%s11379_s6 + $0x160] sm:$0xff]  ;;  %v9415_v37 = vld [vmem:[%s11379_s6 + $0x1c8] sm:$0xff] }
 0x2a9   : > { %v9410_v9 = vld [vmem:[%s11379_s6 + $0x1a0] sm:$0xff]  ;;  %9558 = vtanh.f32 %v11402_v26 }
 0x2aa   : > { %v4724_v44 = vpop.f32.mrf.mxu0  ;;  %v9422_v26 = vld [vmem:[%s11379_s6 + $0x200] sm:$0xff] }
 0x2ab   : > { %5767 = vmatpush.bf16.msra.mxu0 %v9363_v13  ;;  %5780 = vmatpush.bf16.msra.mxu1 %v9371_v14  ;;  %v9418_v13 = vld [vmem:[%s11379_s6 + $0x1e0] sm:$0xff]  ;;  %v9393_v14 = vld [vmem:[%s11379_s6 + $0x118] sm:$0xff]  ;;  %v9407_v44 = vld [vmem:[%s11379_s6 + $0x188] sm:$0xff] }
 0x2ac   : > { %5793 = vmatpush.bf16.msra.mxu2 %v9379_v18  ;;  %5806 = vmatpush.bf16.msra.mxu3 %v9387_v24  ;;  %v9401_v18 = vld [vmem:[%s11379_s6 + $0x158] sm:$0xff] }
 0x2ad   : > { %v9409_v24 = vld [vmem:[%s11379_s6 + $0x198] sm:$0xff] }
 0x2af   : > { %5768 = vmatpush.bf16.msra.mxu0 %v9362_v63  ;;  %5781 = vmatpush.bf16.msra.mxu1 %v9370_v40 }
 0x2b0   : > { %5794 = vmatpush.bf16.msra.mxu2 %v9378_v25  ;;  %5807 = vmatpush.bf16.msra.mxu3 %v9386_v20  ;;  %v4750_v59 = vpop.f32.mrf.mxu2  ;;  %v4763_v15 = vpop.f32.mrf.mxu3  ;;  %v9400_v25 = vld [vmem:[%s11379_s6 + $0x150] sm:$0xff] }
 0x2b1   : > { %v9437_v59 = vld [vmem:[%s11379_s6 + $0x278] sm:$0xff] }
 0x2b3   : > { %5769 = vmatpush.bf16.msra.mxu0 %v9361_v21  ;;  %5782 = vmatpush.bf16.msra.mxu1 %v9369_v28  ;;  %v9408_v21 = vld [vmem:[%s11379_s6 + $0x190] sm:$0xff] }
 0x2b4   : > { %5795 = vmatpush.bf16.msra.mxu2 %v9377_v62  ;;  %5808 = vmatpush.bf16.msra.mxu3 %v9385_v32  ;;  %v9416_v28 = vld [vmem:[%s11379_s6 + $0x1d0] sm:$0xff]  ;;  %v9391_v62 = vld [vmem:[%s11379_s6 + $0x108] sm:$0xff] }
 0x2b5   : > { %v9399_v32 = vld [vmem:[%s11379_s6 + $0x148] sm:$0xff] }
 0x2b7   : > { %5770 = vmatpush.bf16.msra.mxu0 %v9360_v46  ;;  %5783 = vmatpush.bf16.msra.mxu1 %v9368_v47  ;;  %v9551_v46 = vpop.eup %9550  ;;  %v9390_v47 = vld [vmem:[%s11379_s6 + $0x100] sm:$0xff] }
 0x2b8   : > { %5796 = vmatpush.bf16.msra.mxu2 %v9376_v22  ;;  %5809 = vmatpush.bf16.msra.mxu3 %v9384_v45  ;;  %v9398_v22 = vld [vmem:[%s11379_s6 + $0x140] sm:$0xff]  ;;  %v9553_v45 = vpop.eup %9552 }
 0x2bb   : > { %5771 = vmatpush.bf16.msra.mxu0 %v9359_v12  ;;  %5784 = vmatpush.bf16.msra.mxu1 %v9367_v31  ;;  %v9414_v12 = vld [vmem:[%s11379_s6 + $0x1c0] sm:$0xff]  ;;  %v9555_v31 = vpop.eup %9554 }
 0x2bc   : > { %5797 = vmatpush.bf16.msra.mxu2 %v9375_v2  ;;  %5810 = vmatpush.bf16.msra.mxu3 %v9383_v16  ;;  %v4749_v2 = vadd.f32 %v11408_v33, %v1128_v10  ;;  %v9429_v16 = vld [vmem:[%s11379_s6 + $0x238] sm:$0xff]  ;;  %v9557_v15 = vpop.eup %9556  ;;  %v9428_v33 = vld [vmem:[%s11379_s6 + $0x230] sm:$0xff] }
 0x2be   : > { %v4762_v50 = vadd.f32 %v11410_v38, %v4749_v2  ;;  %v9435_v38 = vld [vmem:[%s11379_s6 + $0x268] sm:$0xff]  ;;  %v9448_v2 = vld [vmem:[%s11379_s6 + $0x2d0] sm:$0xff] }
 0x2bf   : > { %5772 = vmatpush.bf16.msra.mxu0 %v9358_v41  ;;  %5785 = vmatpush.bf16.msra.mxu1 %v9366_v49  ;;  %v11440_v4 = vpop.f32.mrf.mxu0  ;;  %v11444_v11 = vpop.f32.mrf.mxu1  ;;  %v4989_v41 = vpack.c.bf16 %v9551_v46, %v9551_v46  ;;  %v4990_v49 = vpack.c.bf16 %v9553_v45, %v9553_v45  ;;  %v9449_v45 = vld [vmem:[%s11379_s6 + $0x2d8] sm:$0xff] }
 0x2c0   : > { %5798 = vmatpush.bf16.msra.mxu2 %v9374_v7  ;;  %5811 = vmatpush.bf16.msra.mxu3 %v9382_v34  ;;  %v4991_v7 = vpack.c.bf16 %v9555_v31, %v9555_v31  ;;  %v4992_v34 = vpack.c.bf16 %v9557_v15, %v9557_v15  ;;  %v4775_v52 = vadd.f32 %v11440_v4, %v4762_v50  ;;  %v9441_v4 = vld [vmem:[%s11379_s6 + $0x298] sm:$0xff]  ;;  %v1130_v50 = vperm.slane %v11306_v39, 3 }
 0x2c2   : > { %5773 = vmatmul.bf16.vlgmr.msra.gmra.mxu0 %v4985_v54  ;;  %5786 = vmatmul.bf16.vlgmr.msra.gmra.mxu1 %v4986_v55  ;;  %v9443_v54 = vld [vmem:[%s11379_s6 + $0x2a8] sm:$0xff]  ;;  %v4788_v55 = vadd.f32 %v11444_v11, %v4775_v52  ;;  %v9432_v11 = vld [vmem:[%s11379_s6 + $0x250] sm:$0xff] }
 0x2c3   : > { %5817 = vmatpush.bf16.msrb.mxu0 %v9397_v51  ;;  %5830 = vmatpush.bf16.msrb.mxu1 %v9405_v48  ;;  %v9436_v51 = vld [vmem:[%s11379_s6 + $0x270] sm:$0xff] }
 0x2c4   : > { %5843 = vmatpush.bf16.msrb.mxu2 %v9413_v29  ;;  %5856 = vmatpush.bf16.msrb.mxu3 %v9421_v42  ;;  %v9444_v48 = vld [vmem:[%s11379_s6 + $0x2b0] sm:$0xff]  ;;  %v9427_v29 = vld [vmem:[%s11379_s6 + $0x228] sm:$0xff] }
 0x2c5   : > { %5799 = vmatmul.bf16.vlgmr.msra.gmra.mxu2 %v4987_v61  ;;  %5812 = vmatmul.bf16.vlgmr.msra.gmra.mxu3 %v4988_v8  ;;  %v9442_v61 = vld [vmem:[%s11379_s6 + $0x2a0] sm:$0xff] }
 0x2c7   : > { %5818 = vmatpush.bf16.msrb.mxu0 %v9396_v56  ;;  %5831 = vmatpush.bf16.msrb.mxu1 %v9404_v57  ;;  %v4776_v40 = vpop.f32.mrf.mxu0  ;;  %v4789_v20 = vpop.f32.mrf.mxu1  ;;  %v9426_v56 = vld [vmem:[%s11379_s6 + $0x220] sm:$0xff] }
 0x2c8   : > { %5844 = vmatpush.bf16.msrb.mxu2 %v9412_v0  ;;  %5857 = vmatpush.bf16.msrb.mxu3 %v9420_v30  ;;  %v11452_v19 = vpop.f32.mrf.mxu2  ;;  %v11454_v63 = vpop.f32.mrf.mxu3  ;;  %v9434_v57 = vld [vmem:[%s11379_s6 + $0x260] sm:$0xff]  ;;  %v9425_v0 = vld [vmem:[%s11379_s6 + $0x218] sm:$0xff] }
 0x2c9   : > { %v4801_v8 = vadd.f32 %v11452_v19, %v4788_v55  ;;  %v9433_v30 = vld [vmem:[%s11379_s6 + $0x258] sm:$0xff]  ;;  %v9559_v20 = vpop.eup %9558 }
 0x2cb   : > { %5819 = vmatpush.bf16.msrb.mxu0 %v9395_v1  ;;  %5832 = vmatpush.bf16.msrb.mxu1 %v9403_v36 }
 0x2cc   : > { %5845 = vmatpush.bf16.msrb.mxu2 %v9411_v23  ;;  %5858 = vmatpush.bf16.msrb.mxu3 %v9419_v3 }
 0x2cf   : > { %5820 = vmatpush.bf16.msrb.mxu0 %v9394_v5  ;;  %5833 = vmatpush.bf16.msrb.mxu1 %v9402_v6  ;;  %v4814_v5 = vadd.f32 %v11454_v63, %v4801_v8  ;;  %v9424_v6 = vld [vmem:[%s11379_s6 + $0x210] sm:$0xff] }
 0x2d0   : > { %5846 = vmatpush.bf16.msrb.mxu2 %v9410_v9  ;;  %5859 = vmatpush.bf16.msrb.mxu3 %v9418_v13  ;;  %v4802_v60 = vpop.f32.mrf.mxu2  ;;  %v4815_v58 = vpop.f32.mrf.mxu3  ;;  %v1129_v9 = vperm.slane %v11306_v39, 2  ;;  %v9440_v13 = vld [vmem:[%s11379_s6 + $0x290] sm:$0xff] }
 0x2d1   : > { %9560 = vtanh.f32 %v4814_v5  ;;  %v9450_v58 = vld [vmem:[%s11379_s6 + $0x2e0] sm:$0xff] }
 0x2d3   : > { %5821 = vmatpush.bf16.msrb.mxu0 %v9393_v14  ;;  %5834 = vmatpush.bf16.msrb.mxu1 %v9401_v18  ;;  %v9453_v14 = vld [vmem:[%s11379_s6 + $0x2f8] sm:$0xff]  ;;  %v9423_v18 = vld [vmem:[%s11379_s6 + $0x208] sm:$0xff] }
 0x2d4   : > { %5847 = vmatpush.bf16.msrb.mxu2 %v9409_v24  ;;  %5860 = vmatpush.bf16.msrb.mxu3 %v9417_v27  ;;  %v9431_v24 = vld [vmem:[%s11379_s6 + $0x248] sm:$0xff]  ;;  %v9452_v27 = vld [vmem:[%s11379_s6 + $0x2f0] sm:$0xff] }
 0x2d7   : > { %5822 = vmatpush.bf16.msrb.mxu0 %v9392_v35  ;;  %5835 = vmatpush.bf16.msrb.mxu1 %v9400_v25  ;;  %v9439_v35 = vld [vmem:[%s11379_s6 + $0x288] sm:$0xff]  ;;  %v9430_v25 = vld [vmem:[%s11379_s6 + $0x240] sm:$0xff] }
 0x2d8   : > { %5848 = vmatpush.bf16.msrb.mxu2 %v9408_v21  ;;  %5861 = vmatpush.bf16.msrb.mxu3 %v9416_v28  ;;  %v9451_v21 = vld [vmem:[%s11379_s6 + $0x2e8] sm:$0xff]  ;;  %v9561_v28 = vpop.eup %9560 }
 0x2db   : > { %5823 = vmatpush.bf16.msrb.mxu0 %v9391_v62  ;;  %5836 = vmatpush.bf16.msrb.mxu1 %v9399_v32  ;;  %v9438_v32 = vld [vmem:[%s11379_s6 + $0x280] sm:$0xff] }
 0x2dc   : > { %5849 = vmatpush.bf16.msrb.mxu2 %v9407_v44  ;;  %5862 = vmatpush.bf16.msrb.mxu3 %v9415_v37  ;;  %v4993_v44 = vpack.c.bf16 %v9559_v20, %v9559_v20  ;;  %v4994_v37 = vpack.c.bf16 %v9561_v28, %v9561_v28 }
 0x2df   : > { %5824 = vmatpush.bf16.msrb.mxu0 %v9390_v47  ;;  %5837 = vmatpush.bf16.msrb.mxu1 %v9398_v22  ;;  %v4826_v42 = vpop.f32.mrf.mxu0  ;;  %v4839_v53 = vpop.f32.mrf.mxu1 }
 0x2e0   : > { %5850 = vmatpush.bf16.msrb.mxu2 %v9406_v17  ;;  %5863 = vmatpush.bf16.msrb.mxu3 %v9414_v12  ;;  %v4827_v19 = vadd.f32 %v4826_v42, %v1129_v9 }
 0x2e2   : > { %5825 = vmatmul.bf16.vlgmr.msrb.gmra.mxu0 %v4989_v41  ;;  %5838 = vmatmul.bf16.vlgmr.msrb.gmra.mxu1 %v4990_v49  ;;  %v4840_v62 = vadd.f32 %v4839_v53, %v4827_v19  ;;  %v9447_v41 = vld [vmem:[%s11379_s6 + $0x2c8] sm:$0xff] }
 0x2e3   : > { %5869 = vmatpush.bf16.msra.mxu0 %v9429_v16  ;;  %5882 = vmatpush.bf16.msra.mxu1 %v9437_v59 }
 0x2e4   : > { %5851 = vmatmul.bf16.vlgmr.msrb.gmra.mxu2 %v4991_v7  ;;  %5864 = vmatmul.bf16.vlgmr.msrb.gmra.mxu3 %v4992_v34  ;;  %v9446_v34 = vld [vmem:[%s11379_s6 + $0x2c0] sm:$0xff] }
 0x2e5   : > { %5895 = vmatpush.bf16.msra.mxu2 %v9445_v43  ;;  %5908 = vmatpush.bf16.msra.mxu3 %v9453_v14 }
 0x2e7   : > { %5870 = vmatpush.bf16.msra.mxu0 %v9428_v33  ;;  %5883 = vmatpush.bf16.msra.mxu1 %v9436_v51  ;;  %v4828_v23 = vpop.f32.mrf.mxu0  ;;  %v4841_v3 = vpop.f32.mrf.mxu1 }
 0x2e8   : > { %v4852_v1 = vpop.f32.mrf.mxu2  ;;  %v4865_v36 = vpop.f32.mrf.mxu3 }
 0x2e9   : > { %5896 = vmatpush.bf16.msra.mxu2 %v9444_v48  ;;  %5909 = vmatpush.bf16.msra.mxu3 %v9452_v27  ;;  %v4853_v60 = vadd.f32 %v4852_v1, %v4840_v62 }
 0x2eb   : > { %5871 = vmatpush.bf16.msra.mxu0 %v9427_v29  ;;  %5884 = vmatpush.bf16.msra.mxu1 %v9435_v38  ;;  %v4866_v10 = vadd.f32 %v4865_v36, %v4853_v60 }
 0x2ed   : > { %5897 = vmatpush.bf16.msra.mxu2 %v9443_v54  ;;  %5910 = vmatpush.bf16.msra.mxu3 %v9451_v21 }
 0x2ef   : > { %5872 = vmatpush.bf16.msra.mxu0 %v9426_v56  ;;  %5885 = vmatpush.bf16.msra.mxu1 %v9434_v57 }
 0x2f0   : > { %v4854_v63 = vpop.f32.mrf.mxu2  ;;  %v4867_v40 = vpop.f32.mrf.mxu3 }
 0x2f1   : > { %5898 = vmatpush.bf16.msra.mxu2 %v9442_v61  ;;  %5911 = vmatpush.bf16.msra.mxu3 %v9450_v58 }
 0x2f3   : > { %5873 = vmatpush.bf16.msra.mxu0 %v9425_v0  ;;  %5886 = vmatpush.bf16.msra.mxu1 %v9433_v30 }
 0x2f5   : > { %5899 = vmatpush.bf16.msra.mxu2 %v9441_v4  ;;  %5912 = vmatpush.bf16.msra.mxu3 %v9449_v45 }
 0x2f7   : > { %5874 = vmatpush.bf16.msra.mxu0 %v9424_v6  ;;  %5887 = vmatpush.bf16.msra.mxu1 %v9432_v11 }
 0x2f9   : > { %5900 = vmatpush.bf16.msra.mxu2 %v9440_v13  ;;  %5913 = vmatpush.bf16.msra.mxu3 %v9448_v2 }
 0x2fb   : > { %5875 = vmatpush.bf16.msra.mxu0 %v9423_v18  ;;  %5888 = vmatpush.bf16.msra.mxu1 %v9431_v24 }
 0x2fd   : > { %5901 = vmatpush.bf16.msra.mxu2 %v9439_v35  ;;  %5914 = vmatpush.bf16.msra.mxu3 %v9447_v41 }
 0x2ff   : > { %5876 = vmatpush.bf16.msra.mxu0 %v9422_v26  ;;  %5889 = vmatpush.bf16.msra.mxu1 %v9430_v25  ;;  %v4878_v46 = vpop.f32.mrf.mxu0  ;;  %v4891_v47 = vpop.f32.mrf.mxu1 }
 0x300   : > { %v4879_v22 = vadd.f32 %v4878_v46, %v4866_v10 }
 0x301   : > { %5902 = vmatpush.bf16.msra.mxu2 %v9438_v32  ;;  %5915 = vmatpush.bf16.msra.mxu3 %v9446_v34 }
 0x302   : > { %5877 = vmatmul.bf16.vlgmr.msra.gmra.mxu0 %v4993_v44  ;;  %5890 = vmatmul.bf16.vlgmr.msra.gmra.mxu1 %v4994_v37  ;;  %v4892_v17 = vadd.f32 %v4891_v47, %v4879_v22 }
 0x304   : > { %9562 = vtanh.f32 %v4892_v17 }
 0x307   : > { %v4880_v16 = vpop.f32.mrf.mxu0  ;;  %v4893_v59 = vpop.f32.mrf.mxu1 }
 0x308   : > { %v4904_v12 = vpop.f32.mrf.mxu2  ;;  %v4917_v31 = vpop.f32.mrf.mxu3 }
 0x309   : > { %v4905_v33 = vadd.f32 %v4904_v12, %v1130_v50 }
 0x30a   : > { %v9563_v15 = vpop.eup %9562 }
 0x30b   : > { %v4995_v49 = vpack.c.bf16 %v9563_v15, %v9563_v15  ;;  %v4918_v51 = vadd.f32 %v4917_v31, %v4905_v33 }
 0x30d   : > { %5903 = vmatmul.bf16.vlgmr.msra.gmra.mxu2 %v4995_v49 }
 0x310   : > { %v4906_v43 = vpop.f32.mrf.mxu2  ;;  %v4919_v7 = vpop.f32.mrf.mxu3 }
 0x31f   : > { %v4930_v48 = vpop.f32.mrf.mxu0  ;;  %v4943_v52 = vpop.f32.mrf.mxu1 }
 0x320   : > { %v4931_v29 = vadd.f32 %v4930_v48, %v4918_v51 }
 0x322   : > { %v4944_v38 = vadd.f32 %v4943_v52, %v4931_v29 }
 0x327   : > { %v4932_v55 = vpop.f32.mrf.mxu0  ;;  %v4945_v56 = vpop.f32.mrf.mxu1 }
 0x328   : > { %v4956_v42 = vpop.f32.mrf.mxu2  ;;  %v4969_v53 = vpop.f32.mrf.mxu3 }
 0x329   : > { %v4957_v54 = vadd.f32 %v4956_v42, %v4944_v38 }
 0x32b   : > { %v4970_v57 = vadd.f32 %v4969_v53, %v4957_v54 }
 0x32d   : > { %9564 = vtanh.f32 %v4970_v57 }
 0x330   : > { %v4958_v61 = vpop.f32.mrf.mxu2  ;;  %v4971_v8 = vpop.f32.mrf.mxu3 }
 0x333   : > { %v9565_v0 = vpop.eup %9564 }
 0x334   : > { %v4996_v30 = vpack.c.bf16 %v9565_v0, %v9565_v0 }
 0x336   : > { %5916 = vmatmul.bf16.vlgmr.msra.gmra.mxu3 %v4996_v30 }
 0x33f   : > { %v5774_v1 = vpop.f32.mrf.mxu0  ;;  %v5787_v39 = vpop.f32.mrf.mxu1 }
 0x340   : > { %v5788_v36 = vadd.f32 %v5787_v39, %v5774_v1 }
 0x347   : > { %v5776_v5 = vpop.f32.mrf.mxu0  ;;  %v5789_v6 = vpop.f32.mrf.mxu1 }
 0x348   : > { %v5800_v23 = vpop.f32.mrf.mxu2  ;;  %v5813_v3 = vpop.f32.mrf.mxu3 }
 0x349   : > { %v5801_v4 = vadd.f32 %v5800_v23, %v5788_v36 }
 0x34b   : > { %v5814_v11 = vadd.f32 %v5813_v3, %v5801_v4 }
 0x350   : > { %v5802_v9 = vpop.f32.mrf.mxu2  ;;  %v5815_v13 = vpop.f32.mrf.mxu3 }
 0x35f   : > { %v5826_v14 = vpop.f32.mrf.mxu0  ;;  %v5839_v18 = vpop.f32.mrf.mxu1 }
 0x360   : > { %v5827_v24 = vadd.f32 %v5826_v14, %v5814_v11 }
 0x362   : > { %v5840_v27 = vadd.f32 %v5839_v18, %v5827_v24 }
 0x367   : > { %v5852_v19 = vpop.f32.mrf.mxu2  ;;  %v5865_v63 = vpop.f32.mrf.mxu3 }
 0x368   : > { %v5853_v40 = vadd.f32 %v5852_v19, %v5840_v27  ;;  %v5828_v35 = vpop.f32.mrf.mxu0  ;;  %v5841_v26 = vpop.f32.mrf.mxu1 }
 0x36a   : > { %v5866_v25 = vadd.f32 %v5865_v63, %v5853_v40 }
 0x36f   : > { %v5854_v20 = vpop.f32.mrf.mxu2  ;;  %v5867_v21 = vpop.f32.mrf.mxu3 }
 0x37f   : > { %v5878_v28 = vpop.f32.mrf.mxu0  ;;  %v5891_v62 = vpop.f32.mrf.mxu1 }
 0x380   : > { %v5879_v10 = vadd.f32 %v5878_v28, %v5866_v25 }
 0x382   : > { %v5892_v58 = vadd.f32 %v5891_v62, %v5879_v10 }
 0x387   : > { %v5880_v32 = vpop.f32.mrf.mxu0  ;;  %v5893_v44 = vpop.f32.mrf.mxu1 }
 0x390   : > { %v5904_v37 = vpop.f32.mrf.mxu2 }
 0x391   : > { %v5905_v46 = vadd.f32 %v5904_v37, %v5892_v58 }
 0x398   : > { %v5906_v60 = vpop.f32.mrf.mxu2 }
 0x3b9   : > { %v5917_v47 = vpop.f32.mrf.mxu3 }
 0x3ba   : > { %v5918_v22 = vadd.f32 %v5917_v47, %v5905_v46 }
 0x3bc   : > { %5925 = vst.msk [vmem:[#allocation3] sm:$0x3] %vm5924_vm7, %v5918_v22 }
 0x3c1   : > { %v5919_v45 = vpop.f32.mrf.mxu3 }
 0x3c3   : > { %v5937_v17 = vld [vmem:[#allocation3] sm:$0x3] }
 0x3c4   : > { %5939 = vst.msk [vmem:[%s309_s28] sm:$0x3] %vm5924_vm7, %v5937_v17 }
 0x3c5   : > { %9703 = shalt.err (!%p9700_p3)
}
 0x3c6   : > { %9467 = dma.vmem_to_hbm [thread:$0]  (%p9876_p0), %s5954_s25, 32, %s5956_s0, %s5941_s1  }
 0x3c7 PF: > { %s5967_s11 = sand.u32 1, %s9742_s15   ;;  %p9481_p5 = pnand %p6084_p4, %p9880_p2 }
 0x3c8   : > { %s5968_s30 = scalar_lea.sflag [#allocation6], %s5967_s11 }
 0x3c9   : > { %p9482_p1 = pneg %p9481_p5 }
 0x3cb   : > { %9737 = dma.done.wait (%p9482_p1), %s5968_s30, 32  }
 0x3cc   : > { %9739 = vsyncadd (%p9482_p1), %s5968_s30, 4294967264  ;;  %s21_s20 = sadd.s32 1, %s9762_s20   ;;  %s11574_s23 = sld [smem:[#allocation14_spill]] }
 0x3cd   : > { %p18_p6 = scmp.ge.s32.totalorder %s21_s20, 4   ;;  %s11575_s15 = smov %s9746_s16 }
 0x3ce   : > { %s11576_s16 = smov %s9750_s17  ;;  %s11577_s17 = smov %s9840_s26 }
 0x3cf   : > { %s11578_s18 = smov %s9758_s19  ;;  %20 = sbr.rel (!%p18_p6) target bundleno = 10 (0xa), region = 117 }
 0x3d2   : > { %s11579_s19 = smov %s11574_s23 }
 0x3d4   :  { %5974 = vsyncpa [#allocation5], 1 }
 0x3d5   :  { %5976 = vsyncpa [#allocation5 + $0x1], 1 }
 0x3d6   :  { %5977 = vsyncpa [#allocation8], 1 }
 0x3d7   :  { %5979 = vsyncpa [#allocation8 + $0x1], 1 }
 0x3d8   :  { %5980 = vsyncpa [#allocation6], 1 }
 0x3d9   :  { %5982 = vsyncpa [#allocation6 + $0x1], 1 }

</bundles_post_ra>
